<compile_context>
chip_gen: v5e
topology: v5e:2x2
jax: 0.10.0
libtpu: 0.0.40
codegen_flags: <defaults>
</compile_context>

<pallas_src>
import functools

import jax
import jax.numpy as jnp
from jax.experimental import pallas as pl
from jax.experimental.pallas import tpu as pltpu

LATENT_DIM = 256
HIDDEN = 1024


def _round_up(n, m):
    return ((n + m - 1) // m) * m


def _pick_tb(batch):
    """Static batch-tile choice per TPU generation (runs outside jit)."""
    try:
        kind = jax.devices()[0].device_kind.lower()
    except Exception:  # non-TPU / interpret fallback
        kind = ""
    # 512-row tiles fit comfortably in v6e/v7x's 32 MiB scoped-VMEM default; v5e's
    # default is 16 MiB, so stay at 256 there (and on anything we don't recognize).
    max_tb = 512 if ("v6" in kind or "v7" in kind) else 256
    target = max(batch, 1)
    # v7x: the "parallel" batch axis is sharded across 2 TensorCores -> aim for >= 2
    # grid steps whenever there is enough work to split.
    if "v7" in kind and target > 8:
        target = pl.cdiv(target, 2)
    return min(max_tb, _round_up(target, 8))


def domain_classifier_kernel(x_ref, w1_ref, b1_ref, w2_ref, b2_ref, w3_ref, b3_ref, o_ref):
    # In-kernel bf16 cast of the streamed x tile (VPU, hidden under MXU work).
    x = x_ref[...].astype(jnp.bfloat16)
    # fc1 + ReLU  (bf16 operands, f32 accumulation on the MXU)
    h1 = jnp.dot(x, w1_ref[...], preferred_element_type=jnp.float32) + b1_ref[...]
    h1 = jnp.maximum(h1, 0.0).astype(jnp.bfloat16)
    # dropout (eval mode) -> identity
    # fc2 + ReLU
    h2 = jnp.dot(h1, w2_ref[...], preferred_element_type=jnp.float32) + b2_ref[...]
    h2 = jnp.maximum(h2, 0.0)                      # keep f32 for the fc3 VPU path
    # dropout (eval mode) -> identity
    # fc3 (out_dim = 1): VPU multiply + XLU lane reduction instead of a 1-column MXU pass
    o_ref[...] = jnp.sum(h2 * w3_ref[...], axis=-1, keepdims=True) + b3_ref[...]


def prepare_params(params):
    """One-time parameter prep (hoisted out of the per-call forward):
    weights of fc1/fc2 to bf16 for the MXU; fc3 kept as an f32 (1, HIDDEN) row for the
    VPU/XLU logit reduction; biases in f32."""
    w1, b1, w2, b2, w3, b3 = params
    return (w1.astype(jnp.bfloat16), b1.astype(jnp.float32).reshape(1, HIDDEN),
            w2.astype(jnp.bfloat16), b2.astype(jnp.float32).reshape(1, HIDDEN),
            w3.astype(jnp.float32).reshape(1, HIDDEN),   # (HIDDEN,1) column -> (1,HIDDEN) row
            b3.astype(jnp.float32).reshape(1, 1))


@functools.partial(jax.jit, static_argnames=("tb",))
def _forward_impl(x, prepared, tb):
    w1, b1, w2, b2, w3_row, b3 = prepared
    B = x.shape[0]
    grid = (pl.cdiv(B, tb),)

    rows = grid[0] * tb
    flops = 2 * rows * (LATENT_DIM * HIDDEN + HIDDEN * HIDDEN + HIDDEN)
    bytes_accessed = (B * LATENT_DIM * x.dtype.itemsize
                      + (w1.size + w2.size) * 2
                      + (b1.size + b2.size + w3_row.size + b3.size) * 4
                      + B * 4)

    # Weights/biases: same block every grid step -> stay resident in VMEM.
    resident = lambda shape: pl.BlockSpec(shape, lambda i: (0, 0))

    out = pl.pallas_call(
        domain_classifier_kernel,
        out_shape=jax.ShapeDtypeStruct((B, 1), jnp.float32),
        grid=grid,
        in_specs=[
            pl.BlockSpec((tb, LATENT_DIM), lambda i: (i, 0)),   # x streamed per batch tile (f32)
            resident((LATENT_DIM, HIDDEN)),                     # w1 (bf16)
            resident((1, HIDDEN)),                              # b1 (f32)
            resident((HIDDEN, HIDDEN)),                         # w2 (bf16)
            resident((1, HIDDEN)),                              # b2 (f32)
            resident((1, HIDDEN)),                              # w3 row (f32)
            resident((1, 1)),                                   # b3 (f32)
        ],
        out_specs=pl.BlockSpec((tb, 1), lambda i: (i, 0)),
        compiler_params=pltpu.CompilerParams(dimension_semantics=("parallel",)),
        cost_estimate=pl.CostEstimate(flops=flops, transcendentals=0,
                                      bytes_accessed=bytes_accessed),
    )(x, w1, b1, w2, b2, w3_row, b3)
    return out


def domain_classifier_forward(x, prepared, tb=None):
    """x: (B, LATENT_DIM). Returns (B, 1) float32 logits."""
    if tb is None:
        tb = _pick_tb(x.shape[0])
    return _forward_impl(x, prepared, int(tb))


def init_params(key):
    """Deterministic init mimicking nn.Linear default (uniform +/- 1/sqrt(fan_in)).
    Weights returned already transposed to (in, out)."""
    ks = jax.random.split(key, 6)

    def lin(kw, kb, fan_in, fan_out):
        bound = 1.0 / jnp.sqrt(fan_in)
        w = jax.random.uniform(kw, (fan_in, fan_out), jnp.float32, -bound, bound)
        b = jax.random.uniform(kb, (1, fan_out), jnp.float32, -bound, bound)
        return w, b

    w1, b1 = lin(ks[0], ks[1], LATENT_DIM, HIDDEN)
    w2, b2 = lin(ks[2], ks[3], HIDDEN, HIDDEN)
    w3, b3 = lin(ks[4], ks[5], HIDDEN, 1)
    return (w1, b1, w2, b2, w3, b3)


def reference_forward_f32(x, params):
    w1, b1, w2, b2, w3, b3 = params
    h = jnp.maximum(x @ w1 + b1, 0.0)
    h = jnp.maximum(h @ w2 + b2, 0.0)
    return h @ w3 + b3


def reference_forward_mixed(x, prepared):
    """Pure-JAX reference with the kernel's exact precision contract:
    bf16 operands / f32 accumulation for fc1+fc2, f32 row-reduction for fc3."""
    w1, b1, w2, b2, w3_row, b3 = prepared
    xb = x.astype(jnp.bfloat16)
    h = jnp.maximum(jnp.dot(xb, w1, preferred_element_type=jnp.float32) + b1, 0.0)
    h = h.astype(jnp.bfloat16)
    h = jnp.maximum(jnp.dot(h, w2, preferred_element_type=jnp.float32) + b2, 0.0)
    return jnp.sum(h * w3_row, axis=-1, keepdims=True) + b3


if __name__ == "__main__":
    key = jax.random.PRNGKey(0)
    k_x, k_p = jax.random.split(key)

    params = init_params(k_p)
    prepared = prepare_params(params)

    # Small batch (single grid step, ragged block: B < sublane tile).
    B = 2
    x = jax.random.normal(k_x, (B, LATENT_DIM), jnp.float32)
    out = jax.block_until_ready(domain_classifier_forward(x, prepared))
    assert out.shape == (B, 1), out.shape
    assert jnp.allclose(out, reference_forward_mixed(x, prepared), atol=1e-2, rtol=1e-2), \
        "mismatch vs mixed-precision reference"
    assert jnp.allclose(out, reference_forward_f32(x, params), atol=5e-2, rtol=5e-2), \
        "mismatch vs f32 reference"

    # Larger batch with an explicit small tile: exercises the multi-step grid and the
    # ragged last block (260 rows -> tiles of 128, 128, 4).
    B2 = 260
    x2 = jax.random.normal(k_x, (B2, LATENT_DIM), jnp.float32)
    out2 = jax.block_until_ready(domain_classifier_forward(x2, prepared, tb=128))
    assert out2.shape == (B2, 1), out2.shape
    assert jnp.allclose(out2, reference_forward_mixed(x2, prepared), atol=1e-2, rtol=1e-2), \
        "mismatch vs mixed-precision reference (tiled/ragged path)"

    # Default (per-device) tile on the larger batch as well.
    out3 = jax.block_until_ready(domain_classifier_forward(x2, prepared))
    assert jnp.allclose(out3, out2, atol=1e-3, rtol=1e-3), "tile-size dependence in results"

    print("KERNEL_OK")
</pallas_src>

<mosaic_0001>
module attributes {stable_mosaic.version = 11 : i64} {
  func.func @domain_classifier_kernel(%arg0: i32, %arg1: memref<8x256xf32, #tpu.memory_space<vmem>>, %arg2: memref<256x1024xbf16, #tpu.memory_space<vmem>>, %arg3: memref<1x1024xf32, #tpu.memory_space<vmem>>, %arg4: memref<1024x1024xbf16, #tpu.memory_space<vmem>>, %arg5: memref<1x1024xf32, #tpu.memory_space<vmem>>, %arg6: memref<1x1024xf32, #tpu.memory_space<vmem>>, %arg7: memref<1x1xf32, #tpu.memory_space<vmem>>, %arg8: memref<8x1xf32, #tpu.memory_space<vmem>>) attributes {dimension_semantics = [#tpu.dimension_semantics<parallel>], iteration_bounds = array<i64: 1>, scalar_prefetch = 0 : i64, scratch_operands = 0 : i64, tpu.core_type = #tpu.core_type<tc>, window_params = [{transform_indices = @transform_0, window_bounds = array<i64: 8, 256>}, {pipeline_mode = #tpu.pipeline_mode<synchronous>, transform_indices = @transform_1, window_bounds = array<i64: 256, 1024>}, {pipeline_mode = #tpu.pipeline_mode<synchronous>, transform_indices = @transform_2, window_bounds = array<i64: 1, 1024>}, {pipeline_mode = #tpu.pipeline_mode<synchronous>, transform_indices = @transform_3, window_bounds = array<i64: 1024, 1024>}, {pipeline_mode = #tpu.pipeline_mode<synchronous>, transform_indices = @transform_4, window_bounds = array<i64: 1, 1024>}, {pipeline_mode = #tpu.pipeline_mode<synchronous>, transform_indices = @transform_5, window_bounds = array<i64: 1, 1024>}, {pipeline_mode = #tpu.pipeline_mode<synchronous>, transform_indices = @transform_6, window_bounds = array<i64: 1, 1>}, {transform_indices = @transform_7, window_bounds = array<i64: 8, 1>}]} {
    %c0 = arith.constant 0 : index
    %c0_0 = arith.constant 0 : index
    %0 = vector.load %arg1[%c0, %c0_0] : memref<8x256xf32, #tpu.memory_space<vmem>>, vector<8x256xf32>
    %1 = arith.truncf %0 : vector<8x256xf32> to vector<8x256xbf16>
    %c0_1 = arith.constant 0 : index
    %c0_2 = arith.constant 0 : index
    %2 = vector.load %arg2[%c0_1, %c0_2] : memref<256x1024xbf16, #tpu.memory_space<vmem>>, vector<256x1024xbf16>
    %cst = arith.constant dense<0.000000e+00> : vector<8x1024xf32>
    %3 = tpu.matmul %1, %2, %cst {dimension_numbers = #tpu.dot_dimension_numbers<[1], [0], [0], [1], [0, 0, 1, 1], [], []>} : vector<8x256xbf16>, vector<256x1024xbf16>, vector<8x1024xf32> -> vector<8x1024xf32>
    %c0_3 = arith.constant 0 : index
    %c0_4 = arith.constant 0 : index
    %4 = vector.load %arg3[%c0_3, %c0_4] : memref<1x1024xf32, #tpu.memory_space<vmem>>, vector<1x1024xf32>
    %5 = vector.broadcast %4 : vector<1x1024xf32> to vector<8x1024xf32>
    %6 = arith.addf %3, %5 : vector<8x1024xf32>
    %cst_5 = arith.constant 0.000000e+00 : f32
    %7 = vector.broadcast %cst_5 : f32 to vector<8x1024xf32>
    %8 = arith.maximumf %6, %7 : vector<8x1024xf32>
    %9 = arith.truncf %8 : vector<8x1024xf32> to vector<8x1024xbf16>
    %c0_6 = arith.constant 0 : index
    %c0_7 = arith.constant 0 : index
    %10 = vector.load %arg4[%c0_6, %c0_7] : memref<1024x1024xbf16, #tpu.memory_space<vmem>>, vector<1024x1024xbf16>
    %cst_8 = arith.constant dense<0.000000e+00> : vector<8x1024xf32>
    %11 = tpu.matmul %9, %10, %cst_8 {dimension_numbers = #tpu.dot_dimension_numbers<[1], [0], [0], [1], [0, 0, 1, 1], [], []>} : vector<8x1024xbf16>, vector<1024x1024xbf16>, vector<8x1024xf32> -> vector<8x1024xf32>
    %c0_9 = arith.constant 0 : index
    %c0_10 = arith.constant 0 : index
    %12 = vector.load %arg5[%c0_9, %c0_10] : memref<1x1024xf32, #tpu.memory_space<vmem>>, vector<1x1024xf32>
    %13 = vector.broadcast %12 : vector<1x1024xf32> to vector<8x1024xf32>
    %14 = arith.addf %11, %13 : vector<8x1024xf32>
    %cst_11 = arith.constant 0.000000e+00 : f32
    %15 = vector.broadcast %cst_11 : f32 to vector<8x1024xf32>
    %16 = arith.maximumf %14, %15 : vector<8x1024xf32>
    %c0_12 = arith.constant 0 : index
    %c0_13 = arith.constant 0 : index
    %17 = vector.load %arg6[%c0_12, %c0_13] : memref<1x1024xf32, #tpu.memory_space<vmem>>, vector<1x1024xf32>
    %18 = vector.broadcast %17 : vector<1x1024xf32> to vector<8x1024xf32>
    %19 = arith.mulf %16, %18 : vector<8x1024xf32>
    %cst_14 = arith.constant dense<0.000000e+00> : vector<8xf32>
    %20 = vector.multi_reduction <add>, %19, %cst_14 [1] : vector<8x1024xf32> to vector<8xf32>
    %21 = vector.shape_cast %20 : vector<8xf32> to vector<8x1xf32>
    %c0_15 = arith.constant 0 : index
    %c0_16 = arith.constant 0 : index
    %22 = vector.load %arg7[%c0_15, %c0_16] : memref<1x1xf32, #tpu.memory_space<vmem>>, vector<1x1xf32>
    %23 = vector.broadcast %22 : vector<1x1xf32> to vector<8x1xf32>
    %24 = arith.addf %21, %23 : vector<8x1xf32>
    %c0_17 = arith.constant 0 : index
    %c0_18 = arith.constant 0 : index
    %25 = vector.load %arg8[%c0_17, %c0_18] : memref<8x1xf32, #tpu.memory_space<vmem>>, vector<8x1xf32>
    tpu.vector_store %arg8[%c0_17, %c0_18], %24 {strides = array<i32>} : memref<8x1xf32, #tpu.memory_space<vmem>>, vector<8x1xf32>,
    return
  }
  func.func @transform_0(%arg0: i32) -> (i32, i32) {
    %c0_i32 = arith.constant 0 : i32
    %c0_i32_0 = arith.constant 0 : i32
    return %arg0, %c0_i32 : i32, i32
  }
  func.func @transform_1(%arg0: i32) -> (i32, i32) {
    %c0_i32 = arith.constant 0 : i32
    %c0_i32_0 = arith.constant 0 : i32
    %c0_i32_1 = arith.constant 0 : i32
    return %c0_i32, %c0_i32_0 : i32, i32
  }
  func.func @transform_2(%arg0: i32) -> (i32, i32) {
    %c0_i32 = arith.constant 0 : i32
    %c0_i32_0 = arith.constant 0 : i32
    %c0_i32_1 = arith.constant 0 : i32
    return %c0_i32, %c0_i32_0 : i32, i32
  }
  func.func @transform_3(%arg0: i32) -> (i32, i32) {
    %c0_i32 = arith.constant 0 : i32
    %c0_i32_0 = arith.constant 0 : i32
    %c0_i32_1 = arith.constant 0 : i32
    return %c0_i32, %c0_i32_0 : i32, i32
  }
  func.func @transform_4(%arg0: i32) -> (i32, i32) {
    %c0_i32 = arith.constant 0 : i32
    %c0_i32_0 = arith.constant 0 : i32
    %c0_i32_1 = arith.constant 0 : i32
    return %c0_i32, %c0_i32_0 : i32, i32
  }
  func.func @transform_5(%arg0: i32) -> (i32, i32) {
    %c0_i32 = arith.constant 0 : i32
    %c0_i32_0 = arith.constant 0 : i32
    %c0_i32_1 = arith.constant 0 : i32
    return %c0_i32, %c0_i32_0 : i32, i32
  }
  func.func @transform_6(%arg0: i32) -> (i32, i32) {
    %c0_i32 = arith.constant 0 : i32
    %c0_i32_0 = arith.constant 0 : i32
    %c0_i32_1 = arith.constant 0 : i32
    return %c0_i32, %c0_i32_0 : i32, i32
  }
  func.func @transform_7(%arg0: i32) -> (i32, i32) {
    %c0_i32 = arith.constant 0 : i32
    %c0_i32_0 = arith.constant 0 : i32
    return %arg0, %c0_i32 : i32, i32
  }
}

</mosaic_0001>

<bundles_post_ra>
// kernel: _forward_impl.1
= control target key start
LH: loop header
LB: loop body
LE: loop exit
PB: predicated region body
PF: predicated region fallthrough
CT: control target
= control target key end

     0   :  { %s8806_s0 = inlined_call_operand.hbm [shape: f32[2,256], index: 0, kind: input, shape index: {}]   ;;  %s8807_s1 = inlined_call_operand.hbm [shape: bf16[256,1024], index: 1, kind: input, shape index: {}]   ;;  %s8808_s2 = inlined_call_operand.hbm [shape: f32[1,1024], index: 2, kind: input, shape index: {}]   ;;  %s8809_s3 = inlined_call_operand.hbm [shape: bf16[1024,1024], index: 3, kind: input, shape index: {}]   ;;  %s8810_s4 = inlined_call_operand.hbm [shape: f32[1,1024], index: 4, kind: input, shape index: {}]   ;;  %s8811_s5 = inlined_call_operand.hbm [shape: f32[1,1024], index: 5, kind: input, shape index: {}]   ;;  %s8812_s6 = inlined_call_operand.<no memory space> [shape: f32[1,1], index: 6, kind: input, shape index: {}]   ;;  %s8813_s7 = inlined_call_operand.vmem [shape: f32[2,1], index: 7, kind: output, shape index: {}]  }
   0x1   :  { %v12_v0 = vstv %s8812_s6 }
   0x2   :  { %13 = vst [vmem:[#allocation2] sm:$0x1] %v12_v0 }
   0x3   :  { %14 = vsyncpa [#allocation4], 0 }
   0x4   :  { %15 = vsyncpa [#allocation6], 0 }
   0x5   :  { %16 = vsyncpa [#allocation9], 0 }
   0x6   :  { %17 = vsyncpa [#allocation12], 0  ;;  %s35_s28 = sshll.u32 %s8807_s1, 4  ;;  %s36_s28 = int_to_ptr.hbm [resolvable:$true] %s35_s28 }
   0x7   :  { %21 = vsyncadd [#allocation4], 192  ;;  %s8530_s29 = smov [#allocation5]   ;;  %s59_s10 = sshll.u32 %s8809_s3, 4  ;;  %s60_s10 = int_to_ptr.hbm [resolvable:$true] %s59_s10 }
   0x8   :  { %s37_s30 = sshll.u32 %s8530_s29, 4  ;;  %s8531_s11 = smov 512   ;;  %s38_s30 = int_to_ptr.vmem [resolvable:$true] %s37_s30 }
   0x9   :  { %s8532_s6 = smov 32   ;;  %s8533_s12 = smov [#allocation8]  }
   0xa   :  { %43 = dma.hbm_to_vmem [thread:$0]  %s36_s28, 16384, %s38_s30, [#allocation6], %s8531_s11, %s8531_s11, %s8532_s6  }
   0xb   :  { %s61_s13 = sshll.u32 %s8533_s12, 4  ;;  %s22_s16 = sshll.u32 %s8806_s0, 4  ;;  %s62_s13 = int_to_ptr.vmem [resolvable:$true] %s61_s13  ;;  %s23_s16 = int_to_ptr.hbm [resolvable:$true] %s22_s16 }
   0xc   :  { %67 = dma.hbm_to_vmem [thread:$0]  %s60_s10, 65536, %s62_s13, [#allocation9], %s8531_s11, %s8531_s11, %s8532_s6  }
   0xd   :  { %s8534_s1 = smov [#allocation3]   ;;  %s49_s3 = sshll.u32 %s8808_s2, 4  ;;  %s50_s3 = int_to_ptr.hbm [resolvable:$true] %s49_s3 }
   0xe   :  { %s24_s17 = sshll.u32 %s8534_s1, 4  ;;  %s8535_s20 = smov 64   ;;  %s25_s17 = int_to_ptr.vmem [resolvable:$true] %s24_s17 }
   0xf   :  { %s8536_s21 = smov 4   ;;  %s8537_s22 = smov [#allocation7]  }
  0x10   :  { %30 = dma.hbm_to_vmem [thread:$0]  %s23_s16, 64, %s25_s17, [#allocation4], %s8535_s20, %s8535_s20, %s8536_s21  }
  0x11   :  { %s51_s23 = sshll.u32 %s8537_s22, 4  ;;  %s73_s0 = sshll.u32 %s8810_s4, 4  ;;  %s52_s23 = int_to_ptr.vmem [resolvable:$true] %s51_s23  ;;  %s74_s0 = int_to_ptr.hbm [resolvable:$true] %s73_s0 }
  0x12   :  { %54 = dma.hbm_to_vmem [thread:$0]  %s50_s3, 128, %s52_s23, [#allocation6]  }
  0x13   :  { %s84_s28 = sshll.u32 %s8811_s5, 4  ;;  %s8538_s29 = smov [#allocation10]   ;;  %s85_s28 = int_to_ptr.hbm [resolvable:$true] %s84_s28 }
  0x14   :  { %s75_s30 = sshll.u32 %s8538_s29, 4  ;;  %s8539_s2 = smov [#allocation11]   ;;  %s76_s30 = int_to_ptr.vmem [resolvable:$true] %s75_s30 }
  0x15   :  { %78 = dma.hbm_to_vmem [thread:$0]  %s74_s0, 128, %s76_s30, [#allocation9]  }
  0x16   :  { %s86_s8 = sshll.u32 %s8539_s2, 4  ;;  %s87_s8 = int_to_ptr.vmem [resolvable:$true] %s86_s8 }
  0x17   :  { %89 = dma.hbm_to_vmem [thread:$0]  %s85_s28, 128, %s87_s8, [#allocation12]  }
  0x18   :  { %8522 = dma.done.wait [#allocation4], 256  }
  0x19   :  { %8523 = vsyncadd [#allocation4], 4294967040 }
  0x1a   :  { %8524 = dma.done.wait [#allocation6], 16512  }
  0x1b   :  { %8525 = vsyncadd [#allocation6], 4294950784 }
  0x1c   :  { %8526 = dma.done.wait [#allocation9], 65664  }
  0x1d   :  { %8527 = vsyncadd [#allocation9], 4294901632 }
  0x1e   :  { %8528 = dma.done.wait [#allocation12], 128  }
  0x1f   :  { %8529 = vsyncadd [#allocation12], 4294967168  ;;  %v5390_v1 = vld [vmem:[#allocation5 + $0x1c0] sm:$0xf]  ;;  %v7780_v6 = vld [vmem:[#allocation5 + $0x1c4] sm:$0xf] }
  0x20   :  { %v7784_v2 = vld [vmem:[#allocation5 + $0x1dc] sm:$0xf0]  ;;  %v5392_v7 = vld [vmem:[#allocation5 + $0x1e0] sm:$0xf0]  ;;  %vm5117_vm0 = vcmask 7168  }
  0x21   :  { %v5646_v3 = vld [vmem:[#allocation5 + $0x3c0] sm:$0xf]  ;;  %v5391_v4 = vor.u32 %v7784_v2, %v5390_v1  ;;  %v5395_v9 = vor.u32 %v7780_v6, %v5392_v7  ;;  %v7844_v10 = vld [vmem:[#allocation5 + $0x3c4] sm:$0xf] }
  0x22   :  { %v7848_v5 = vld [vmem:[#allocation5 + $0x3dc] sm:$0xf0]  ;;  %v5648_v11 = vld [vmem:[#allocation5 + $0x3e0] sm:$0xf0] }
  0x23   :  { %v5647_v8 = vor.u32 %v7848_v5, %v5646_v3  ;;  %v5358_v12 = vld [vmem:[#allocation5 + $0x180] sm:$0xf]  ;;  %923 = vmatpush.bf16.msra.mxu0 %v5391_v4  ;;  %v5651_v13 = vor.u32 %v7844_v10, %v5648_v11  ;;  %949 = vmatpush.bf16.msra.mxu2 %v5395_v9  ;;  %v7772_v19 = vld [vmem:[#allocation5 + $0x184] sm:$0xf] }
  0x24   :  { %v7776_v14 = vld [vmem:[#allocation5 + $0x19c] sm:$0xf0]  ;;  %v5360_v20 = vld [vmem:[#allocation5 + $0x1a0] sm:$0xf0] }
  0x25   :  { %v5614_v15 = vld [vmem:[#allocation5 + $0x380] sm:$0xf]  ;;  %936 = vmatpush.bf16.msra.mxu1 %v5647_v8  ;;  %v5359_v17 = vor.u32 %v7776_v14, %v5358_v12  ;;  %v7836_v21 = vld [vmem:[#allocation5 + $0x384] sm:$0xf]  ;;  %962 = vmatpush.bf16.msra.mxu3 %v5651_v13  ;;  %v5363_v22 = vor.u32 %v7772_v19, %v5360_v20 }
  0x26   :  { %v7840_v16 = vld [vmem:[#allocation5 + $0x39c] sm:$0xf0]  ;;  %v5616_v23 = vld [vmem:[#allocation5 + $0x3a0] sm:$0xf0] }
  0x27   :  { %v5615_v18 = vor.u32 %v7840_v16, %v5614_v15  ;;  %v5326_v24 = vld [vmem:[#allocation5 + $0x140] sm:$0xf]  ;;  %v5619_v26 = vor.u32 %v7836_v21, %v5616_v23  ;;  %v7764_v29 = vld [vmem:[#allocation5 + $0x144] sm:$0xf]  ;;  %924 = vmatpush.bf16.msra.mxu0 %v5359_v17  ;;  %950 = vmatpush.bf16.msra.mxu2 %v5363_v22 }
  0x28   :  { %v7768_v25 = vld [vmem:[#allocation5 + $0x15c] sm:$0xf0]  ;;  %v5328_v31 = vld [vmem:[#allocation5 + $0x160] sm:$0xf0] }
  0x29   :  { %v5582_v27 = vld [vmem:[#allocation5 + $0x340] sm:$0xf]  ;;  %v5327_v30 = vor.u32 %v7768_v25, %v5326_v24  ;;  %v7828_v32 = vld [vmem:[#allocation5 + $0x344] sm:$0xf]  ;;  %937 = vmatpush.bf16.msra.mxu1 %v5615_v18  ;;  %v5331_v35 = vor.u32 %v7764_v29, %v5328_v31  ;;  %963 = vmatpush.bf16.msra.mxu3 %v5619_v26  ;;  %v5398_v29 = vld [vmem:[#allocation5 + $0x1c8] sm:$0xf] }
  0x2a   :  { %v7832_v28 = vld [vmem:[#allocation5 + $0x35c] sm:$0xf0]  ;;  %v5584_v33 = vld [vmem:[#allocation5 + $0x360] sm:$0xf0]  ;;  %v5654_v31 = vld [vmem:[#allocation5 + $0x3c8] sm:$0xf] }
  0x2b   :  { %v5583_v34 = vor.u32 %v7832_v28, %v5582_v27  ;;  %v5294_v36 = vld [vmem:[#allocation5 + $0x100] sm:$0xf]  ;;  %v5587_v39 = vor.u32 %v7828_v32, %v5584_v33  ;;  %v7756_v41 = vld [vmem:[#allocation5 + $0x104] sm:$0xf]  ;;  %925 = vmatpush.bf16.msra.mxu0 %v5327_v30  ;;  %951 = vmatpush.bf16.msra.mxu2 %v5331_v35  ;;  %v7785_v30 = vld [vmem:[#allocation5 + $0x1e4] sm:$0xf0] }
  0x2c   :  { %v7760_v37 = vld [vmem:[#allocation5 + $0x11c] sm:$0xf0]  ;;  %v5296_v42 = vld [vmem:[#allocation5 + $0x120] sm:$0xf0]  ;;  %v7849_v33 = vld [vmem:[#allocation5 + $0x3e4] sm:$0xf0] }
  0x2d   :  { %v5550_v38 = vld [vmem:[#allocation5 + $0x300] sm:$0xf]  ;;  %v7820_v43 = vld [vmem:[#allocation5 + $0x304] sm:$0xf]  ;;  %v5295_v45 = vor.u32 %v7760_v37, %v5294_v36  ;;  %938 = vmatpush.bf16.msra.mxu1 %v5583_v34  ;;  %v5299_v47 = vor.u32 %v7756_v41, %v5296_v42  ;;  %964 = vmatpush.bf16.msra.mxu3 %v5587_v39  ;;  %v7781_v34 = vld [vmem:[#allocation5 + $0x1cc] sm:$0xf]  ;;  %v5399_v41 = vor.u32 %v7785_v30, %v5398_v29 }
  0x2e   :  { %v7824_v40 = vld [vmem:[#allocation5 + $0x31c] sm:$0xf0]  ;;  %v5552_v44 = vld [vmem:[#allocation5 + $0x320] sm:$0xf0]  ;;  %v5400_v35 = vld [vmem:[#allocation5 + $0x1e8] sm:$0xf0] }
  0x2f   :  { %v5551_v46 = vor.u32 %v7824_v40, %v5550_v38  ;;  %v5262_v48 = vld [vmem:[#allocation5 + $0xc0] sm:$0xf]  ;;  %v5555_v51 = vor.u32 %v7820_v43, %v5552_v44  ;;  %v7748_v53 = vld [vmem:[#allocation5 + $0xc4] sm:$0xf]  ;;  %926 = vmatpush.bf16.msra.mxu0 %v5295_v45  ;;  %952 = vmatpush.bf16.msra.mxu2 %v5299_v47  ;;  %v7845_v38 = vld [vmem:[#allocation5 + $0x3cc] sm:$0xf]  ;;  %v5655_v44 = vor.u32 %v7849_v33, %v5654_v31 }
  0x30   :  { %v7752_v49 = vld [vmem:[#allocation5 + $0xdc] sm:$0xf0]  ;;  %v5264_v54 = vld [vmem:[#allocation5 + $0xe0] sm:$0xf0]  ;;  %v5656_v39 = vld [vmem:[#allocation5 + $0x3e8] sm:$0xf0]  ;;  %v5403_v45 = vor.u32 %v7781_v34, %v5400_v35 }
  0x31   :  { %v5518_v50 = vld [vmem:[#allocation5 + $0x2c0] sm:$0xf]  ;;  %v7812_v55 = vld [vmem:[#allocation5 + $0x2c4] sm:$0xf]  ;;  %v5263_v57 = vor.u32 %v7752_v49, %v5262_v48  ;;  %939 = vmatpush.bf16.msra.mxu1 %v5551_v46  ;;  %v5267_v59 = vor.u32 %v7748_v53, %v5264_v54  ;;  %965 = vmatpush.bf16.msra.mxu3 %v5555_v51  ;;  %v5366_v42 = vld [vmem:[#allocation5 + $0x188] sm:$0xf]  ;;  %v5659_v49 = vor.u32 %v7845_v38, %v5656_v39 }
  0x32   :  { %v7816_v52 = vld [vmem:[#allocation5 + $0x2dc] sm:$0xf0]  ;;  %v5520_v56 = vld [vmem:[#allocation5 + $0x2e0] sm:$0xf0]  ;;  %v7777_v43 = vld [vmem:[#allocation5 + $0x1a4] sm:$0xf0] }
  0x33   :  { %v5519_v58 = vor.u32 %v7816_v52, %v5518_v50  ;;  %v5230_v60 = vld [vmem:[#allocation5 + $0x80] sm:$0xf]  ;;  %v5523_v63 = vor.u32 %v7812_v55, %v5520_v56  ;;  %v7740_v1 = vld [vmem:[#allocation5 + $0x84] sm:$0xf]  ;;  %927 = vmatpush.bf16.msra.mxu0 %v5263_v57  ;;  %953 = vmatpush.bf16.msra.mxu2 %v5267_v59  ;;  %v5622_v46 = vld [vmem:[#allocation5 + $0x388] sm:$0xf]  ;;  %v5367_v57 = vor.u32 %v7777_v43, %v5366_v42 }
  0x34   :  { %v7744_v61 = vld [vmem:[#allocation5 + $0x9c] sm:$0xf0]  ;;  %v5232_v2 = vld [vmem:[#allocation5 + $0xa0] sm:$0xf0]  ;;  %v7841_v47 = vld [vmem:[#allocation5 + $0x3a4] sm:$0xf0] }
  0x35   :  { %v5486_v62 = vld [vmem:[#allocation5 + $0x280] sm:$0xf]  ;;  %v7804_v3 = vld [vmem:[#allocation5 + $0x284] sm:$0xf]  ;;  %v5231_v5 = vor.u32 %v7744_v61, %v5230_v60  ;;  %940 = vmatpush.bf16.msra.mxu1 %v5519_v58  ;;  %v5235_v7 = vor.u32 %v7740_v1, %v5232_v2  ;;  %966 = vmatpush.bf16.msra.mxu3 %v5523_v63  ;;  %v7773_v48 = vld [vmem:[#allocation5 + $0x18c] sm:$0xf]  ;;  %v5623_v60 = vor.u32 %v7841_v47, %v5622_v46 }
  0x36   :  { %v7808_v0 = vld [vmem:[#allocation5 + $0x29c] sm:$0xf0]  ;;  %v5488_v4 = vld [vmem:[#allocation5 + $0x2a0] sm:$0xf0]  ;;  %v5368_v50 = vld [vmem:[#allocation5 + $0x1a8] sm:$0xf0] }
  0x37   :  { %v5487_v6 = vor.u32 %v7808_v0, %v5486_v62  ;;  %v5198_v8 = vld [vmem:[#allocation5 + $0x40] sm:$0xf]  ;;  %v5491_v11 = vor.u32 %v7804_v3, %v5488_v4  ;;  %v7732_v13 = vld [vmem:[#allocation5 + $0x44] sm:$0xf]  ;;  %928 = vmatpush.bf16.msra.mxu0 %v5231_v5  ;;  %954 = vmatpush.bf16.msra.mxu2 %v5235_v7  ;;  %v7837_v51 = vld [vmem:[#allocation5 + $0x38c] sm:$0xf]  ;;  %v5371_v61 = vor.u32 %v7773_v48, %v5368_v50 }
  0x38   :  { %v7736_v9 = vld [vmem:[#allocation5 + $0x5c] sm:$0xf0]  ;;  %v5200_v14 = vld [vmem:[#allocation5 + $0x60] sm:$0xf0]  ;;  %v5624_v52 = vld [vmem:[#allocation5 + $0x3a8] sm:$0xf0] }
  0x39   :  { %v5454_v10 = vld [vmem:[#allocation5 + $0x240] sm:$0xf]  ;;  %v7796_v15 = vld [vmem:[#allocation5 + $0x244] sm:$0xf]  ;;  %v5199_v17 = vor.u32 %v7736_v9, %v5198_v8  ;;  %941 = vmatpush.bf16.msra.mxu1 %v5487_v6  ;;  %v5203_v21 = vor.u32 %v7732_v13, %v5200_v14  ;;  %967 = vmatpush.bf16.msra.mxu3 %v5491_v11  ;;  %v5334_v53 = vld [vmem:[#allocation5 + $0x148] sm:$0xf]  ;;  %v5627_v0 = vor.u32 %v7837_v51, %v5624_v52 }
  0x3a   :  { %v7800_v12 = vld [vmem:[#allocation5 + $0x25c] sm:$0xf0]  ;;  %v5456_v16 = vld [vmem:[#allocation5 + $0x260] sm:$0xf0]  ;;  %v116_v54 = vld [vmem:[#allocation3] sm:$0xf] }
  0x3b   :  { %v5166_v18 = vld [vmem:[#allocation5] sm:$0xf]  ;;  %v5455_v20 = vor.u32 %v7800_v12, %v5454_v10  ;;  %v7724_v24 = vld [vmem:[#allocation5 + $0x4] sm:$0xf]  ;;  %v5459_v25 = vor.u32 %v7796_v15, %v5456_v16  ;;  %929 = vmatpush.bf16.msra.mxu0 %v5199_v17  ;;  %955 = vmatpush.bf16.msra.mxu2 %v5203_v21  ;;  %v117_v55 = vld [vmem:[#allocation3 + $0x4] sm:$0xf] }
  0x3c   :  { %v7728_v19 = vld [vmem:[#allocation5 + $0x1c] sm:$0xf0]  ;;  %v5168_v26 = vld [vmem:[#allocation5 + $0x20] sm:$0xf0]  ;;  %v118_v56 = vld [vmem:[#allocation3 + $0x8] sm:$0xf] }
  0x3d   :  { %v5422_v22 = vld [vmem:[#allocation5 + $0x200] sm:$0xf]  ;;  %v7788_v27 = vld [vmem:[#allocation5 + $0x204] sm:$0xf]  ;;  %v5167_v32 = vor.u32 %v7728_v19, %v5166_v18  ;;  %942 = vmatpush.bf16.msra.mxu1 %v5455_v20  ;;  %v5171_v37 = vor.u32 %v7724_v24, %v5168_v26  ;;  %968 = vmatpush.bf16.msra.mxu3 %v5459_v25  ;;  %v7769_v58 = vld [vmem:[#allocation5 + $0x164] sm:$0xf0] }
  0x3e   :  { %v7792_v23 = vld [vmem:[#allocation5 + $0x21c] sm:$0xf0]  ;;  %v5424_v28 = vld [vmem:[#allocation5 + $0x220] sm:$0xf0]  ;;  %v119_v59 = vld [vmem:[#allocation3 + $0xc] sm:$0xf]  ;;  %v5335_v5 = vor.u32 %v7769_v58, %v5334_v53 }
  0x3f   :  { %v5423_v36 = vor.u32 %v7792_v23, %v5422_v22  ;;  %v5427_v40 = vor.u32 %v7788_v27, %v5424_v28  ;;  %930 = vmatpush.bf16.msra.mxu0 %v5167_v32  ;;  %956 = vmatpush.bf16.msra.mxu2 %v5171_v37  ;;  %124 = vst [vmem:[#allocation1] ss:$4 sm:$0xff] %v116_v54  ;;  %v5590_v62 = vld [vmem:[#allocation5 + $0x348] sm:$0xf]  ;;  %v7765_v1 = vld [vmem:[#allocation5 + $0x14c] sm:$0xf] }
  0x40   :  { %v7833_v63 = vld [vmem:[#allocation5 + $0x364] sm:$0xf0]  ;;  %126 = vst [vmem:[#allocation1 + $0x1] ss:$4 sm:$0xff] %v117_v55  ;;  %v5336_v2 = vld [vmem:[#allocation5 + $0x168] sm:$0xf0] }
  0x41   :  { %943 = vmatpush.bf16.msra.mxu1 %v5423_v36  ;;  %969 = vmatpush.bf16.msra.mxu3 %v5427_v40  ;;  %128 = vst [vmem:[#allocation1 + $0x2] ss:$4 sm:$0xff] %v118_v56  ;;  %v7829_v3 = vld [vmem:[#allocation5 + $0x34c] sm:$0xf]  ;;  %v5591_v6 = vor.u32 %v7833_v63, %v5590_v62  ;;  %v5339_v7 = vor.u32 %v7765_v1, %v5336_v2  ;;  %v5302_v8 = vld [vmem:[#allocation5 + $0x108] sm:$0xf] }
  0x42   :  { %v5592_v4 = vld [vmem:[#allocation5 + $0x368] sm:$0xf0]  ;;  %130 = vst [vmem:[#allocation1 + $0x3] ss:$4 sm:$0xff] %v119_v59  ;;  %v7761_v9 = vld [vmem:[#allocation5 + $0x124] sm:$0xf0] }
  0x43   :  { %975 = vmatpush.bf16.msrb.mxu0 %v5399_v41  ;;  %1001 = vmatpush.bf16.msrb.mxu2 %v5403_v45  ;;  %v5558_v10 = vld [vmem:[#allocation5 + $0x308] sm:$0xf]  ;;  %v5595_v11 = vor.u32 %v7829_v3, %v5592_v4  ;;  %v7757_v13 = vld [vmem:[#allocation5 + $0x10c] sm:$0xf]  ;;  %v5303_v17 = vor.u32 %v7761_v9, %v5302_v8  ;;  %v7850_v9 = vld [vmem:[#allocation5 + $0x3ec] sm:$0xf0] }
  0x44   :  { %v7825_v12 = vld [vmem:[#allocation5 + $0x324] sm:$0xf0]  ;;  %v5304_v14 = vld [vmem:[#allocation5 + $0x128] sm:$0xf0] }
  0x45   :  { %988 = vmatpush.bf16.msrb.mxu1 %v5655_v44  ;;  %1014 = vmatpush.bf16.msrb.mxu3 %v5659_v49  ;;  %v7821_v15 = vld [vmem:[#allocation5 + $0x30c] sm:$0xf]  ;;  %v5270_v18 = vld [vmem:[#allocation5 + $0xc8] sm:$0xf]  ;;  %v5559_v21 = vor.u32 %v7825_v12, %v5558_v10  ;;  %v5307_v22 = vor.u32 %v7757_v13, %v5304_v14  ;;  %v7782_v10 = vld [vmem:[#allocation5 + $0x1d4] sm:$0xf] }
  0x46   :  { %v5560_v16 = vld [vmem:[#allocation5 + $0x328] sm:$0xf0]  ;;  %v7753_v19 = vld [vmem:[#allocation5 + $0xe4] sm:$0xf0]  ;;  %v7846_v14 = vld [vmem:[#allocation5 + $0x3d4] sm:$0xf] }
  0x47   :  { %976 = vmatpush.bf16.msrb.mxu0 %v5367_v57  ;;  %1002 = vmatpush.bf16.msrb.mxu2 %v5371_v61  ;;  %v5526_v20 = vld [vmem:[#allocation5 + $0x2c8] sm:$0xf]  ;;  %v7749_v24 = vld [vmem:[#allocation5 + $0xcc] sm:$0xf]  ;;  %v5563_v26 = vor.u32 %v7821_v15, %v5560_v16  ;;  %v5271_v33 = vor.u32 %v7753_v19, %v5270_v18  ;;  %v5664_v15 = vld [vmem:[#allocation5 + $0x3f0] sm:$0xf0] }
  0x48   :  { %v7817_v23 = vld [vmem:[#allocation5 + $0x2e4] sm:$0xf0]  ;;  %v5272_v25 = vld [vmem:[#allocation5 + $0xe8] sm:$0xf0] }
  0x49   :  { %989 = vmatpush.bf16.msrb.mxu1 %v5623_v60  ;;  %1015 = vmatpush.bf16.msrb.mxu3 %v5627_v0  ;;  %v131_v27 = vld.sshfl [vmem:[#allocation1] sm:$0xff pattern:$0x73625140]  ;;  %v132_v28 = vld.sshfl [vmem:[#allocation1 + $0x8] sm:$0xff pattern:$0x73625140]  ;;  %v5527_v34 = vor.u32 %v7817_v23, %v5526_v20  ;;  %v5275_v35 = vor.u32 %v7749_v24, %v5272_v25  ;;  %v5667_v23 = vor.u32 %v7846_v14, %v5664_v15 }
  0x4a   :  { %v8601_v29 = vpack.c.bf16 %v131_v27, %v131_v27  ;;  %v7813_v30 = vld [vmem:[#allocation5 + $0x2cc] sm:$0xf]  ;;  %v8603_v32 = vpack.c.bf16 %v132_v28, %v132_v28  ;;  %v5238_v36 = vld [vmem:[#allocation5 + $0x88] sm:$0xf]  ;;  %v5374_v20 = vld [vmem:[#allocation5 + $0x190] sm:$0xf] }
  0x4b   :  { %977 = vmatpush.bf16.msrb.mxu0 %v5335_v5  ;;  %1003 = vmatpush.bf16.msrb.mxu2 %v5339_v7  ;;  %v5528_v31 = vld [vmem:[#allocation5 + $0x2e8] sm:$0xf0]  ;;  %v7745_v37 = vld [vmem:[#allocation5 + $0xa4] sm:$0xf0]  ;;  %v5406_v5 = vld [vmem:[#allocation5 + $0x1d0] sm:$0xf] }
  0x4c   :  { %v5494_v38 = vld [vmem:[#allocation5 + $0x288] sm:$0xf]  ;;  %931 = vmatmul.bf16.vlgmr.msra.gmra.mxu0 %v8601_v29  ;;  %v5531_v39 = vor.u32 %v7813_v30, %v5528_v31  ;;  %v7741_v41 = vld [vmem:[#allocation5 + $0x8c] sm:$0xf]  ;;  %957 = vmatmul.bf16.vlgmr.msra.gmra.mxu2 %v8601_v29  ;;  %v5239_v45 = vor.u32 %v7745_v37, %v5238_v36  ;;  %v5662_v7 = vld [vmem:[#allocation5 + $0x3d0] sm:$0xf] }
  0x4d   :  { %990 = vmatpush.bf16.msrb.mxu1 %v5591_v6  ;;  %1016 = vmatpush.bf16.msrb.mxu3 %v5595_v11  ;;  %v7809_v40 = vld [vmem:[#allocation5 + $0x2a4] sm:$0xf0]  ;;  %v5240_v42 = vld [vmem:[#allocation5 + $0xa8] sm:$0xf0]  ;;  %v7786_v6 = vld [vmem:[#allocation5 + $0x1ec] sm:$0xf0]  ;;  %v5663_v18 = vor.u32 %v7850_v9, %v5662_v7 }
  0x4e   :  { %944 = vmatmul.bf16.vlgmr.msra.gmra.mxu1 %v8603_v32  ;;  %v7805_v43 = vld [vmem:[#allocation5 + $0x28c] sm:$0xf]  ;;  %970 = vmatmul.bf16.vlgmr.msra.gmra.mxu3 %v8603_v32  ;;  %v5495_v46 = vor.u32 %v7809_v40, %v5494_v38  ;;  %v5243_v47 = vor.u32 %v7741_v41, %v5240_v42  ;;  %v5206_v48 = vld [vmem:[#allocation5 + $0x48] sm:$0xf]  ;;  %v5408_v11 = vld [vmem:[#allocation5 + $0x1f0] sm:$0xf0] }
  0x4f   :  { %978 = vmatpush.bf16.msrb.mxu0 %v5303_v17  ;;  %1004 = vmatpush.bf16.msrb.mxu2 %v5307_v22  ;;  %v5496_v44 = vld [vmem:[#allocation5 + $0x2a8] sm:$0xf0]  ;;  %v7737_v49 = vld [vmem:[#allocation5 + $0x64] sm:$0xf0]  ;;  %v5407_v17 = vor.u32 %v7786_v6, %v5406_v5  ;;  %v5411_v19 = vor.u32 %v7782_v10, %v5408_v11  ;;  %v5630_v22 = vld [vmem:[#allocation5 + $0x390] sm:$0xf] }
  0x50   :  { %v5462_v50 = vld [vmem:[#allocation5 + $0x248] sm:$0xf]  ;;  %v5499_v51 = vor.u32 %v7805_v43, %v5496_v44  ;;  %v7733_v53 = vld [vmem:[#allocation5 + $0x4c] sm:$0xf]  ;;  %v5207_v57 = vor.u32 %v7737_v49, %v5206_v48  ;;  %v7842_v24 = vld [vmem:[#allocation5 + $0x3ac] sm:$0xf0] }
  0x51   :  { %991 = vmatpush.bf16.msrb.mxu1 %v5559_v21  ;;  %1017 = vmatpush.bf16.msrb.mxu3 %v5563_v26  ;;  %v7801_v52 = vld [vmem:[#allocation5 + $0x264] sm:$0xf0]  ;;  %v5208_v54 = vld [vmem:[#allocation5 + $0x68] sm:$0xf0]  ;;  %v7778_v21 = vld [vmem:[#allocation5 + $0x1ac] sm:$0xf0]  ;;  %v5631_v31 = vor.u32 %v7842_v24, %v5630_v22 }
  0x52   :  { %v7797_v55 = vld [vmem:[#allocation5 + $0x24c] sm:$0xf]  ;;  %v5174_v58 = vld [vmem:[#allocation5 + $0x8] sm:$0xf]  ;;  %v5463_v60 = vor.u32 %v7801_v52, %v5462_v50  ;;  %v5211_v61 = vor.u32 %v7733_v53, %v5208_v54  ;;  %v7774_v25 = vld [vmem:[#allocation5 + $0x194] sm:$0xf]  ;;  %v5375_v30 = vor.u32 %v7778_v21, %v5374_v20 }
  0x53   :  { %979 = vmatpush.bf16.msrb.mxu0 %v5271_v33  ;;  %1005 = vmatpush.bf16.msrb.mxu2 %v5275_v35  ;;  %v5464_v56 = vld [vmem:[#allocation5 + $0x268] sm:$0xf0]  ;;  %v7729_v59 = vld [vmem:[#allocation5 + $0x24] sm:$0xf0]  ;;  %v5376_v26 = vld [vmem:[#allocation5 + $0x1b0] sm:$0xf0] }
  0x54   :  { %v5430_v62 = vld [vmem:[#allocation5 + $0x208] sm:$0xf]  ;;  %v7725_v0 = vld [vmem:[#allocation5 + $0xc] sm:$0xf]  ;;  %v5467_v1 = vor.u32 %v7797_v55, %v5464_v56  ;;  %v5175_v8 = vor.u32 %v7729_v59, %v5174_v58  ;;  %v7838_v27 = vld [vmem:[#allocation5 + $0x394] sm:$0xf]  ;;  %v5379_v33 = vor.u32 %v7774_v25, %v5376_v26 }
  0x55   :  { %992 = vmatpush.bf16.msrb.mxu1 %v5527_v34  ;;  %1018 = vmatpush.bf16.msrb.mxu3 %v5531_v39  ;;  %v7793_v63 = vld [vmem:[#allocation5 + $0x224] sm:$0xf0]  ;;  %v5176_v2 = vld [vmem:[#allocation5 + $0x28] sm:$0xf0]  ;;  %v5632_v28 = vld [vmem:[#allocation5 + $0x3b0] sm:$0xf0] }
  0x56   :  { %v7789_v3 = vld [vmem:[#allocation5 + $0x20c] sm:$0xf]  ;;  %v5431_v12 = vor.u32 %v7793_v63, %v5430_v62  ;;  %v5179_v13 = vor.u32 %v7725_v0, %v5176_v2  ;;  %v5342_v34 = vld [vmem:[#allocation5 + $0x150] sm:$0xf]  ;;  %v5635_v37 = vor.u32 %v7838_v27, %v5632_v28  ;;  %v7766_v39 = vld [vmem:[#allocation5 + $0x154] sm:$0xf] }
  0x57   :  { %980 = vmatpush.bf16.msrb.mxu0 %v5239_v45  ;;  %1006 = vmatpush.bf16.msrb.mxu2 %v5243_v47  ;;  %v5432_v4 = vld [vmem:[#allocation5 + $0x228] sm:$0xf0]  ;;  %v7770_v35 = vld [vmem:[#allocation5 + $0x16c] sm:$0xf0]  ;;  %v5344_v40 = vld [vmem:[#allocation5 + $0x170] sm:$0xf0] }
  0x58   :  { %v5435_v16 = vor.u32 %v7789_v3, %v5432_v4  ;;  %v5598_v36 = vld [vmem:[#allocation5 + $0x350] sm:$0xf]  ;;  %v7830_v41 = vld [vmem:[#allocation5 + $0x354] sm:$0xf]  ;;  %v5343_v43 = vor.u32 %v7770_v35, %v5342_v34  ;;  %v5347_v45 = vor.u32 %v7766_v39, %v5344_v40 }
  0x59   :  { %993 = vmatpush.bf16.msrb.mxu1 %v5495_v46  ;;  %1019 = vmatpush.bf16.msrb.mxu3 %v5499_v51  ;;  %v7834_v38 = vld [vmem:[#allocation5 + $0x36c] sm:$0xf0]  ;;  %v5600_v42 = vld [vmem:[#allocation5 + $0x370] sm:$0xf0] }
  0x5a   :  { %v5599_v44 = vor.u32 %v7834_v38, %v5598_v36  ;;  %v5310_v46 = vld [vmem:[#allocation5 + $0x110] sm:$0xf]  ;;  %v5603_v49 = vor.u32 %v7830_v41, %v5600_v42  ;;  %v7758_v51 = vld [vmem:[#allocation5 + $0x114] sm:$0xf]  ;;  %v5414_v41 = vld [vmem:[#allocation5 + $0x1d8] sm:$0xf] }
  0x5b   :  { %981 = vmatpush.bf16.msrb.mxu0 %v5207_v57  ;;  %1007 = vmatpush.bf16.msrb.mxu2 %v5211_v61  ;;  %v7762_v47 = vld [vmem:[#allocation5 + $0x12c] sm:$0xf0]  ;;  %v5312_v52 = vld [vmem:[#allocation5 + $0x130] sm:$0xf0]  ;;  %v7787_v42 = vld [vmem:[#allocation5 + $0x1f4] sm:$0xf0] }
  0x5c   :  { %v5566_v48 = vld [vmem:[#allocation5 + $0x310] sm:$0xf]  ;;  %v7822_v53 = vld [vmem:[#allocation5 + $0x314] sm:$0xf]  ;;  %v5311_v55 = vor.u32 %v7762_v47, %v5310_v46  ;;  %v5315_v57 = vor.u32 %v7758_v51, %v5312_v52  ;;  %v7783_v46 = vld [vmem:[#allocation5 + $0x1dc] sm:$0xf] }
  0x5d   :  { %994 = vmatpush.bf16.msrb.mxu1 %v5463_v60  ;;  %1020 = vmatpush.bf16.msrb.mxu3 %v5467_v1  ;;  %v7826_v50 = vld [vmem:[#allocation5 + $0x32c] sm:$0xf0]  ;;  %v5568_v54 = vld [vmem:[#allocation5 + $0x330] sm:$0xf0]  ;;  %v5416_v47 = vld [vmem:[#allocation5 + $0x1f8] sm:$0xf0] }
  0x5e   :  { %v5567_v56 = vor.u32 %v7826_v50, %v5566_v48  ;;  %v5278_v58 = vld [vmem:[#allocation5 + $0xd0] sm:$0xf]  ;;  %v5571_v61 = vor.u32 %v7822_v53, %v5568_v54  ;;  %v7750_v63 = vld [vmem:[#allocation5 + $0xd4] sm:$0xf]  ;;  %v7847_v50 = vld [vmem:[#allocation5 + $0x3dc] sm:$0xf]  ;;  %v5415_v53 = vor.u32 %v7787_v42, %v5414_v41 }
  0x5f   :  { %982 = vmatpush.bf16.msrb.mxu0 %v5175_v8  ;;  %1008 = vmatpush.bf16.msrb.mxu2 %v5179_v13  ;;  %v7754_v59 = vld [vmem:[#allocation5 + $0xec] sm:$0xf0]  ;;  %v5280_v0 = vld [vmem:[#allocation5 + $0xf0] sm:$0xf0]  ;;  %v5672_v51 = vld [vmem:[#allocation5 + $0x3f8] sm:$0xf0] }
  0x60   :  { %v5534_v60 = vld [vmem:[#allocation5 + $0x2d0] sm:$0xf]  ;;  %v7814_v1 = vld [vmem:[#allocation5 + $0x2d4] sm:$0xf]  ;;  %v5279_v3 = vor.u32 %v7754_v59, %v5278_v58  ;;  %v5283_v5 = vor.u32 %v7750_v63, %v5280_v0  ;;  %v5638_v58 = vld [vmem:[#allocation5 + $0x398] sm:$0xf]  ;;  %v5675_v59 = vor.u32 %v7847_v50, %v5672_v51 }
  0x61   :  { %995 = vmatpush.bf16.msrb.mxu1 %v5431_v12  ;;  %1021 = vmatpush.bf16.msrb.mxu3 %v5435_v16  ;;  %v7818_v62 = vld [vmem:[#allocation5 + $0x2ec] sm:$0xf0]  ;;  %v5536_v2 = vld [vmem:[#allocation5 + $0x2f0] sm:$0xf0]  ;;  %v7839_v63 = vld [vmem:[#allocation5 + $0x39c] sm:$0xf] }
  0x62   :  { %983 = vmatmul.bf16.vlgmr.msrb.gmra.mxu0 %v8601_v29  ;;  %1009 = vmatmul.bf16.vlgmr.msrb.gmra.mxu2 %v8601_v29  ;;  %v5535_v4 = vor.u32 %v7818_v62, %v5534_v60  ;;  %v5246_v6 = vld [vmem:[#allocation5 + $0x90] sm:$0xf]  ;;  %v5539_v9 = vor.u32 %v7814_v1, %v5536_v2  ;;  %v7742_v11 = vld [vmem:[#allocation5 + $0x94] sm:$0xf]  ;;  %v7843_v60 = vld [vmem:[#allocation5 + $0x3b4] sm:$0xf0] }
  0x63   :  { %1027 = vmatpush.bf16.msra.mxu0 %v5407_v17  ;;  %1053 = vmatpush.bf16.msra.mxu2 %v5411_v19  ;;  %v7746_v7 = vld [vmem:[#allocation5 + $0xac] sm:$0xf0]  ;;  %v5248_v12 = vld [vmem:[#allocation5 + $0xb0] sm:$0xf0]  ;;  %v5384_v62 = vld [vmem:[#allocation5 + $0x1b8] sm:$0xf0]  ;;  %v5639_v2 = vor.u32 %v7843_v60, %v5638_v58 }
  0x64   :  { %996 = vmatmul.bf16.vlgmr.msrb.gmra.mxu1 %v8603_v32  ;;  %1022 = vmatmul.bf16.vlgmr.msrb.gmra.mxu3 %v8603_v32  ;;  %v5502_v8 = vld [vmem:[#allocation5 + $0x290] sm:$0xf]  ;;  %v7806_v13 = vld [vmem:[#allocation5 + $0x294] sm:$0xf]  ;;  %v5247_v15 = vor.u32 %v7746_v7, %v5246_v6  ;;  %v5251_v17 = vor.u32 %v7742_v11, %v5248_v12  ;;  %v5640_v0 = vld [vmem:[#allocation5 + $0x3b8] sm:$0xf0] }
  0x65   :  { %1040 = vmatpush.bf16.msra.mxu1 %v5663_v18  ;;  %1066 = vmatpush.bf16.msra.mxu3 %v5667_v23  ;;  %v7810_v10 = vld [vmem:[#allocation5 + $0x2ac] sm:$0xf0]  ;;  %v5504_v14 = vld [vmem:[#allocation5 + $0x2b0] sm:$0xf0]  ;;  %v5606_v6 = vld [vmem:[#allocation5 + $0x358] sm:$0xf]  ;;  %v5643_v7 = vor.u32 %v7839_v63, %v5640_v0 }
  0x66   :  { %v5503_v16 = vor.u32 %v7810_v10, %v5502_v8  ;;  %v5214_v18 = vld [vmem:[#allocation5 + $0x50] sm:$0xf]  ;;  %v5507_v21 = vor.u32 %v7806_v13, %v5504_v14  ;;  %v7734_v23 = vld [vmem:[#allocation5 + $0x54] sm:$0xf]  ;;  %v7835_v8 = vld [vmem:[#allocation5 + $0x374] sm:$0xf0] }
  0x67   :  { %1028 = vmatpush.bf16.msra.mxu0 %v5375_v30  ;;  %1054 = vmatpush.bf16.msra.mxu2 %v5379_v33  ;;  %v7738_v19 = vld [vmem:[#allocation5 + $0x6c] sm:$0xf0]  ;;  %v5216_v24 = vld [vmem:[#allocation5 + $0x70] sm:$0xf0]  ;;  %v5352_v10 = vld [vmem:[#allocation5 + $0x178] sm:$0xf0]  ;;  %v5607_v14 = vor.u32 %v7835_v8, %v5606_v6 }
  0x68   :  { %v5470_v20 = vld [vmem:[#allocation5 + $0x250] sm:$0xf]  ;;  %v7798_v25 = vld [vmem:[#allocation5 + $0x254] sm:$0xf]  ;;  %v5215_v27 = vor.u32 %v7738_v19, %v5214_v18  ;;  %v5219_v34 = vor.u32 %v7734_v23, %v5216_v24  ;;  %v7831_v11 = vld [vmem:[#allocation5 + $0x35c] sm:$0xf] }
  0x69   :  { %1041 = vmatpush.bf16.msra.mxu1 %v5631_v31  ;;  %1067 = vmatpush.bf16.msra.mxu3 %v5635_v37  ;;  %v7802_v22 = vld [vmem:[#allocation5 + $0x26c] sm:$0xf0]  ;;  %v5472_v26 = vld [vmem:[#allocation5 + $0x270] sm:$0xf0]  ;;  %v5608_v12 = vld [vmem:[#allocation5 + $0x378] sm:$0xf0] }
  0x6a   :  { %v5182_v28 = vld [vmem:[#allocation5 + $0x10] sm:$0xf]  ;;  %v5471_v33 = vor.u32 %v7802_v22, %v5470_v20  ;;  %v7726_v36 = vld [vmem:[#allocation5 + $0x14] sm:$0xf]  ;;  %v5475_v38 = vor.u32 %v7798_v25, %v5472_v26  ;;  %v5574_v18 = vld [vmem:[#allocation5 + $0x318] sm:$0xf]  ;;  %v5611_v19 = vor.u32 %v7831_v11, %v5608_v12 }
  0x6b   :  { %1029 = vmatpush.bf16.msra.mxu0 %v5343_v43  ;;  %1055 = vmatpush.bf16.msra.mxu2 %v5347_v45  ;;  %v7730_v30 = vld [vmem:[#allocation5 + $0x2c] sm:$0xf0]  ;;  %v5184_v37 = vld [vmem:[#allocation5 + $0x30] sm:$0xf0]  ;;  %v5670_v43 = vld [vmem:[#allocation5 + $0x3d8] sm:$0xf] }
  0x6c   :  { %v5438_v31 = vld [vmem:[#allocation5 + $0x210] sm:$0xf]  ;;  %v7790_v39 = vld [vmem:[#allocation5 + $0x214] sm:$0xf]  ;;  %v7851_v45 = vld [vmem:[#allocation5 + $0x3f4] sm:$0xf0] }
  0x6d   :  { %1042 = vmatpush.bf16.msra.mxu1 %v5599_v44  ;;  %1068 = vmatpush.bf16.msra.mxu3 %v5603_v49  ;;  %v7794_v35 = vld [vmem:[#allocation5 + $0x22c] sm:$0xf0]  ;;  %v5440_v40 = vld [vmem:[#allocation5 + $0x230] sm:$0xf0]  ;;  %v5183_v44 = vor.u32 %v7730_v30, %v5182_v28  ;;  %v5187_v49 = vor.u32 %v7726_v36, %v5184_v37  ;;  %v5671_v54 = vor.u32 %v7851_v45, %v5670_v43  ;;  %v7827_v20 = vld [vmem:[#allocation5 + $0x334] sm:$0xf0] }
  0x6e   :  { %v5439_v48 = vor.u32 %v7794_v35, %v5438_v31  ;;  %v5443_v52 = vor.u32 %v7790_v39, %v5440_v40  ;;  %v5320_v22 = vld [vmem:[#allocation5 + $0x138] sm:$0xf0]  ;;  %v5575_v26 = vor.u32 %v7827_v20, %v5574_v18  ;;  %v5286_v28 = vld [vmem:[#allocation5 + $0xd8] sm:$0xf]  ;;  %v5902_v11 = vld [vmem:[#allocation8 + $0x1c0] sm:$0xf] }
  0x6f   :  { %1030 = vmatpush.bf16.msra.mxu0 %v5311_v55  ;;  %1056 = vmatpush.bf16.msra.mxu2 %v5315_v57  ;;  %v5419_v55 = vor.u32 %v7783_v46, %v5416_v47  ;;  %v7779_v57 = vld [vmem:[#allocation5 + $0x1b4] sm:$0xf0]  ;;  %v7823_v23 = vld [vmem:[#allocation5 + $0x31c] sm:$0xf]  ;;  %v7912_v12 = vld [vmem:[#allocation8 + $0x1dc] sm:$0xf0] }
  0x70   :  { %v5576_v24 = vld [vmem:[#allocation5 + $0x338] sm:$0xf0]  ;;  %v7755_v30 = vld [vmem:[#allocation5 + $0xf4] sm:$0xf0]  ;;  %v6414_v20 = vld [vmem:[#allocation8 + $0x5c0] sm:$0xf] }
  0x71   :  { %1043 = vmatpush.bf16.msra.mxu1 %v5567_v56  ;;  %1069 = vmatpush.bf16.msra.mxu3 %v5571_v61  ;;  %v5382_v56 = vld [vmem:[#allocation5 + $0x198] sm:$0xf]  ;;  %v7775_v61 = vld [vmem:[#allocation5 + $0x19c] sm:$0xf]  ;;  %v5287_v39 = vor.u32 %v7755_v30, %v5286_v28  ;;  %v6382_v30 = vld [vmem:[#allocation8 + $0x580] sm:$0xf] }
  0x72   :  { %v5383_v1 = vor.u32 %v7779_v57, %v5382_v56  ;;  %v5542_v31 = vld [vmem:[#allocation5 + $0x2d8] sm:$0xf]  ;;  %v7751_v35 = vld [vmem:[#allocation5 + $0xdc] sm:$0xf] }
  0x73   :  { %1031 = vmatpush.bf16.msra.mxu0 %v5279_v3  ;;  %1057 = vmatpush.bf16.msra.mxu2 %v5283_v5  ;;  %v5387_v3 = vor.u32 %v7775_v61, %v5384_v62  ;;  %v7771_v5 = vld [vmem:[#allocation5 + $0x174] sm:$0xf0]  ;;  %v5288_v36 = vld [vmem:[#allocation5 + $0xf8] sm:$0xf0] }
  0x74   :  { %v7815_v37 = vld [vmem:[#allocation5 + $0x2dc] sm:$0xf]  ;;  %v5291_v41 = vor.u32 %v7751_v35, %v5288_v36  ;;  %v5254_v42 = vld [vmem:[#allocation5 + $0x98] sm:$0xf]  ;;  %v6094_v36 = vld [vmem:[#allocation8 + $0x340] sm:$0xf] }
  0x75   :  { %1044 = vmatpush.bf16.msra.mxu1 %v5535_v4  ;;  %1070 = vmatpush.bf16.msra.mxu3 %v5539_v9  ;;  %v5350_v4 = vld [vmem:[#allocation5 + $0x158] sm:$0xf]  ;;  %v7767_v9 = vld [vmem:[#allocation5 + $0x15c] sm:$0xf] }
  0x76   :  { %v5351_v13 = vor.u32 %v7771_v5, %v5350_v4  ;;  %v7747_v43 = vld [vmem:[#allocation5 + $0xb4] sm:$0xf0]  ;;  %v7743_v47 = vld [vmem:[#allocation5 + $0x9c] sm:$0xf] }
  0x77   :  { %1032 = vmatpush.bf16.msra.mxu0 %v5247_v15  ;;  %1058 = vmatpush.bf16.msra.mxu2 %v5251_v17  ;;  %v5355_v15 = vor.u32 %v7767_v9, %v5352_v10  ;;  %v7763_v17 = vld [vmem:[#allocation5 + $0x134] sm:$0xf0]  ;;  %v5512_v50 = vld [vmem:[#allocation5 + $0x2b8] sm:$0xf0]  ;;  %v5255_v51 = vor.u32 %v7747_v43, %v5254_v42  ;;  %v6062_v43 = vld [vmem:[#allocation8 + $0x300] sm:$0xf] }
  0x78   :  { %v7811_v46 = vld [vmem:[#allocation5 + $0x2b4] sm:$0xf0]  ;;  %v5224_v60 = vld [vmem:[#allocation5 + $0x78] sm:$0xf0] }
  0x79   :  { %1045 = vmatpush.bf16.msra.mxu1 %v5503_v16  ;;  %1071 = vmatpush.bf16.msra.mxu3 %v5507_v21  ;;  %v5318_v16 = vld [vmem:[#allocation5 + $0x118] sm:$0xf]  ;;  %v7759_v21 = vld [vmem:[#allocation5 + $0x11c] sm:$0xf] }
  0x7a   :  { %v5319_v25 = vor.u32 %v7763_v17, %v5318_v16  ;;  %v5478_v56 = vld [vmem:[#allocation5 + $0x258] sm:$0xf]  ;;  %v7799_v61 = vld [vmem:[#allocation5 + $0x25c] sm:$0xf] }
  0x7b   :  { %1033 = vmatpush.bf16.msra.mxu0 %v5215_v27  ;;  %1059 = vmatpush.bf16.msra.mxu2 %v5219_v34  ;;  %v5323_v27 = vor.u32 %v7759_v21, %v5320_v22  ;;  %v7819_v34 = vld [vmem:[#allocation5 + $0x2f4] sm:$0xf0]  ;;  %v5480_v62 = vld [vmem:[#allocation5 + $0x278] sm:$0xf0]  ;;  %v8040_v21 = vld [vmem:[#allocation8 + $0x5dc] sm:$0xf0] }
  0x7c   :  { %v5543_v40 = vor.u32 %v7819_v34, %v5542_v31  ;;  %v7803_v58 = vld [vmem:[#allocation5 + $0x274] sm:$0xf0]  ;;  %v5483_v6 = vor.u32 %v7799_v61, %v5480_v62  ;;  %v5192_v8 = vld [vmem:[#allocation5 + $0x38] sm:$0xf0]  ;;  %v5870_v22 = vld [vmem:[#allocation8 + $0x180] sm:$0xf] }
  0x7d   :  { %1046 = vmatpush.bf16.msra.mxu1 %v5471_v33  ;;  %1072 = vmatpush.bf16.msra.mxu3 %v5475_v38  ;;  %v5579_v33 = vor.u32 %v7823_v23, %v5576_v24  ;;  %v5544_v38 = vld [vmem:[#allocation5 + $0x2f8] sm:$0xf0]  ;;  %v5190_v0 = vld [vmem:[#allocation5 + $0x18] sm:$0xf]  ;;  %v7904_v23 = vld [vmem:[#allocation8 + $0x19c] sm:$0xf0] }
  0x7e   :  { %v5547_v45 = vor.u32 %v7815_v37, %v5544_v38  ;;  %v5446_v4 = vld [vmem:[#allocation5 + $0x218] sm:$0xf]  ;;  %v7791_v9 = vld [vmem:[#allocation5 + $0x21c] sm:$0xf]  ;;  %v5871_v28 = vor.u32 %v7904_v23, %v5870_v22  ;;  %v8032_v31 = vld [vmem:[#allocation8 + $0x59c] sm:$0xf0] }
  0x7f   :  { %1034 = vmatpush.bf16.msra.mxu0 %v5183_v44  ;;  %1060 = vmatpush.bf16.msra.mxu2 %v5187_v49  ;;  %v5510_v44 = vld [vmem:[#allocation5 + $0x298] sm:$0xf]  ;;  %v7807_v49 = vld [vmem:[#allocation5 + $0x29c] sm:$0xf]  ;;  %v7896_v34 = vld [vmem:[#allocation8 + $0x15c] sm:$0xf0]  ;;  %v6383_v38 = vor.u32 %v8032_v31, %v6382_v30 }
  0x80   :  { %v5515_v57 = vor.u32 %v7807_v49, %v5512_v50  ;;  %v7795_v5 = vld [vmem:[#allocation5 + $0x234] sm:$0xf0]  ;;  %v5448_v10 = vld [vmem:[#allocation5 + $0x238] sm:$0xf0]  ;;  %v7960_v37 = vld [vmem:[#allocation8 + $0x35c] sm:$0xf0] }
  0x81   :  { %1047 = vmatpush.bf16.msra.mxu1 %v5439_v48  ;;  %1073 = vmatpush.bf16.msra.mxu3 %v5443_v52  ;;  %v5256_v48 = vld [vmem:[#allocation5 + $0xb8] sm:$0xf0]  ;;  %v5511_v52 = vor.u32 %v7811_v46, %v5510_v44  ;;  %v5447_v16 = vor.u32 %v7795_v5, %v5446_v4  ;;  %v5451_v18 = vor.u32 %v7791_v9, %v5448_v10  ;;  %v7952_v44 = vld [vmem:[#allocation8 + $0x31c] sm:$0xf0] }
  0x82   :  { %1035 = vmatmul.bf16.vlgmr.msra.gmra.mxu0 %v8601_v29  ;;  %1061 = vmatmul.bf16.vlgmr.msra.gmra.mxu2 %v8601_v29  ;;  %v6095_v42 = vor.u32 %v7960_v37, %v6094_v36  ;;  %v5774_v46 = vld [vmem:[#allocation8 + $0xc0] sm:$0xf] }
  0x83   :  { %1079 = vmatpush.bf16.msrb.mxu0 %v5415_v53  ;;  %1105 = vmatpush.bf16.msrb.mxu2 %v5419_v55  ;;  %v5259_v53 = vor.u32 %v7743_v47, %v5256_v48  ;;  %v7739_v55 = vld [vmem:[#allocation5 + $0x74] sm:$0xf0]  ;;  %v6063_v47 = vor.u32 %v7952_v44, %v6062_v43  ;;  %v6030_v48 = vld [vmem:[#allocation8 + $0x2c0] sm:$0xf] }
  0x84   :  { %1048 = vmatmul.bf16.vlgmr.msra.gmra.mxu1 %v8603_v32  ;;  %1074 = vmatmul.bf16.vlgmr.msra.gmra.mxu3 %v8603_v32  ;;  %v7944_v49 = vld [vmem:[#allocation8 + $0x2dc] sm:$0xf0] }
  0x85   :  { %1092 = vmatpush.bf16.msrb.mxu1 %v5671_v54  ;;  %1118 = vmatpush.bf16.msrb.mxu3 %v5675_v59  ;;  %v5222_v54 = vld [vmem:[#allocation5 + $0x58] sm:$0xf]  ;;  %v7735_v59 = vld [vmem:[#allocation5 + $0x5c] sm:$0xf]  ;;  %v5742_v50 = vld [vmem:[#allocation8 + $0x80] sm:$0xf] }
  0x86   :  { %v5223_v63 = vor.u32 %v7739_v55, %v5222_v54  ;;  %v7936_v54 = vld [vmem:[#allocation8 + $0x29c] sm:$0xf0] }
  0x87   :  { %1080 = vmatpush.bf16.msrb.mxu0 %v5383_v1  ;;  %1106 = vmatpush.bf16.msrb.mxu2 %v5387_v3  ;;  %v5479_v1 = vor.u32 %v7803_v58, %v5478_v56  ;;  %v7731_v3 = vld [vmem:[#allocation5 + $0x34] sm:$0xf0]  ;;  %v5710_v56 = vld [vmem:[#allocation8 + $0x40] sm:$0xf] }
  0x88   :  { %v6670_v61 = vld [vmem:[#allocation8 + $0x7c0] sm:$0xf] }
  0x89   :  { %1093 = vmatpush.bf16.msrb.mxu1 %v5639_v2  ;;  %1119 = vmatpush.bf16.msrb.mxu3 %v5643_v7  ;;  %v5227_v2 = vor.u32 %v7735_v59, %v5224_v60  ;;  %v7727_v7 = vld [vmem:[#allocation5 + $0x1c] sm:$0xf]  ;;  %v5966_v59 = vld [vmem:[#allocation8 + $0x240] sm:$0xf] }
  0x8a   :  { %v5195_v17 = vor.u32 %v7727_v7, %v5192_v8  ;;  %v7928_v60 = vld [vmem:[#allocation8 + $0x25c] sm:$0xf0] }
  0x8b   :  { %1081 = vmatpush.bf16.msrb.mxu0 %v5351_v13  ;;  %1107 = vmatpush.bf16.msrb.mxu2 %v5355_v15  ;;  %v5191_v13 = vor.u32 %v7731_v3, %v5190_v0  ;;  %v7976_v15 = vld [vmem:[#allocation8 + $0x3dc] sm:$0xf0]  ;;  %v5967_v5 = vor.u32 %v7928_v60, %v5966_v59 }
  0x8c   :  { %v8104_v62 = vld [vmem:[#allocation8 + $0x7dc] sm:$0xf0] }
  0x8d   :  { %1094 = vmatpush.bf16.msrb.mxu1 %v5607_v14  ;;  %1120 = vmatpush.bf16.msrb.mxu3 %v5611_v19  ;;  %v6158_v14 = vld [vmem:[#allocation8 + $0x3c0] sm:$0xf]  ;;  %v5903_v19 = vor.u32 %v7912_v12, %v5902_v11 }
  0x8e   :  { %v6159_v24 = vor.u32 %v7976_v15, %v6158_v14  ;;  %v6926_v3 = vld [vmem:[#allocation8 + $0x9c0] sm:$0xf] }
  0x8f   :  { %1082 = vmatpush.bf16.msrb.mxu0 %v5319_v25  ;;  %1108 = vmatpush.bf16.msrb.mxu2 %v5323_v27  ;;  %v6126_v25 = vld [vmem:[#allocation8 + $0x380] sm:$0xf]  ;;  %v6415_v27 = vor.u32 %v8040_v21, %v6414_v20 }
  0x90   :  { %v8168_v4 = vld [vmem:[#allocation8 + $0x9dc] sm:$0xf0] }
  0x91   :  { %1095 = vmatpush.bf16.msrb.mxu1 %v5575_v26  ;;  %1121 = vmatpush.bf16.msrb.mxu3 %v5579_v33  ;;  %v7968_v26 = vld [vmem:[#allocation8 + $0x39c] sm:$0xf0] }
  0x92   :  { %v5838_v33 = vld [vmem:[#allocation8 + $0x140] sm:$0xf]  ;;  %v6127_v35 = vor.u32 %v7968_v26, %v6126_v25 }
  0x93   :  { %1083 = vmatpush.bf16.msrb.mxu0 %v5287_v39  ;;  %1109 = vmatpush.bf16.msrb.mxu2 %v5291_v41  ;;  %v5839_v39 = vor.u32 %v7896_v34, %v5838_v33  ;;  %v7888_v41 = vld [vmem:[#allocation8 + $0x11c] sm:$0xf0] }
  0x94   :  { %v8024_v7 = vld [vmem:[#allocation8 + $0x55c] sm:$0xf0] }
  0x95   :  { %1096 = vmatpush.bf16.msrb.mxu1 %v5543_v40  ;;  %1122 = vmatpush.bf16.msrb.mxu3 %v5547_v45  ;;  %v5806_v40 = vld [vmem:[#allocation8 + $0x100] sm:$0xf] }
  0x96   :  { %v5807_v45 = vor.u32 %v7888_v41, %v5806_v40  ;;  %v5934_v8 = vld [vmem:[#allocation8 + $0x200] sm:$0xf] }
  0x97   :  { %1084 = vmatpush.bf16.msrb.mxu0 %v5255_v51  ;;  %1110 = vmatpush.bf16.msrb.mxu2 %v5259_v53  ;;  %v7872_v51 = vld [vmem:[#allocation8 + $0x9c] sm:$0xf0] }
  0x98   :  { %v5998_v53 = vld [vmem:[#allocation8 + $0x280] sm:$0xf]  ;;  %v5743_v55 = vor.u32 %v7872_v51, %v5742_v50 }
  0x99   :  { %1097 = vmatpush.bf16.msrb.mxu1 %v5511_v52  ;;  %1123 = vmatpush.bf16.msrb.mxu3 %v5515_v57  ;;  %v6031_v52 = vor.u32 %v7944_v49, %v6030_v48  ;;  %v7864_v57 = vld [vmem:[#allocation8 + $0x5c] sm:$0xf0]  ;;  %v5999_v58 = vor.u32 %v7936_v54, %v5998_v53 }
  0x9a   :  { %v5711_v0 = vor.u32 %v7864_v57, %v5710_v56  ;;  %v7920_v9 = vld [vmem:[#allocation8 + $0x21c] sm:$0xf0] }
  0x9b   :  { %1085 = vmatpush.bf16.msrb.mxu0 %v5223_v63  ;;  %1111 = vmatpush.bf16.msrb.mxu2 %v5227_v2  ;;  %v6671_v63 = vor.u32 %v8104_v62, %v6670_v61  ;;  %v7856_v2 = vld [vmem:[#allocation8 + $0x1c] sm:$0xf0] }
  0x9c   :  { %v7182_v11 = vld [vmem:[#allocation8 + $0xbc0] sm:$0xf] }
  0x9d   :  { %1098 = vmatpush.bf16.msrb.mxu1 %v5479_v1  ;;  %1124 = vmatpush.bf16.msrb.mxu3 %v5483_v6  ;;  %v5678_v1 = vld [vmem:[#allocation8] sm:$0xf] }
  0x9e   :  { %v6350_v6 = vld [vmem:[#allocation8 + $0x540] sm:$0xf]  ;;  %v5679_v15 = vor.u32 %v7856_v2, %v5678_v1  ;;  %v8621_v2 = vld [vmem:[#allocation7] sm:$0xff] }
  0x9f   :  { %1086 = vmatpush.bf16.msrb.mxu0 %v5191_v13  ;;  %1112 = vmatpush.bf16.msrb.mxu2 %v5195_v17  ;;  %v6351_v10 = vor.u32 %v8024_v7, %v6350_v6  ;;  %v8232_v12 = vld [vmem:[#allocation8 + $0xbdc] sm:$0xf0]  ;;  %v6927_v17 = vor.u32 %v8168_v4, %v6926_v3 }
  0xa0   :  { %v6638_v13 = vld [vmem:[#allocation8 + $0x780] sm:$0xf]  ;;  %v7183_v23 = vor.u32 %v8232_v12, %v7182_v11 }
  0xa1   :  { %1099 = vmatpush.bf16.msrb.mxu1 %v5447_v16  ;;  %1125 = vmatpush.bf16.msrb.mxu3 %v5451_v18  ;;  %v8096_v14 = vld [vmem:[#allocation8 + $0x79c] sm:$0xf0]  ;;  %v5935_v18 = vor.u32 %v7920_v9, %v5934_v8 }
  0xa2   :  { %1087 = vmatmul.bf16.vlgmr.msrb.gmra.mxu0 %v8601_v29  ;;  %1113 = vmatmul.bf16.vlgmr.msrb.gmra.mxu2 %v8601_v29  ;;  %v7880_v29 = vld [vmem:[#allocation8 + $0xdc] sm:$0xf0]  ;;  %v6639_v16 = vor.u32 %v8096_v14, %v6638_v13 }
  0xa3   :  { %4237 = vmatpush.bf16.msra.mxu0 %v5903_v19  ;;  %4263 = vmatpush.bf16.msra.mxu2 %v6415_v27  ;;  %v6318_v19 = vld [vmem:[#allocation8 + $0x500] sm:$0xf] }
  0xa4   :  { %1100 = vmatmul.bf16.vlgmr.msrb.gmra.mxu1 %v8603_v32  ;;  %1126 = vmatmul.bf16.vlgmr.msrb.gmra.mxu3 %v8603_v32  ;;  %v5775_v32 = vor.u32 %v7880_v29, %v5774_v46  ;;  %v8016_v20 = vld [vmem:[#allocation8 + $0x51c] sm:$0xf0] }
  0xa5   :  { %4250 = vmatpush.bf16.msra.mxu1 %v6159_v24  ;;  %4276 = vmatpush.bf16.msra.mxu3 %v6671_v63  ;;  %v6894_v21 = vld [vmem:[#allocation8 + $0x980] sm:$0xf]  ;;  %v6319_v24 = vor.u32 %v8016_v20, %v6318_v19 }
  0xa6   :  { %v8160_v22 = vld [vmem:[#allocation8 + $0x99c] sm:$0xf0] }
  0xa7   :  { %4238 = vmatpush.bf16.msra.mxu0 %v5871_v28  ;;  %4264 = vmatpush.bf16.msra.mxu2 %v6383_v38  ;;  %v7150_v25 = vld [vmem:[#allocation8 + $0xb80] sm:$0xf]  ;;  %v6895_v31 = vor.u32 %v8160_v22, %v6894_v21 }
  0xa8   :  { %v8224_v26 = vld [vmem:[#allocation8 + $0xb9c] sm:$0xf0] }
  0xa9   :  { %4251 = vmatpush.bf16.msra.mxu1 %v6127_v35  ;;  %4277 = vmatpush.bf16.msra.mxu3 %v6639_v16  ;;  %v6606_v27 = vld [vmem:[#allocation8 + $0x740] sm:$0xf]  ;;  %v7151_v37 = vor.u32 %v8224_v26, %v7150_v25 }
  0xaa   :  { %v8088_v28 = vld [vmem:[#allocation8 + $0x75c] sm:$0xf0] }
  0xab   :  { %4239 = vmatpush.bf16.msra.mxu0 %v5839_v39  ;;  %4265 = vmatpush.bf16.msra.mxu2 %v6351_v10  ;;  %v6607_v30 = vor.u32 %v8088_v28, %v6606_v27  ;;  %v6286_v33 = vld [vmem:[#allocation8 + $0x4c0] sm:$0xf] }
  0xac   :  { %v8008_v34 = vld [vmem:[#allocation8 + $0x4dc] sm:$0xf0] }
  0xad   :  { %4252 = vmatpush.bf16.msra.mxu1 %v6095_v42  ;;  %v6862_v35 = vld [vmem:[#allocation8 + $0x940] sm:$0xf]  ;;  %4278 = vmatpush.bf16.msra.mxu3 %v6607_v30  ;;  %v6287_v38 = vor.u32 %v8008_v34, %v6286_v33 }
  0xae   :  { %v8152_v36 = vld [vmem:[#allocation8 + $0x95c] sm:$0xf0] }
  0xaf   :  { %4240 = vmatpush.bf16.msra.mxu0 %v5807_v45  ;;  %4266 = vmatpush.bf16.msra.mxu2 %v6319_v24  ;;  %v7118_v39 = vld [vmem:[#allocation8 + $0xb40] sm:$0xf]  ;;  %v6863_v46 = vor.u32 %v8152_v36, %v6862_v35 }
  0xb0   :  { %v8216_v40 = vld [vmem:[#allocation8 + $0xb5c] sm:$0xf0] }
  0xb1   :  { %4253 = vmatpush.bf16.msra.mxu1 %v6063_v47  ;;  %v6574_v41 = vld [vmem:[#allocation8 + $0x700] sm:$0xf]  ;;  %v7119_v49 = vor.u32 %v8216_v40, %v7118_v39 }
  0xb2   :  { %v8080_v42 = vld [vmem:[#allocation8 + $0x71c] sm:$0xf0] }
  0xb3   :  { %4241 = vmatpush.bf16.msra.mxu0 %v5775_v32  ;;  %4267 = vmatpush.bf16.msra.mxu2 %v6287_v38  ;;  %v6575_v43 = vor.u32 %v8080_v42, %v6574_v41  ;;  %v6254_v44 = vld [vmem:[#allocation8 + $0x480] sm:$0xf] }
  0xb4   :  { %v8000_v45 = vld [vmem:[#allocation8 + $0x49c] sm:$0xf0] }
  0xb5   :  { %4254 = vmatpush.bf16.msra.mxu1 %v6031_v52  ;;  %v6255_v29 = vor.u32 %v8000_v45, %v6254_v44  ;;  %v6830_v47 = vld [vmem:[#allocation8 + $0x900] sm:$0xf]  ;;  %4279 = vmatpush.bf16.msra.mxu3 %v6575_v43 }
  0xb6   :  { %v8144_v48 = vld [vmem:[#allocation8 + $0x91c] sm:$0xf0] }
  0xb7   :  { %4242 = vmatpush.bf16.msra.mxu0 %v5743_v55  ;;  %v7086_v32 = vld [vmem:[#allocation8 + $0xb00] sm:$0xf]  ;;  %4268 = vmatpush.bf16.msra.mxu2 %v6255_v29  ;;  %v6831_v54 = vor.u32 %v8144_v48, %v6830_v47  ;;  %v7908_v47 = vld [vmem:[#allocation8 + $0x1c4] sm:$0xf] }
  0xb8   :  { %v8208_v50 = vld [vmem:[#allocation8 + $0xb1c] sm:$0xf0]  ;;  %v5904_v48 = vld [vmem:[#allocation8 + $0x1e0] sm:$0xf0] }
  0xb9   :  { %4255 = vmatpush.bf16.msra.mxu1 %v5999_v58  ;;  %v6542_v51 = vld [vmem:[#allocation8 + $0x6c0] sm:$0xf]  ;;  %v7087_v59 = vor.u32 %v8208_v50, %v7086_v32  ;;  %v268_v50 = vperm.slane %v8621_v2, 1 }
  0xba   :  { %v8072_v52 = vld [vmem:[#allocation8 + $0x6dc] sm:$0xf0] }
  0xbb   :  { %4243 = vmatpush.bf16.msra.mxu0 %v5711_v0  ;;  %v6543_v53 = vor.u32 %v8072_v52, %v6542_v51  ;;  %v6222_v55 = vld [vmem:[#allocation8 + $0x440] sm:$0xf] }
  0xbc   :  { %v7992_v56 = vld [vmem:[#allocation8 + $0x45c] sm:$0xf0] }
  0xbd   :  { %4256 = vmatpush.bf16.msra.mxu1 %v5967_v5  ;;  %v6798_v57 = vld [vmem:[#allocation8 + $0x8c0] sm:$0xf]  ;;  %4280 = vmatpush.bf16.msra.mxu3 %v6543_v53  ;;  %v6223_v60 = vor.u32 %v7992_v56, %v6222_v55 }
  0xbe   :  { %v8136_v58 = vld [vmem:[#allocation8 + $0x8dc] sm:$0xf0] }
  0xbf   :  { %4244 = vmatpush.bf16.msra.mxu0 %v5679_v15  ;;  %v7054_v61 = vld [vmem:[#allocation8 + $0xac0] sm:$0xf]  ;;  %4269 = vmatpush.bf16.msra.mxu2 %v6223_v60  ;;  %v6799_v3 = vor.u32 %v8136_v58, %v6798_v57  ;;  %v5907_v58 = vor.u32 %v7908_v47, %v5904_v48 }
  0xc0   :  { %v8200_v62 = vld [vmem:[#allocation8 + $0xadc] sm:$0xf0] }
  0xc1   :  { %4257 = vmatpush.bf16.msra.mxu1 %v5935_v18  ;;  %v6510_v63 = vld [vmem:[#allocation8 + $0x680] sm:$0xf]  ;;  %v7055_v8 = vor.u32 %v8200_v62, %v7054_v61 }
  0xc2   :  { %v8064_v0 = vld [vmem:[#allocation8 + $0x69c] sm:$0xf0] }
  0xc3   :  { %4289 = vmatpush.bf16.msrb.mxu0 %v6927_v17  ;;  %v6511_v1 = vor.u32 %v8064_v0, %v6510_v63  ;;  %v6190_v4 = vld [vmem:[#allocation8 + $0x400] sm:$0xf]  ;;  %v267_v17 = vperm.slane %v8621_v2, 0  ;;  %v7900_v63 = vld [vmem:[#allocation8 + $0x184] sm:$0xf] }
  0xc4   :  { %v7984_v5 = vld [vmem:[#allocation8 + $0x41c] sm:$0xf0]  ;;  %v5872_v0 = vld [vmem:[#allocation8 + $0x1a0] sm:$0xf0] }
  0xc5   :  { %4302 = vmatpush.bf16.msrb.mxu1 %v7183_v23  ;;  %v6766_v6 = vld [vmem:[#allocation8 + $0x880] sm:$0xf]  ;;  %4281 = vmatpush.bf16.msra.mxu3 %v6511_v1  ;;  %v6191_v9 = vor.u32 %v7984_v5, %v6190_v4 }
  0xc6   :  { %v8128_v7 = vld [vmem:[#allocation8 + $0x89c] sm:$0xf0] }
  0xc7   :  { %4290 = vmatpush.bf16.msrb.mxu0 %v6895_v31  ;;  %v7022_v10 = vld [vmem:[#allocation8 + $0xa80] sm:$0xf]  ;;  %4270 = vmatpush.bf16.msra.mxu2 %v6191_v9  ;;  %v6767_v18 = vor.u32 %v8128_v7, %v6766_v6 }
  0xc8   :  { %v8192_v11 = vld [vmem:[#allocation8 + $0xa9c] sm:$0xf0] }
  0xc9   :  { %4303 = vmatpush.bf16.msrb.mxu1 %v7151_v37  ;;  %v6478_v12 = vld [vmem:[#allocation8 + $0x640] sm:$0xf]  ;;  %v7023_v22 = vor.u32 %v8192_v11, %v7022_v10  ;;  %v932_v31 = vpop.f32.mrf.mxu0 }
  0xca   :  { %v8056_v13 = vld [vmem:[#allocation8 + $0x65c] sm:$0xf0]  ;;  %v933_v37 = vadd.f32 %v932_v31, %v267_v17  ;;  %v7892_v17 = vld [vmem:[#allocation8 + $0x144] sm:$0xf] }
  0xcb   :  { %4291 = vmatpush.bf16.msrb.mxu0 %v6863_v46  ;;  %v6479_v14 = vor.u32 %v8056_v13, %v6478_v12  ;;  %v7438_v15 = vld [vmem:[#allocation8 + $0xdc0] sm:$0xf]  ;;  %v945_v38 = vpop.f32.mrf.mxu1  ;;  %v5875_v13 = vor.u32 %v7900_v63, %v5872_v0 }
  0xcc   :  { %v8296_v16 = vld [vmem:[#allocation8 + $0xddc] sm:$0xf0]  ;;  %v946_v29 = vadd.f32 %v945_v38, %v933_v37 }
  0xcd   :  { %4304 = vmatpush.bf16.msrb.mxu1 %v7119_v49  ;;  %v7439_v19 = vor.u32 %v8296_v16, %v7438_v15  ;;  %v6734_v20 = vld [vmem:[#allocation8 + $0x840] sm:$0xf]  ;;  %4282 = vmatpush.bf16.msra.mxu3 %v6479_v14  ;;  %v7972_v14 = vld [vmem:[#allocation8 + $0x3c4] sm:$0xf] }
  0xce   :  { %v8120_v21 = vld [vmem:[#allocation8 + $0x85c] sm:$0xf0]  ;;  %v1131_v53 = vmax.f32 %v946_v29, 0.0  ;;  %v6160_v15 = vld [vmem:[#allocation8 + $0x3e0] sm:$0xf0] }
  0xcf   :  { %4292 = vmatpush.bf16.msrb.mxu0 %v6831_v54  ;;  %v6990_v23 = vld [vmem:[#allocation8 + $0xa40] sm:$0xf]  ;;  %4315 = vmatpush.bf16.msrb.mxu2 %v7439_v19  ;;  %v6735_v33 = vor.u32 %v8120_v21, %v6734_v20  ;;  %v958_v62 = vpop.f32.mrf.mxu2  ;;  %v269_v21 = vperm.slane %v8621_v2, 2  ;;  %v5776_v29 = vld [vmem:[#allocation8 + $0xe0] sm:$0xf0] }
  0xd0   :  { %v8184_v24 = vld [vmem:[#allocation8 + $0xa5c] sm:$0xf0]  ;;  %v8625_v61 = vpack.c.bf16 %v1131_v53, %v1131_v53 }
  0xd1   :  { %4305 = vmatpush.bf16.msrb.mxu1 %v7087_v59  ;;  %v6446_v25 = vld [vmem:[#allocation8 + $0x600] sm:$0xf]  ;;  %v6991_v39 = vor.u32 %v8184_v24, %v6990_v23  ;;  %v934_v4 = vpop.f32.mrf.mxu0  ;;  %v971_v5 = vpop.f32.mrf.mxu3 }
  0xd2   :  { %v8048_v26 = vld [vmem:[#allocation8 + $0x61c] sm:$0xf0]  ;;  %4245 = vmatmul.bf16.vlgmr.msra.gmra.mxu0 %v8625_v61 }
  0xd3   :  { %4293 = vmatpush.bf16.msrb.mxu0 %v6799_v3  ;;  %v6447_v27 = vor.u32 %v8048_v26, %v6446_v25  ;;  %v7406_v28 = vld [vmem:[#allocation8 + $0xd80] sm:$0xf]  ;;  %v959_v3 = vadd.f32 %v958_v62, %v268_v50  ;;  %v947_v9 = vpop.f32.mrf.mxu1  ;;  %v7964_v25 = vld [vmem:[#allocation8 + $0x384] sm:$0xf] }
  0xd4   :  { %v8288_v30 = vld [vmem:[#allocation8 + $0xd9c] sm:$0xf0]  ;;  %v6128_v26 = vld [vmem:[#allocation8 + $0x3a0] sm:$0xf0] }
  0xd5   :  { %4306 = vmatpush.bf16.msrb.mxu1 %v7055_v8  ;;  %v6702_v34 = vld [vmem:[#allocation8 + $0x800] sm:$0xf]  ;;  %v7407_v36 = vor.u32 %v8288_v30, %v7406_v28  ;;  %4283 = vmatpush.bf16.msra.mxu3 %v6447_v27  ;;  %v972_v12 = vadd.f32 %v971_v5, %v959_v3  ;;  %v7884_v27 = vld [vmem:[#allocation8 + $0x104] sm:$0xf] }
  0xd6   :  { %v8112_v35 = vld [vmem:[#allocation8 + $0x81c] sm:$0xf0]  ;;  %v5808_v30 = vld [vmem:[#allocation8 + $0x120] sm:$0xf0] }
  0xd7   :  { %4294 = vmatpush.bf16.msrb.mxu0 %v6767_v18  ;;  %v6958_v40 = vld [vmem:[#allocation8 + $0xa00] sm:$0xf]  ;;  %4316 = vmatpush.bf16.msrb.mxu2 %v7407_v36  ;;  %v6703_v51 = vor.u32 %v8112_v35, %v6702_v34  ;;  %v5840_v18 = vld [vmem:[#allocation8 + $0x160] sm:$0xf0]  ;;  %v1132_v19 = vmax.f32 %v972_v12, 0.0  ;;  %v960_v28 = vpop.f32.mrf.mxu2  ;;  %v6131_v36 = vor.u32 %v7964_v25, %v6128_v26 }
  0xd8   :  { %v7694_v41 = vld [vmem:[#allocation8 + $0xfc0] sm:$0xf]  ;;  %v5843_v24 = vor.u32 %v7892_v17, %v5840_v18  ;;  %v6032_v12 = vld [vmem:[#allocation8 + $0x2e0] sm:$0xf0] }
  0xd9   :  { %4307 = vmatpush.bf16.msrb.mxu1 %v7023_v22  ;;  %v8360_v42 = vld [vmem:[#allocation8 + $0xfdc] sm:$0xf0]  ;;  %v6163_v22 = vor.u32 %v7972_v14, %v6160_v15  ;;  %v8629_v23 = vpack.c.bf16 %v1132_v19, %v1132_v19  ;;  %v973_v34 = vpop.f32.mrf.mxu3  ;;  %v7860_v17 = vld [vmem:[#allocation8 + $0x44] sm:$0xf] }
  0xda   :  { %v8176_v43 = vld [vmem:[#allocation8 + $0xa1c] sm:$0xf0]  ;;  %v7695_v44 = vor.u32 %v8360_v42, %v7694_v41  ;;  %v7956_v41 = vld [vmem:[#allocation8 + $0x344] sm:$0xf] }
  0xdb   :  { %v7374_v45 = vld [vmem:[#allocation8 + $0xd40] sm:$0xf]  ;;  %4295 = vmatpush.bf16.msrb.mxu0 %v6735_v33  ;;  %v6959_v54 = vor.u32 %v8176_v43, %v6958_v40  ;;  %4258 = vmatmul.bf16.vlgmr.msra.gmra.mxu1 %v8629_v23  ;;  %v5811_v40 = vor.u32 %v7884_v27, %v5808_v30  ;;  %v6096_v42 = vld [vmem:[#allocation8 + $0x360] sm:$0xf0] }
  0xdc   :  { %v8280_v46 = vld [vmem:[#allocation8 + $0xd5c] sm:$0xf0]  ;;  %4328 = vmatpush.bf16.msrb.mxu3 %v7695_v44  ;;  %v7876_v43 = vld [vmem:[#allocation8 + $0xc4] sm:$0xf] }
  0xdd   :  { %v7375_v49 = vor.u32 %v8280_v46, %v7374_v45  ;;  %v7662_v32 = vld [vmem:[#allocation8 + $0xf80] sm:$0xf]  ;;  %4308 = vmatpush.bf16.msrb.mxu1 %v6991_v39  ;;  %v5712_v18 = vld [vmem:[#allocation8 + $0x60] sm:$0xf0] }
  0xde   :  { %v8352_v52 = vld [vmem:[#allocation8 + $0xf9c] sm:$0xf0]  ;;  %v7932_v25 = vld [vmem:[#allocation8 + $0x284] sm:$0xf] }
  0xdf   :  { %v7663_v55 = vor.u32 %v8352_v52, %v7662_v32  ;;  %v7342_v56 = vld [vmem:[#allocation8 + $0xd00] sm:$0xf]  ;;  %4317 = vmatpush.bf16.msrb.mxu2 %v7375_v49  ;;  %4296 = vmatpush.bf16.msrb.mxu0 %v6703_v51  ;;  %v984_v39 = vpop.f32.mrf.mxu0  ;;  %v270_v49 = vperm.slane %v8621_v2, 3  ;;  %v6099_v51 = vor.u32 %v7956_v41, %v6096_v42  ;;  %v7948_v52 = vld [vmem:[#allocation8 + $0x304] sm:$0xf] }
  0xe0   :  { %v8272_v57 = vld [vmem:[#allocation8 + $0xd1c] sm:$0xf0]  ;;  %v985_v45 = vadd.f32 %v984_v39, %v269_v21  ;;  %v8028_v21 = vld [vmem:[#allocation8 + $0x584] sm:$0xf] }
  0xe1   :  { %v7343_v59 = vor.u32 %v8272_v57, %v7342_v56  ;;  %v7630_v60 = vld [vmem:[#allocation8 + $0xf40] sm:$0xf]  ;;  %4329 = vmatpush.bf16.msrb.mxu3 %v7663_v55  ;;  %4309 = vmatpush.bf16.msrb.mxu1 %v6959_v54  ;;  %v997_v46 = vpop.f32.mrf.mxu1  ;;  %v5779_v55 = vor.u32 %v7876_v43, %v5776_v29  ;;  %v6064_v56 = vld [vmem:[#allocation8 + $0x320] sm:$0xf0] }
  0xe2   :  { %v8344_v1 = vld [vmem:[#allocation8 + $0xf5c] sm:$0xf0]  ;;  %v998_v50 = vadd.f32 %v997_v46, %v985_v45  ;;  %v7868_v57 = vld [vmem:[#allocation8 + $0x84] sm:$0xf]  ;;  %v6067_v5 = vor.u32 %v7948_v52, %v6064_v56 }
  0xe3   :  { %v7631_v6 = vor.u32 %v8344_v1, %v7630_v60  ;;  %v7310_v7 = vld [vmem:[#allocation8 + $0xcc0] sm:$0xf]  ;;  %4341 = vmatpush.bf16.msra.mxu0 %v5907_v58  ;;  %4318 = vmatpush.bf16.msrb.mxu2 %v7343_v59  ;;  %v5744_v58 = vld [vmem:[#allocation8 + $0xa0] sm:$0xf0] }
  0xe4   :  { %v8264_v8 = vld [vmem:[#allocation8 + $0xcdc] sm:$0xf0]  ;;  %v1133_v60 = vmax.f32 %v998_v50, 0.0  ;;  %v8036_v1 = vld [vmem:[#allocation8 + $0x5c4] sm:$0xf] }
  0xe5   :  { %v7598_v10 = vld [vmem:[#allocation8 + $0xf00] sm:$0xf]  ;;  %v7311_v16 = vor.u32 %v8264_v8, %v7310_v7  ;;  %4330 = vmatpush.bf16.msrb.mxu3 %v7631_v6  ;;  %4354 = vmatpush.bf16.msra.mxu1 %v6163_v22  ;;  %v1010_v4 = vpop.f32.mrf.mxu2  ;;  %v7940_v6 = vld [vmem:[#allocation8 + $0x2c4] sm:$0xf] }
  0xe6   :  { %v8336_v11 = vld [vmem:[#allocation8 + $0xf1c] sm:$0xf0]  ;;  %v8633_v3 = vpack.c.bf16 %v1133_v60, %v1133_v60  ;;  %v6416_v7 = vld [vmem:[#allocation8 + $0x5e0] sm:$0xf0]  ;;  %v1011_v8 = vadd.f32 %v1010_v4, %v270_v49 }
  0xe7   :  { %v7599_v20 = vor.u32 %v8336_v11, %v7598_v10  ;;  %4342 = vmatpush.bf16.msra.mxu0 %v5875_v13  ;;  %4319 = vmatpush.bf16.msrb.mxu2 %v7311_v16  ;;  %v7278_v31 = vld [vmem:[#allocation8 + $0xc80] sm:$0xf]  ;;  %v1023_v9 = vpop.f32.mrf.mxu3  ;;  %v986_v10 = vpop.f32.mrf.mxu0  ;;  %v5747_v11 = vor.u32 %v7868_v57, %v5744_v58  ;;  %v6419_v13 = vor.u32 %v8036_v1, %v6416_v7  ;;  %v6384_v22 = vld [vmem:[#allocation8 + $0x5a0] sm:$0xf0] }
  0xe8   :  { %v8256_v33 = vld [vmem:[#allocation8 + $0xc9c] sm:$0xf0]  ;;  %4271 = vmatmul.bf16.vlgmr.msra.gmra.mxu2 %v8633_v3  ;;  %v6387_v26 = vor.u32 %v8028_v21, %v6384_v22  ;;  %v7852_v34 = vld [vmem:[#allocation8 + $0x4] sm:$0xf] }
  0xe9   :  { %4331 = vmatpush.bf16.msrb.mxu3 %v7599_v20  ;;  %v7279_v35 = vor.u32 %v8256_v33, %v7278_v31  ;;  %v7566_v37 = vld [vmem:[#allocation8 + $0xec0] sm:$0xf]  ;;  %4355 = vmatpush.bf16.msra.mxu1 %v6131_v36  ;;  %v999_v16 = vpop.f32.mrf.mxu1  ;;  %v1024_v20 = vadd.f32 %v1023_v9, %v1011_v8  ;;  %v5715_v31 = vor.u32 %v7860_v17, %v5712_v18  ;;  %v6000_v33 = vld [vmem:[#allocation8 + $0x2a0] sm:$0xf0]  ;;  %v271_v8 = vperm.slane %v8621_v2, 4 }
  0xea   :  { %v8328_v38 = vld [vmem:[#allocation8 + $0xedc] sm:$0xf0]  ;;  %v5680_v36 = vld [vmem:[#allocation8 + $0x20] sm:$0xf0] }
  0xeb   :  { %4343 = vmatpush.bf16.msra.mxu0 %v5843_v24  ;;  %4320 = vmatpush.bf16.msrb.mxu2 %v7279_v35  ;;  %v7567_v44 = vor.u32 %v8328_v38, %v7566_v37  ;;  %v7246_v47 = vld [vmem:[#allocation8 + $0xc40] sm:$0xf]  ;;  %v6035_v24 = vor.u32 %v7940_v6, %v6032_v12  ;;  %v1134_v30 = vmax.f32 %v1024_v20, 0.0  ;;  %v8100_v37 = vld [vmem:[#allocation8 + $0x7c4] sm:$0xf] }
  0xec   :  { %v8248_v48 = vld [vmem:[#allocation8 + $0xc5c] sm:$0xf0]  ;;  %v6672_v38 = vld [vmem:[#allocation8 + $0x7e0] sm:$0xf0] }
  0xed   :  { %4332 = vmatpush.bf16.msrb.mxu3 %v7567_v44  ;;  %v7247_v32 = vor.u32 %v8248_v48, %v7246_v47  ;;  %v7534_v53 = vld [vmem:[#allocation8 + $0xe80] sm:$0xf]  ;;  %4356 = vmatpush.bf16.msra.mxu1 %v6099_v51  ;;  %v8636_v39 = vpack.c.bf16 %v1134_v30, %v1134_v30  ;;  %v8020_v41 = vld [vmem:[#allocation8 + $0x544] sm:$0xf]  ;;  %v1012_v43 = vpop.f32.mrf.mxu2  ;;  %v6003_v44 = vor.u32 %v7932_v25, %v6000_v33 }
  0xee   :  { %v8320_v54 = vld [vmem:[#allocation8 + $0xe9c] sm:$0xf0]  ;;  %v6352_v42 = vld [vmem:[#allocation8 + $0x560] sm:$0xf0]  ;;  %v5683_v47 = vor.u32 %v7852_v34, %v5680_v36 }
  0xef   :  { %4344 = vmatpush.bf16.msra.mxu0 %v5811_v40  ;;  %4321 = vmatpush.bf16.msrb.mxu2 %v7247_v32  ;;  %v7535_v59 = vor.u32 %v8320_v54, %v7534_v53  ;;  %v7214_v62 = vld [vmem:[#allocation8 + $0xc00] sm:$0xf]  ;;  %v6675_v40 = vor.u32 %v8100_v37, %v6672_v38  ;;  %v7924_v45 = vld [vmem:[#allocation8 + $0x244] sm:$0xf]  ;;  %v6355_v46 = vor.u32 %v8020_v41, %v6352_v42  ;;  %v1025_v29 = vpop.f32.mrf.mxu3 }
  0xf0   :  { %v8240_v63 = vld [vmem:[#allocation8 + $0xc1c] sm:$0xf0]  ;;  %4284 = vmatmul.bf16.vlgmr.msra.gmra.mxu3 %v8636_v39  ;;  %v5968_v48 = vld [vmem:[#allocation8 + $0x260] sm:$0xf0] }
  0xf1   :  { %4333 = vmatpush.bf16.msrb.mxu3 %v7535_v59  ;;  %v7215_v0 = vor.u32 %v8240_v63, %v7214_v62  ;;  %v7502_v14 = vld [vmem:[#allocation8 + $0xe40] sm:$0xf]  ;;  %4357 = vmatpush.bf16.msra.mxu1 %v6067_v5  ;;  %v8092_v49 = vld [vmem:[#allocation8 + $0x784] sm:$0xf]  ;;  %v5971_v53 = vor.u32 %v7924_v45, %v5968_v48 }
  0xf2   :  { %v8312_v15 = vld [vmem:[#allocation8 + $0xe5c] sm:$0xf0]  ;;  %v6640_v32 = vld [vmem:[#allocation8 + $0x7a0] sm:$0xf0] }
  0xf3   :  { %4345 = vmatpush.bf16.msra.mxu0 %v5779_v55  ;;  %4322 = vmatpush.bf16.msrb.mxu2 %v7215_v0  ;;  %v7503_v19 = vor.u32 %v8312_v15, %v7502_v14  ;;  %v7470_v27 = vld [vmem:[#allocation8 + $0xe00] sm:$0xf]  ;;  %v6643_v50 = vor.u32 %v8092_v49, %v6640_v32  ;;  %v8012_v51 = vld [vmem:[#allocation8 + $0x504] sm:$0xf] }
  0xf4   :  { %v8304_v28 = vld [vmem:[#allocation8 + $0xe1c] sm:$0xf0]  ;;  %v6320_v52 = vld [vmem:[#allocation8 + $0x520] sm:$0xf0] }
  0xf5   :  { %4334 = vmatpush.bf16.msrb.mxu3 %v7503_v19  ;;  %v7471_v35 = vor.u32 %v8304_v28, %v7470_v27  ;;  %4358 = vmatpush.bf16.msra.mxu1 %v6035_v24  ;;  %v7916_v54 = vld [vmem:[#allocation8 + $0x204] sm:$0xf]  ;;  %v6323_v55 = vor.u32 %v8012_v51, %v6320_v52 }
  0xf6   :  { %v5936_v56 = vld [vmem:[#allocation8 + $0x220] sm:$0xf0] }
  0xf7   :  { %4367 = vmatpush.bf16.msra.mxu2 %v6419_v13  ;;  %4346 = vmatpush.bf16.msra.mxu0 %v5747_v11  ;;  %v8084_v57 = vld [vmem:[#allocation8 + $0x744] sm:$0xf]  ;;  %v5939_v63 = vor.u32 %v7916_v54, %v5936_v56 }
  0xf8   :  { %v6608_v58 = vld [vmem:[#allocation8 + $0x760] sm:$0xf0] }
  0xf9   :  { %4335 = vmatpush.bf16.msrb.mxu3 %v7471_v35  ;;  %4359 = vmatpush.bf16.msra.mxu1 %v6003_v44  ;;  %v6611_v59 = vor.u32 %v8084_v57, %v6608_v58  ;;  %v8004_v60 = vld [vmem:[#allocation8 + $0x4c4] sm:$0xf] }
  0xfa   :  { %v6288_v62 = vld [vmem:[#allocation8 + $0x4e0] sm:$0xf0] }
  0xfb   :  { %4368 = vmatpush.bf16.msra.mxu2 %v6387_v26  ;;  %4347 = vmatpush.bf16.msra.mxu0 %v5715_v31  ;;  %v6291_v0 = vor.u32 %v8004_v60, %v6288_v62  ;;  %v8076_v1 = vld [vmem:[#allocation8 + $0x704] sm:$0xf]  ;;  %v272_v26 = vperm.slane %v8621_v2, 5 }
  0xfc   :  { %v6576_v4 = vld [vmem:[#allocation8 + $0x720] sm:$0xf0] }
  0xfd   :  { %4380 = vmatpush.bf16.msra.mxu3 %v6675_v40  ;;  %4360 = vmatpush.bf16.msra.mxu1 %v5971_v53  ;;  %v6579_v5 = vor.u32 %v8076_v1, %v6576_v4  ;;  %v7996_v6 = vld [vmem:[#allocation8 + $0x484] sm:$0xf] }
  0xfe   :  { %v6256_v7 = vld [vmem:[#allocation8 + $0x4a0] sm:$0xf0] }
  0xff   :  { %4369 = vmatpush.bf16.msra.mxu2 %v6355_v46  ;;  %4348 = vmatpush.bf16.msra.mxu0 %v5683_v47  ;;  %v6259_v9 = vor.u32 %v7996_v6, %v6256_v7  ;;  %v8068_v10 = vld [vmem:[#allocation8 + $0x6c4] sm:$0xf]  ;;  %v1036_v13 = vpop.f32.mrf.mxu0 }
 0x100   :  { %v6544_v11 = vld [vmem:[#allocation8 + $0x6e0] sm:$0xf0]  ;;  %v1037_v16 = vadd.f32 %v1036_v13, %v271_v8 }
 0x101   :  { %4381 = vmatpush.bf16.msra.mxu3 %v6643_v50  ;;  %4361 = vmatpush.bf16.msra.mxu1 %v5939_v63  ;;  %v6547_v12 = vor.u32 %v8068_v10, %v6544_v11  ;;  %v7988_v14 = vld [vmem:[#allocation8 + $0x444] sm:$0xf]  ;;  %v1049_v17 = vpop.f32.mrf.mxu1 }
 0x102   :  { %v6224_v15 = vld [vmem:[#allocation8 + $0x460] sm:$0xf0]  ;;  %v1050_v21 = vadd.f32 %v1049_v17, %v1037_v16 }
 0x103   :  { %4370 = vmatpush.bf16.msra.mxu2 %v6323_v55  ;;  %v6227_v18 = vor.u32 %v7988_v14, %v6224_v15  ;;  %v8060_v19 = vld [vmem:[#allocation8 + $0x684] sm:$0xf]  ;;  %v273_v15 = vperm.slane %v8621_v2, 6 }
 0x104   :  { %v6512_v20 = vld [vmem:[#allocation8 + $0x6a0] sm:$0xf0]  ;;  %v1135_v30 = vmax.f32 %v1050_v21, 0.0 }
 0x105   :  { %4382 = vmatpush.bf16.msra.mxu3 %v6611_v59  ;;  %v8164_v22 = vld [vmem:[#allocation8 + $0x9c4] sm:$0xf]  ;;  %v6515_v25 = vor.u32 %v8060_v19, %v6512_v20  ;;  %v1062_v36 = vpop.f32.mrf.mxu2 }
 0x106   :  { %v6928_v24 = vld [vmem:[#allocation8 + $0x9e0] sm:$0xf0]  ;;  %v8641_v35 = vpack.c.bf16 %v1135_v30, %v1135_v30  ;;  %v1063_v41 = vadd.f32 %v1062_v36, %v272_v26 }
 0x107   :  { %4371 = vmatpush.bf16.msra.mxu2 %v6291_v0  ;;  %v7980_v27 = vld [vmem:[#allocation8 + $0x404] sm:$0xf]  ;;  %v6931_v33 = vor.u32 %v8164_v22, %v6928_v24  ;;  %v1075_v42 = vpop.f32.mrf.mxu3  ;;  %v1038_v43 = vpop.f32.mrf.mxu0 }
 0x108   :  { %v6192_v28 = vld [vmem:[#allocation8 + $0x420] sm:$0xf0]  ;;  %4297 = vmatmul.bf16.vlgmr.msrb.gmra.mxu0 %v8641_v35  ;;  %v1076_v29 = vadd.f32 %v1075_v42, %v1063_v41 }
 0x109   :  { %4383 = vmatpush.bf16.msra.mxu3 %v6579_v5  ;;  %v6195_v31 = vor.u32 %v7980_v27, %v6192_v28  ;;  %v8156_v34 = vld [vmem:[#allocation8 + $0x984] sm:$0xf]  ;;  %v1051_v46 = vpop.f32.mrf.mxu1  ;;  %4393 = vmatpush.bf16.msrb.mxu0 %v6931_v33 }
 0x10a   :  { %v6896_v37 = vld [vmem:[#allocation8 + $0x9a0] sm:$0xf0]  ;;  %v1136_v53 = vmax.f32 %v1076_v29, 0.0 }
 0x10b   :  { %4372 = vmatpush.bf16.msra.mxu2 %v6259_v9  ;;  %v8052_v38 = vld [vmem:[#allocation8 + $0x644] sm:$0xf]  ;;  %v6899_v47 = vor.u32 %v8156_v34, %v6896_v37  ;;  %v5910_v37 = vld [vmem:[#allocation8 + $0x1c8] sm:$0xf] }
 0x10c   :  { %v6480_v40 = vld [vmem:[#allocation8 + $0x660] sm:$0xf0]  ;;  %v8644_v55 = vpack.c.bf16 %v1136_v53, %v1136_v53 }
 0x10d   :  { %4384 = vmatpush.bf16.msra.mxu3 %v6547_v12  ;;  %v6483_v44 = vor.u32 %v8052_v38, %v6480_v40  ;;  %v8228_v45 = vld [vmem:[#allocation8 + $0xbc4] sm:$0xf]  ;;  %4394 = vmatpush.bf16.msrb.mxu0 %v6899_v47  ;;  %v1064_v59 = vpop.f32.mrf.mxu2  ;;  %v7913_v38 = vld [vmem:[#allocation8 + $0x1e4] sm:$0xf0]  ;;  %v274_v40 = vperm.slane %v8621_v2, 7 }
 0x10e   :  { %v7184_v48 = vld [vmem:[#allocation8 + $0xbe0] sm:$0xf0]  ;;  %4310 = vmatmul.bf16.vlgmr.msrb.gmra.mxu1 %v8644_v55  ;;  %v5911_v29 = vor.u32 %v7913_v38, %v5910_v37  ;;  %v7961_v37 = vld [vmem:[#allocation8 + $0x364] sm:$0xf0] }
 0x10f   :  { %4373 = vmatpush.bf16.msra.mxu2 %v6227_v18  ;;  %v8044_v49 = vld [vmem:[#allocation8 + $0x604] sm:$0xf]  ;;  %v7187_v54 = vor.u32 %v8228_v45, %v7184_v48  ;;  %v1077_v63 = vpop.f32.mrf.mxu3  ;;  %v5782_v38 = vld [vmem:[#allocation8 + $0xc8] sm:$0xf] }
 0x110   :  { %v6448_v32 = vld [vmem:[#allocation8 + $0x620] sm:$0xf0] }
 0x111   :  { %4385 = vmatpush.bf16.msra.mxu3 %v6515_v25  ;;  %v8148_v50 = vld [vmem:[#allocation8 + $0x944] sm:$0xf]  ;;  %v6451_v52 = vor.u32 %v8044_v49, %v6448_v32  ;;  %4406 = vmatpush.bf16.msrb.mxu1 %v7187_v54 }
 0x112   :  { %v6864_v51 = vld [vmem:[#allocation8 + $0x960] sm:$0xf0] }
 0x113   :  { %4374 = vmatpush.bf16.msra.mxu2 %v6195_v31  ;;  %v6867_v56 = vor.u32 %v8148_v50, %v6864_v51  ;;  %v8220_v57 = vld [vmem:[#allocation8 + $0xb84] sm:$0xf]  ;;  %v5878_v50 = vld [vmem:[#allocation8 + $0x188] sm:$0xf] }
 0x114   :  { %v7152_v58 = vld [vmem:[#allocation8 + $0xba0] sm:$0xf0]  ;;  %v7905_v51 = vld [vmem:[#allocation8 + $0x1a4] sm:$0xf0] }
 0x115   :  { %4386 = vmatpush.bf16.msra.mxu3 %v6483_v44  ;;  %v8140_v60 = vld [vmem:[#allocation8 + $0x904] sm:$0xf]  ;;  %v7155_v0 = vor.u32 %v8220_v57, %v7152_v58  ;;  %4395 = vmatpush.bf16.msrb.mxu0 %v6867_v56 }
 0x116   :  { %v6832_v62 = vld [vmem:[#allocation8 + $0x920] sm:$0xf0] }
 0x117   :  { %v6835_v1 = vor.u32 %v8140_v60, %v6832_v62  ;;  %v8212_v4 = vld [vmem:[#allocation8 + $0xb44] sm:$0xf]  ;;  %4407 = vmatpush.bf16.msrb.mxu1 %v7155_v0  ;;  %v5879_v0 = vor.u32 %v7905_v51, %v5878_v50  ;;  %v5750_v50 = vld [vmem:[#allocation8 + $0x88] sm:$0xf] }
 0x118   :  { %v7120_v5 = vld [vmem:[#allocation8 + $0xb60] sm:$0xf0]  ;;  %4349 = vmatmul.bf16.vlgmr.msra.gmra.mxu0 %v8625_v61  ;;  %v7873_v51 = vld [vmem:[#allocation8 + $0xa4] sm:$0xf0] }
 0x119   :  { %4387 = vmatpush.bf16.msra.mxu3 %v6451_v52  ;;  %v8132_v6 = vld [vmem:[#allocation8 + $0x8c4] sm:$0xf]  ;;  %v7123_v8 = vor.u32 %v8212_v4, %v7120_v5  ;;  %4396 = vmatpush.bf16.msrb.mxu0 %v6835_v1  ;;  %v6166_v1 = vld [vmem:[#allocation8 + $0x3c8] sm:$0xf] }
 0x11a   :  { %v6800_v7 = vld [vmem:[#allocation8 + $0x8e0] sm:$0xf0]  ;;  %v7977_v4 = vld [vmem:[#allocation8 + $0x3e4] sm:$0xf0] }
 0x11b   :  { %v6803_v9 = vor.u32 %v8132_v6, %v6800_v7  ;;  %v8204_v10 = vld [vmem:[#allocation8 + $0xb04] sm:$0xf]  ;;  %4408 = vmatpush.bf16.msrb.mxu1 %v7123_v8  ;;  %v5846_v7 = vld [vmem:[#allocation8 + $0x148] sm:$0xf] }
 0x11c   :  { %v7088_v11 = vld [vmem:[#allocation8 + $0xb20] sm:$0xf0]  ;;  %v7897_v8 = vld [vmem:[#allocation8 + $0x164] sm:$0xf0] }
 0x11d   :  { %v8124_v12 = vld [vmem:[#allocation8 + $0x884] sm:$0xf]  ;;  %v7091_v14 = vor.u32 %v8204_v10, %v7088_v11  ;;  %4397 = vmatpush.bf16.msrb.mxu0 %v6803_v9 }
 0x11e   :  { %v6768_v13 = vld [vmem:[#allocation8 + $0x8a0] sm:$0xf0]  ;;  %4362 = vmatmul.bf16.vlgmr.msra.gmra.mxu1 %v8629_v23 }
 0x11f   :  { %v6771_v16 = vor.u32 %v8124_v12, %v6768_v13  ;;  %v8196_v17 = vld [vmem:[#allocation8 + $0xac4] sm:$0xf]  ;;  %4409 = vmatpush.bf16.msrb.mxu1 %v7091_v14  ;;  %v1088_v21 = vpop.f32.mrf.mxu0  ;;  %v6167_v12 = vor.u32 %v7977_v4, %v6166_v1 }
 0x120   :  { %v7056_v18 = vld [vmem:[#allocation8 + $0xae0] sm:$0xf0]  ;;  %v1089_v24 = vadd.f32 %v1088_v21, %v273_v15 }
 0x121   :  { %v8116_v19 = vld [vmem:[#allocation8 + $0x844] sm:$0xf]  ;;  %v7059_v22 = vor.u32 %v8196_v17, %v7056_v18  ;;  %v1101_v25 = vpop.f32.mrf.mxu1  ;;  %4398 = vmatpush.bf16.msrb.mxu0 %v6771_v16  ;;  %v5847_v17 = vor.u32 %v7897_v8, %v5846_v7  ;;  %v6134_v18 = vld [vmem:[#allocation8 + $0x388] sm:$0xf] }
 0x122   :  { %v6736_v20 = vld [vmem:[#allocation8 + $0x860] sm:$0xf0]  ;;  %v1102_v34 = vadd.f32 %v1101_v25, %v1089_v24  ;;  %v5814_v24 = vld [vmem:[#allocation8 + $0x108] sm:$0xf] }
 0x123   :  { %v6739_v26 = vor.u32 %v8116_v19, %v6736_v20  ;;  %v8188_v27 = vld [vmem:[#allocation8 + $0xa84] sm:$0xf]  ;;  %4410 = vmatpush.bf16.msrb.mxu1 %v7059_v22  ;;  %v7969_v19 = vld [vmem:[#allocation8 + $0x3a4] sm:$0xf0] }
 0x124   :  { %v7024_v28 = vld [vmem:[#allocation8 + $0xaa0] sm:$0xf0]  ;;  %v1137_v42 = vmax.f32 %v1102_v34, 0.0  ;;  %v7889_v25 = vld [vmem:[#allocation8 + $0x124] sm:$0xf0] }
 0x125   :  { %v8108_v30 = vld [vmem:[#allocation8 + $0x804] sm:$0xf]  ;;  %v7027_v41 = vor.u32 %v8188_v27, %v7024_v28  ;;  %4399 = vmatpush.bf16.msrb.mxu0 %v6739_v26  ;;  %v1114_v49 = vpop.f32.mrf.mxu2  ;;  %v6135_v28 = vor.u32 %v7969_v19, %v6134_v18  ;;  %v6934_v18 = vld [vmem:[#allocation8 + $0x9c8] sm:$0xf] }
 0x126   :  { %v6704_v31 = vld [vmem:[#allocation8 + $0x820] sm:$0xf0]  ;;  %v8651_v48 = vpack.c.bf16 %v1137_v42, %v1137_v42  ;;  %v1115_v52 = vadd.f32 %v1114_v49, %v274_v40  ;;  %v7881_v40 = vld [vmem:[#allocation8 + $0xe4] sm:$0xf0] }
 0x127   :  { %v8292_v33 = vld [vmem:[#allocation8 + $0xdc4] sm:$0xf]  ;;  %v6707_v43 = vor.u32 %v8108_v30, %v6704_v31  ;;  %v1127_v53 = vpop.f32.mrf.mxu3  ;;  %4411 = vmatpush.bf16.msrb.mxu1 %v7027_v41  ;;  %v1090_v54 = vpop.f32.mrf.mxu0  ;;  %v7953_v49 = vld [vmem:[#allocation8 + $0x324] sm:$0xf0] }
 0x128   :  { %v7440_v36 = vld [vmem:[#allocation8 + $0xde0] sm:$0xf0]  ;;  %4323 = vmatmul.bf16.vlgmr.msrb.gmra.mxu2 %v8651_v48  ;;  %v1128_v62 = vadd.f32 %v1127_v53, %v1115_v52  ;;  %v8169_v19 = vld [vmem:[#allocation8 + $0x9e4] sm:$0xf0] }
 0x129   :  { %v8180_v44 = vld [vmem:[#allocation8 + $0xa44] sm:$0xf]  ;;  %v7443_v46 = vor.u32 %v8292_v33, %v7440_v36  ;;  %v1103_v57 = vpop.f32.mrf.mxu1  ;;  %4400 = vmatpush.bf16.msrb.mxu0 %v6707_v43  ;;  %v5815_v33 = vor.u32 %v7889_v25, %v5814_v24  ;;  %v6102_v36 = vld [vmem:[#allocation8 + $0x348] sm:$0xf] }
 0x12a   :  { %v6992_v45 = vld [vmem:[#allocation8 + $0xa60] sm:$0xf0]  ;;  %v1138_v9 = vmax.f32 %v1128_v62, 0.0  ;;  %v5751_v57 = vor.u32 %v7873_v51, %v5750_v50  ;;  %v8041_v24 = vld [vmem:[#allocation8 + $0x5e4] sm:$0xf0] }
 0x12b   :  { %v8284_v47 = vld [vmem:[#allocation8 + $0xd84] sm:$0xf]  ;;  %v6995_v2 = vor.u32 %v8180_v44, %v6992_v45  ;;  %4419 = vmatpush.bf16.msrb.mxu2 %v7443_v46  ;;  %v6103_v44 = vor.u32 %v7961_v37, %v6102_v36  ;;  %v5783_v46 = vor.u32 %v7881_v40, %v5782_v38  ;;  %v6390_v36 = vld [vmem:[#allocation8 + $0x588] sm:$0xf] }
 0x12c   :  { %v7408_v32 = vld [vmem:[#allocation8 + $0xda0] sm:$0xf0]  ;;  %4401 = vmatmul.bf16.vlgmr.msrb.gmra.mxu0 %v8641_v35  ;;  %v8655_v15 = vpack.c.bf16 %v1138_v9, %v1138_v9  ;;  %v6902_v37 = vld [vmem:[#allocation8 + $0x988] sm:$0xf] }
 0x12d   :  { %v8172_v56 = vld [vmem:[#allocation8 + $0xa04] sm:$0xf]  ;;  %4445 = vmatpush.bf16.msra.mxu0 %v5911_v29  ;;  %v7411_v63 = vor.u32 %v8284_v47, %v7408_v32  ;;  %4412 = vmatpush.bf16.msrb.mxu1 %v6995_v2  ;;  %v1116_v21 = vpop.f32.mrf.mxu2  ;;  %v6070_v47 = vld [vmem:[#allocation8 + $0x308] sm:$0xf] }
 0x12e   :  { %v6960_v58 = vld [vmem:[#allocation8 + $0xa20] sm:$0xf0]  ;;  %4336 = vmatmul.bf16.vlgmr.msrb.gmra.mxu3 %v8655_v15  ;;  %v6071_v2 = vor.u32 %v7953_v49, %v6070_v47  ;;  %v8161_v38 = vld [vmem:[#allocation8 + $0x9a4] sm:$0xf0] }
 0x12f   :  { %v8356_v59 = vld [vmem:[#allocation8 + $0xfc4] sm:$0xf]  ;;  %v6963_v10 = vor.u32 %v8172_v56, %v6960_v58  ;;  %4420 = vmatpush.bf16.msrb.mxu2 %v7411_v63  ;;  %v1129_v26 = vpop.f32.mrf.mxu3  ;;  %v5718_v63 = vld [vmem:[#allocation8 + $0x48] sm:$0xf]  ;;  %v6903_v47 = vor.u32 %v8161_v38, %v6902_v37 }
 0x130   :  { %v7696_v60 = vld [vmem:[#allocation8 + $0xfe0] sm:$0xf0]  ;;  %v8105_v49 = vld [vmem:[#allocation8 + $0x7e4] sm:$0xf0] }
 0x131   :  { %v8276_v5 = vld [vmem:[#allocation8 + $0xd44] sm:$0xf]  ;;  %v7699_v11 = vor.u32 %v8356_v59, %v7696_v60  ;;  %4446 = vmatpush.bf16.msra.mxu0 %v5879_v0  ;;  %4413 = vmatpush.bf16.msrb.mxu1 %v6963_v10  ;;  %v6038_v59 = vld [vmem:[#allocation8 + $0x2c8] sm:$0xf] }
 0x132   :  { %v7376_v6 = vld [vmem:[#allocation8 + $0xd60] sm:$0xf0]  ;;  %v7945_v60 = vld [vmem:[#allocation8 + $0x2e4] sm:$0xf0] }
 0x133   :  { %v8348_v13 = vld [vmem:[#allocation8 + $0xf84] sm:$0xf]  ;;  %v7379_v16 = vor.u32 %v8276_v5, %v7376_v6  ;;  %4432 = vmatpush.bf16.msrb.mxu3 %v7699_v11  ;;  %v7865_v0 = vld [vmem:[#allocation8 + $0x64] sm:$0xf0]  ;;  %v6039_v6 = vor.u32 %v7945_v60, %v6038_v59 }
 0x134   :  { %v7664_v14 = vld [vmem:[#allocation8 + $0xfa0] sm:$0xf0]  ;;  %4414 = vmatmul.bf16.vlgmr.msrb.gmra.mxu1 %v8644_v55  ;;  %v5719_v8 = vor.u32 %v7865_v0, %v5718_v63  ;;  %v6006_v10 = vld [vmem:[#allocation8 + $0x288] sm:$0xf] }
 0x135   :  { %v8268_v20 = vld [vmem:[#allocation8 + $0xd04] sm:$0xf]  ;;  %4458 = vmatpush.bf16.msra.mxu1 %v6167_v12  ;;  %v7667_v27 = vor.u32 %v8348_v13, %v7664_v14  ;;  %4421 = vmatpush.bf16.msrb.mxu2 %v7379_v16  ;;  %v7937_v11 = vld [vmem:[#allocation8 + $0x2a4] sm:$0xf0] }
 0x136   :  { %v7344_v22 = vld [vmem:[#allocation8 + $0xd20] sm:$0xf0]  ;;  %4447 = vmatpush.bf16.msra.mxu0 %v5847_v17  ;;  %v5686_v14 = vld [vmem:[#allocation8 + $0x8] sm:$0xf]  ;;  %v6007_v21 = vor.u32 %v7937_v11, %v6006_v10 }
 0x137   :  { %v8340_v30 = vld [vmem:[#allocation8 + $0xf44] sm:$0xf]  ;;  %v7347_v31 = vor.u32 %v8268_v20, %v7344_v22  ;;  %4433 = vmatpush.bf16.msrb.mxu3 %v7667_v27  ;;  %v7857_v16 = vld [vmem:[#allocation8 + $0x24] sm:$0xf0] }
 0x138   :  { %v7632_v34 = vld [vmem:[#allocation8 + $0xf60] sm:$0xf0]  ;;  %4375 = vmatmul.bf16.vlgmr.msra.gmra.mxu2 %v8633_v3  ;;  %v6422_v22 = vld [vmem:[#allocation8 + $0x5c8] sm:$0xf]  ;;  %v5687_v26 = vor.u32 %v7857_v16, %v5686_v14 }
 0x139   :  { %v8260_v41 = vld [vmem:[#allocation8 + $0xcc4] sm:$0xf]  ;;  %4459 = vmatpush.bf16.msra.mxu1 %v6135_v28  ;;  %v7635_v43 = vor.u32 %v8340_v30, %v7632_v34  ;;  %4422 = vmatpush.bf16.msrb.mxu2 %v7347_v31  ;;  %v5974_v28 = vld [vmem:[#allocation8 + $0x248] sm:$0xf]  ;;  %v6423_v34 = vor.u32 %v8041_v24, %v6422_v22 }
 0x13a   :  { %v7312_v42 = vld [vmem:[#allocation8 + $0xce0] sm:$0xf0]  ;;  %4448 = vmatpush.bf16.msra.mxu0 %v5815_v33  ;;  %v7929_v30 = vld [vmem:[#allocation8 + $0x264] sm:$0xf0]  ;;  %v6935_v33 = vor.u32 %v8169_v19, %v6934_v18 }
 0x13b   :  { %v8332_v45 = vld [vmem:[#allocation8 + $0xf04] sm:$0xf]  ;;  %v7315_v32 = vor.u32 %v8260_v41, %v7312_v42  ;;  %4434 = vmatpush.bf16.msrb.mxu3 %v7635_v43  ;;  %v5975_v41 = vor.u32 %v7929_v30, %v5974_v28  ;;  %v8033_v42 = vld [vmem:[#allocation8 + $0x5a4] sm:$0xf0] }
 0x13c   :  { %v7600_v29 = vld [vmem:[#allocation8 + $0xf20] sm:$0xf0]  ;;  %v8233_v50 = vld [vmem:[#allocation8 + $0xbe4] sm:$0xf0]  ;;  %v6391_v51 = vor.u32 %v8033_v42, %v6390_v36 }
 0x13d   :  { %v8252_v52 = vld [vmem:[#allocation8 + $0xc84] sm:$0xf]  ;;  %4460 = vmatpush.bf16.msra.mxu1 %v6103_v44  ;;  %v7603_v54 = vor.u32 %v8332_v45, %v7600_v29  ;;  %4423 = vmatpush.bf16.msrb.mxu2 %v7315_v32  ;;  %v5942_v45 = vld [vmem:[#allocation8 + $0x208] sm:$0xf] }
 0x13e   :  { %v7280_v53 = vld [vmem:[#allocation8 + $0xca0] sm:$0xf0]  ;;  %4449 = vmatpush.bf16.msra.mxu0 %v5783_v46  ;;  %4388 = vmatmul.bf16.vlgmr.msra.gmra.mxu3 %v8636_v39  ;;  %v7921_v46 = vld [vmem:[#allocation8 + $0x224] sm:$0xf0] }
 0x13f   :  { %v8324_v56 = vld [vmem:[#allocation8 + $0xec4] sm:$0xf]  ;;  %v7283_v62 = vor.u32 %v8252_v52, %v7280_v53  ;;  %4435 = vmatpush.bf16.msrb.mxu3 %v7603_v54  ;;  %v6678_v29 = vld [vmem:[#allocation8 + $0x7c8] sm:$0xf] }
 0x140   :  { %v7568_v58 = vld [vmem:[#allocation8 + $0xee0] sm:$0xf0]  ;;  %v7190_v32 = vld [vmem:[#allocation8 + $0xbc8] sm:$0xf] }
 0x141   :  { %v8244_v1 = vld [vmem:[#allocation8 + $0xc44] sm:$0xf]  ;;  %4461 = vmatpush.bf16.msra.mxu1 %v6071_v2  ;;  %v7571_v5 = vor.u32 %v8324_v56, %v7568_v58  ;;  %4424 = vmatpush.bf16.msrb.mxu2 %v7283_v62  ;;  %v6870_v52 = vld [vmem:[#allocation8 + $0x948] sm:$0xf]  ;;  %v5943_v2 = vor.u32 %v7921_v46, %v5942_v45  ;;  %v6679_v58 = vor.u32 %v8105_v49, %v6678_v29 }
 0x142   :  { %v7248_v4 = vld [vmem:[#allocation8 + $0xc60] sm:$0xf0]  ;;  %4450 = vmatpush.bf16.msra.mxu0 %v5751_v57  ;;  %v8153_v53 = vld [vmem:[#allocation8 + $0x964] sm:$0xf0]  ;;  %v7191_v59 = vor.u32 %v8233_v50, %v7190_v32 }
 0x143   :  { %v8316_v7 = vld [vmem:[#allocation8 + $0xe84] sm:$0xf]  ;;  %v7251_v12 = vor.u32 %v8244_v1, %v7248_v4  ;;  %4436 = vmatpush.bf16.msrb.mxu3 %v7571_v5  ;;  %v6358_v56 = vld [vmem:[#allocation8 + $0x548] sm:$0xf]  ;;  %v6871_v62 = vor.u32 %v8153_v53, %v6870_v52 }
 0x144   :  { %v7536_v9 = vld [vmem:[#allocation8 + $0xea0] sm:$0xf0]  ;;  %v8025_v57 = vld [vmem:[#allocation8 + $0x564] sm:$0xf0] }
 0x145   :  { %v8236_v13 = vld [vmem:[#allocation8 + $0xc04] sm:$0xf]  ;;  %4462 = vmatpush.bf16.msra.mxu1 %v6039_v6  ;;  %v7539_v20 = vor.u32 %v8316_v7, %v7536_v9  ;;  %4425 = vmatpush.bf16.msrb.mxu2 %v7251_v12  ;;  %v6646_v60 = vld [vmem:[#allocation8 + $0x788] sm:$0xf]  ;;  %v6359_v4 = vor.u32 %v8025_v57, %v6358_v56 }
 0x146   :  { %v7216_v17 = vld [vmem:[#allocation8 + $0xc20] sm:$0xf0]  ;;  %4451 = vmatpush.bf16.msra.mxu0 %v5719_v8  ;;  %v8097_v63 = vld [vmem:[#allocation8 + $0x7a4] sm:$0xf0] }
 0x147   :  { %v8308_v25 = vld [vmem:[#allocation8 + $0xe44] sm:$0xf]  ;;  %v7219_v31 = vor.u32 %v8236_v13, %v7216_v17  ;;  %4437 = vmatpush.bf16.msrb.mxu3 %v7539_v20  ;;  %v7158_v0 = vld [vmem:[#allocation8 + $0xb88] sm:$0xf]  ;;  %v6647_v9 = vor.u32 %v8097_v63, %v6646_v60 }
 0x148   :  { %v7504_v27 = vld [vmem:[#allocation8 + $0xe60] sm:$0xf0]  ;;  %v8225_v1 = vld [vmem:[#allocation8 + $0xba4] sm:$0xf0] }
 0x149   :  { %4463 = vmatpush.bf16.msra.mxu1 %v6007_v21  ;;  %v7507_v40 = vor.u32 %v8308_v25, %v7504_v27  ;;  %v8300_v43 = vld [vmem:[#allocation8 + $0xe04] sm:$0xf]  ;;  %4426 = vmatpush.bf16.msrb.mxu2 %v7219_v31  ;;  %v6838_v5 = vld [vmem:[#allocation8 + $0x908] sm:$0xf]  ;;  %v7159_v10 = vor.u32 %v8225_v1, %v7158_v0 }
 0x14a   :  { %v7472_v44 = vld [vmem:[#allocation8 + $0xe20] sm:$0xf0]  ;;  %4452 = vmatpush.bf16.msra.mxu0 %v5687_v26  ;;  %v8145_v6 = vld [vmem:[#allocation8 + $0x924] sm:$0xf0] }
 0x14b   :  { %4438 = vmatpush.bf16.msrb.mxu3 %v7507_v40  ;;  %v7475_v54 = vor.u32 %v8300_v43, %v7472_v44  ;;  %v6326_v7 = vld [vmem:[#allocation8 + $0x508] sm:$0xf]  ;;  %v6839_v12 = vor.u32 %v8145_v6, %v6838_v5  ;;  %v8665_v42 = vld [vmem:[#allocation10] sm:$0xff]  ;;  %v5912_v5 = vld [vmem:[#allocation8 + $0x1e8] sm:$0xf0] }
 0x14c   :  { %4427 = vmatmul.bf16.vlgmr.msrb.gmra.mxu2 %v8651_v48  ;;  %v8017_v8 = vld [vmem:[#allocation8 + $0x524] sm:$0xf0] }
 0x14d   :  { %4471 = vmatpush.bf16.msra.mxu2 %v6423_v34  ;;  %4464 = vmatpush.bf16.msra.mxu1 %v5975_v41  ;;  %v6614_v11 = vld [vmem:[#allocation8 + $0x748] sm:$0xf]  ;;  %v6327_v17 = vor.u32 %v8017_v8, %v6326_v7 }
 0x14e   :  { %4497 = vmatpush.bf16.msrb.mxu0 %v6935_v33  ;;  %v8089_v13 = vld [vmem:[#allocation8 + $0x764] sm:$0xf0] }
 0x14f   :  { %4453 = vmatmul.bf16.vlgmr.msra.gmra.mxu0 %v8625_v61  ;;  %4439 = vmatpush.bf16.msrb.mxu3 %v7475_v54  ;;  %v7126_v14 = vld [vmem:[#allocation8 + $0xb48] sm:$0xf]  ;;  %v6615_v22 = vor.u32 %v8089_v13, %v6614_v11  ;;  %v4246_v52 = vpop.f32.mrf.mxu0 }
 0x150   :  { %v8217_v16 = vld [vmem:[#allocation8 + $0xb64] sm:$0xf0] }
 0x151   :  { %4472 = vmatpush.bf16.msra.mxu2 %v6391_v51  ;;  %4465 = vmatpush.bf16.msra.mxu1 %v5943_v2  ;;  %v6806_v18 = vld [vmem:[#allocation8 + $0x8c8] sm:$0xf]  ;;  %v7127_v24 = vor.u32 %v8217_v16, %v7126_v14  ;;  %v1661_v51 = vperm.slane %v8665_v42, 0 }
 0x152   :  { %4498 = vmatpush.bf16.msrb.mxu0 %v6903_v47  ;;  %v8137_v19 = vld [vmem:[#allocation8 + $0x8e4] sm:$0xf0]  ;;  %4440 = vmatmul.bf16.vlgmr.msrb.gmra.mxu3 %v8655_v15 }
 0x153   :  { %4484 = vmatpush.bf16.msra.mxu3 %v6679_v58  ;;  %v6294_v20 = vld [vmem:[#allocation8 + $0x4c8] sm:$0xf]  ;;  %v6807_v26 = vor.u32 %v8137_v19, %v6806_v18  ;;  %v4247_v6 = vadd.f32 %v4246_v52, %v1661_v51 }
 0x154   :  { %4466 = vmatmul.bf16.vlgmr.msra.gmra.mxu1 %v8629_v23  ;;  %v8009_v21 = vld [vmem:[#allocation8 + $0x4e4] sm:$0xf0] }
 0x155   :  { %4510 = vmatpush.bf16.msrb.mxu1 %v7191_v59  ;;  %4473 = vmatpush.bf16.msra.mxu2 %v6359_v4  ;;  %v6582_v25 = vld [vmem:[#allocation8 + $0x708] sm:$0xf]  ;;  %v6295_v31 = vor.u32 %v8009_v21, %v6294_v20  ;;  %v7909_v4 = vld [vmem:[#allocation8 + $0x1cc] sm:$0xf] }
 0x156   :  { %4499 = vmatpush.bf16.msrb.mxu0 %v6871_v62  ;;  %v8081_v27 = vld [vmem:[#allocation8 + $0x724] sm:$0xf0]  ;;  %v5915_v18 = vor.u32 %v7909_v4, %v5912_v5 }
 0x157   :  { %4485 = vmatpush.bf16.msra.mxu3 %v6647_v9  ;;  %v7094_v28 = vld [vmem:[#allocation8 + $0xb08] sm:$0xf]  ;;  %v6583_v38 = vor.u32 %v8081_v27, %v6582_v25 }
 0x158   :  { %v8209_v30 = vld [vmem:[#allocation8 + $0xb24] sm:$0xf0]  ;;  %v4259_v19 = vpop.f32.mrf.mxu1 }
 0x159   :  { %4511 = vmatpush.bf16.msrb.mxu1 %v7159_v10  ;;  %4474 = vmatpush.bf16.msra.mxu2 %v6327_v17  ;;  %v6774_v33 = vld [vmem:[#allocation8 + $0x888] sm:$0xf]  ;;  %v7095_v40 = vor.u32 %v8209_v30, %v7094_v28  ;;  %v8668_v25 = vadd.f32 %v4259_v19, %v4247_v6 }
 0x15a   :  { %4500 = vmatpush.bf16.msrb.mxu0 %v6839_v12  ;;  %v8129_v34 = vld [vmem:[#allocation8 + $0x8a4] sm:$0xf0] }
 0x15b   :  { %v6262_v36 = vld [vmem:[#allocation8 + $0x488] sm:$0xf]  ;;  %4486 = vmatpush.bf16.msra.mxu3 %v6615_v22  ;;  %v6775_v43 = vor.u32 %v8129_v34, %v6774_v33  ;;  %v7901_v22 = vld [vmem:[#allocation8 + $0x18c] sm:$0xf] }
 0x15c   :  { %v8001_v37 = vld [vmem:[#allocation8 + $0x4a4] sm:$0xf0] }
 0x15d   :  { %4512 = vmatpush.bf16.msrb.mxu1 %v7127_v24  ;;  %v6550_v41 = vld [vmem:[#allocation8 + $0x6c8] sm:$0xf]  ;;  %4475 = vmatpush.bf16.msra.mxu2 %v6295_v31  ;;  %v6263_v29 = vor.u32 %v8001_v37, %v6262_v36  ;;  %v5880_v24 = vld [vmem:[#allocation8 + $0x1a8] sm:$0xf0] }
 0x15e   :  { %4501 = vmatpush.bf16.msrb.mxu0 %v6807_v26  ;;  %v8073_v44 = vld [vmem:[#allocation8 + $0x6e4] sm:$0xf0]  ;;  %v4248_v26 = vpop.f32.mrf.mxu0 }
 0x15f   :  { %v7062_v45 = vld [vmem:[#allocation8 + $0xac8] sm:$0xf]  ;;  %4487 = vmatpush.bf16.msra.mxu3 %v6583_v38  ;;  %v6551_v53 = vor.u32 %v8073_v44, %v6550_v41  ;;  %v5883_v38 = vor.u32 %v7901_v22, %v5880_v24  ;;  %v7973_v41 = vld [vmem:[#allocation8 + $0x3cc] sm:$0xf] }
 0x160   :  { %v8201_v46 = vld [vmem:[#allocation8 + $0xae4] sm:$0xf0]  ;;  %v7869_v24 = vld [vmem:[#allocation8 + $0x8c] sm:$0xf] }
 0x161   :  { %v6742_v47 = vld [vmem:[#allocation8 + $0x848] sm:$0xf]  ;;  %4513 = vmatpush.bf16.msrb.mxu1 %v7095_v40  ;;  %v7063_v54 = vor.u32 %v8201_v46, %v7062_v45  ;;  %4476 = vmatpush.bf16.msra.mxu2 %v6263_v29  ;;  %v7893_v45 = vld [vmem:[#allocation8 + $0x14c] sm:$0xf] }
 0x162   :  { %v8121_v49 = vld [vmem:[#allocation8 + $0x864] sm:$0xf0]  ;;  %4502 = vmatpush.bf16.msrb.mxu0 %v6775_v43  ;;  %v6168_v43 = vld [vmem:[#allocation8 + $0x3e8] sm:$0xf0] }
 0x163   :  { %v6230_v32 = vld [vmem:[#allocation8 + $0x448] sm:$0xf]  ;;  %v6743_v56 = vor.u32 %v8121_v49, %v6742_v47  ;;  %4488 = vmatpush.bf16.msra.mxu3 %v6551_v53  ;;  %v5848_v46 = vld [vmem:[#allocation8 + $0x168] sm:$0xf0] }
 0x164   :  { %v7993_v50 = vld [vmem:[#allocation8 + $0x464] sm:$0xf0]  ;;  %v5851_v53 = vor.u32 %v7893_v45, %v5848_v46  ;;  %v5752_v26 = vld [vmem:[#allocation8 + $0xa8] sm:$0xf0] }
 0x165   :  { %v6518_v2 = vld [vmem:[#allocation8 + $0x688] sm:$0xf]  ;;  %v6231_v60 = vor.u32 %v7993_v50, %v6230_v32  ;;  %4514 = vmatpush.bf16.msrb.mxu1 %v7063_v54  ;;  %v6171_v32 = vor.u32 %v7973_v41, %v6168_v43  ;;  %v6040_v41 = vld [vmem:[#allocation8 + $0x2e8] sm:$0xf0] }
 0x166   :  { %v8065_v57 = vld [vmem:[#allocation8 + $0x6a4] sm:$0xf0]  ;;  %4503 = vmatpush.bf16.msrb.mxu0 %v6743_v56  ;;  %v6136_v56 = vld [vmem:[#allocation8 + $0x3a8] sm:$0xf0] }
 0x167   :  { %v7030_v58 = vld [vmem:[#allocation8 + $0xa88] sm:$0xf]  ;;  %v6519_v7 = vor.u32 %v8065_v57, %v6518_v2  ;;  %4477 = vmatpush.bf16.msra.mxu2 %v6231_v60  ;;  %v7965_v2 = vld [vmem:[#allocation8 + $0x38c] sm:$0xf]  ;;  %v4261_v57 = vpop.f32.mrf.mxu1 }
 0x168   :  { %v8193_v59 = vld [vmem:[#allocation8 + $0xaa4] sm:$0xf0]  ;;  %v7861_v43 = vld [vmem:[#allocation8 + $0x4c] sm:$0xf] }
 0x169   :  { %v6198_v62 = vld [vmem:[#allocation8 + $0x408] sm:$0xf]  ;;  %v7031_v8 = vor.u32 %v8193_v59, %v7030_v58  ;;  %4489 = vmatpush.bf16.msra.mxu3 %v6519_v7  ;;  %v7885_v58 = vld [vmem:[#allocation8 + $0x10c] sm:$0xf] }
 0x16a   :  { %v6710_v63 = vld [vmem:[#allocation8 + $0x808] sm:$0xf]  ;;  %v5816_v59 = vld [vmem:[#allocation8 + $0x128] sm:$0xf0] }
 0x16b   :  { %v8113_v0 = vld [vmem:[#allocation8 + $0x824] sm:$0xf0]  ;;  %4515 = vmatpush.bf16.msrb.mxu1 %v7031_v8  ;;  %v5819_v5 = vor.u32 %v7885_v58, %v5816_v59  ;;  %v7957_v7 = vld [vmem:[#allocation8 + $0x34c] sm:$0xf]  ;;  %v4272_v22 = vpop.f32.mrf.mxu2 }
 0x16c   :  { %v7985_v1 = vld [vmem:[#allocation8 + $0x424] sm:$0xf0]  ;;  %v6711_v12 = vor.u32 %v8113_v0, %v6710_v63  ;;  %v6139_v63 = vor.u32 %v7965_v2, %v6136_v56  ;;  %v6104_v8 = vld [vmem:[#allocation8 + $0x368] sm:$0xf0] }
 0x16d   :  { %v7446_v9 = vld [vmem:[#allocation8 + $0xdc8] sm:$0xf]  ;;  %v6199_v17 = vor.u32 %v7985_v1, %v6198_v62  ;;  %v7853_v2 = vld [vmem:[#allocation8 + $0xc] sm:$0xf] }
 0x16e   :  { %v8297_v10 = vld [vmem:[#allocation8 + $0xde4] sm:$0xf0]  ;;  %4504 = vmatpush.bf16.msrb.mxu0 %v6711_v12  ;;  %v5688_v56 = vld [vmem:[#allocation8 + $0x28] sm:$0xf0] }
 0x16f   :  { %v6486_v11 = vld [vmem:[#allocation8 + $0x648] sm:$0xf]  ;;  %v7447_v20 = vor.u32 %v8297_v10, %v7446_v9  ;;  %4478 = vmatpush.bf16.msra.mxu2 %v6199_v17  ;;  %v7877_v9 = vld [vmem:[#allocation8 + $0xcc] sm:$0xf] }
 0x170   :  { %v8057_v13 = vld [vmem:[#allocation8 + $0x664] sm:$0xf0]  ;;  %v5784_v10 = vld [vmem:[#allocation8 + $0xe8] sm:$0xf0] }
 0x171   :  { %v6998_v14 = vld [vmem:[#allocation8 + $0xa48] sm:$0xf]  ;;  %v6487_v27 = vor.u32 %v8057_v13, %v6486_v11  ;;  %4505 = vmatmul.bf16.vlgmr.msrb.gmra.mxu0 %v8641_v35  ;;  %v6107_v13 = vor.u32 %v7957_v7, %v6104_v8  ;;  %v8165_v59 = vld [vmem:[#allocation8 + $0x9cc] sm:$0xf] }
 0x172   :  { %v8185_v16 = vld [vmem:[#allocation8 + $0xa64] sm:$0xf0]  ;;  %4549 = vmatpush.bf16.msra.mxu0 %v5915_v18  ;;  %4479 = vmatmul.bf16.vlgmr.msra.gmra.mxu2 %v8633_v3  ;;  %v5787_v18 = vor.u32 %v7877_v9, %v5784_v10  ;;  %v7925_v10 = vld [vmem:[#allocation8 + $0x24c] sm:$0xf] }
 0x173   :  { %v7414_v21 = vld [vmem:[#allocation8 + $0xd88] sm:$0xf]  ;;  %v6999_v28 = vor.u32 %v8185_v16, %v6998_v14  ;;  %4523 = vmatpush.bf16.msrb.mxu2 %v7447_v20  ;;  %4490 = vmatpush.bf16.msra.mxu3 %v6487_v27  ;;  %v7949_v20 = vld [vmem:[#allocation8 + $0x30c] sm:$0xf]  ;;  %v4273_v27 = vadd.f32 %v4272_v22, %v8668_v25  ;;  %v4274_v57 = vpop.f32.mrf.mxu2 }
 0x174   :  { %v8289_v30 = vld [vmem:[#allocation8 + $0xda4] sm:$0xf0] }
 0x175   :  { %v6454_v31 = vld [vmem:[#allocation8 + $0x608] sm:$0xf]  ;;  %v7415_v44 = vor.u32 %v8289_v30, %v7414_v21  ;;  %4516 = vmatpush.bf16.msrb.mxu1 %v6999_v28  ;;  %v6072_v21 = vld [vmem:[#allocation8 + $0x328] sm:$0xf0] }
 0x176   :  { %v8049_v33 = vld [vmem:[#allocation8 + $0x624] sm:$0xf0]  ;;  %4550 = vmatpush.bf16.msra.mxu0 %v5883_v38 }
 0x177   :  { %v6966_v34 = vld [vmem:[#allocation8 + $0xa08] sm:$0xf]  ;;  %v6455_v29 = vor.u32 %v8049_v33, %v6454_v31  ;;  %4524 = vmatpush.bf16.msrb.mxu2 %v7415_v44  ;;  %v6075_v31 = vor.u32 %v7949_v20, %v6072_v21  ;;  %v5720_v44 = vld [vmem:[#allocation8 + $0x68] sm:$0xf0] }
 0x178   :  { %v8177_v36 = vld [vmem:[#allocation8 + $0xa24] sm:$0xf0] }
 0x179   :  { %v7702_v37 = vld [vmem:[#allocation8 + $0xfc8] sm:$0xf]  ;;  %v6967_v47 = vor.u32 %v8177_v36, %v6966_v34  ;;  %4491 = vmatpush.bf16.msra.mxu3 %v6455_v29 }
 0x17a   :  { %v8361_v40 = vld [vmem:[#allocation8 + $0xfe4] sm:$0xf0]  ;;  %4551 = vmatpush.bf16.msra.mxu0 %v5851_v53  ;;  %v6008_v53 = vld [vmem:[#allocation8 + $0x2a8] sm:$0xf0] }
 0x17b   :  { %v7703_v49 = vor.u32 %v8361_v40, %v7702_v37  ;;  %v7382_v50 = vld [vmem:[#allocation8 + $0xd48] sm:$0xf]  ;;  %4517 = vmatpush.bf16.msrb.mxu1 %v6967_v47  ;;  %v5755_v37 = vor.u32 %v7869_v24, %v5752_v26  ;;  %v7941_v40 = vld [vmem:[#allocation8 + $0x2cc] sm:$0xf] }
 0x17c   :  { %v8281_v51 = vld [vmem:[#allocation8 + $0xd64] sm:$0xf0]  ;;  %4492 = vmatmul.bf16.vlgmr.msra.gmra.mxu3 %v8636_v39  ;;  %v6043_v46 = vor.u32 %v7941_v40, %v6040_v41  ;;  %v7917_v24 = vld [vmem:[#allocation8 + $0x20c] sm:$0xf] }
 0x17d   :  { %v7670_v52 = vld [vmem:[#allocation8 + $0xf88] sm:$0xf]  ;;  %v7383_v60 = vor.u32 %v8281_v51, %v7382_v50  ;;  %4536 = vmatpush.bf16.msrb.mxu3 %v7703_v49  ;;  %v5723_v50 = vor.u32 %v7861_v43, %v5720_v44  ;;  %v5944_v26 = vld [vmem:[#allocation8 + $0x228] sm:$0xf0] }
 0x17e   :  { %v8353_v54 = vld [vmem:[#allocation8 + $0xfa4] sm:$0xf0]  ;;  %4518 = vmatmul.bf16.vlgmr.msrb.gmra.mxu1 %v8644_v55  ;;  %4552 = vmatpush.bf16.msra.mxu0 %v5819_v5  ;;  %v5691_v5 = vor.u32 %v7853_v2, %v5688_v56  ;;  %v5947_v41 = vor.u32 %v7917_v24, %v5944_v26  ;;  %v8021_v44 = vld [vmem:[#allocation8 + $0x54c] sm:$0xf] }
 0x17f   :  { %4562 = vmatpush.bf16.msra.mxu1 %v6171_v32  ;;  %v7671_v62 = vor.u32 %v8353_v54, %v7670_v52  ;;  %v7350_v0 = vld [vmem:[#allocation8 + $0xd08] sm:$0xf]  ;;  %4525 = vmatpush.bf16.msrb.mxu2 %v7383_v60  ;;  %v4285_v32 = vpop.f32.mrf.mxu3  ;;  %v7933_v52 = vld [vmem:[#allocation8 + $0x28c] sm:$0xf] }
 0x180   :  { %v8273_v1 = vld [vmem:[#allocation8 + $0xd24] sm:$0xf0]  ;;  %v8675_v54 = vadd.f32 %v4285_v32, %v4273_v27  ;;  %v6936_v60 = vld [vmem:[#allocation8 + $0x9e8] sm:$0xf0] }
 0x181   :  { %v7638_v4 = vld [vmem:[#allocation8 + $0xf48] sm:$0xf]  ;;  %v7351_v11 = vor.u32 %v8273_v1, %v7350_v0  ;;  %4537 = vmatpush.bf16.msrb.mxu3 %v7671_v62  ;;  %v6939_v9 = vor.u32 %v8165_v59, %v6936_v60  ;;  %v7160_v32 = vld [vmem:[#allocation8 + $0xba8] sm:$0xf0] }
 0x182   :  { %v8345_v6 = vld [vmem:[#allocation8 + $0xf64] sm:$0xf0]  ;;  %4553 = vmatpush.bf16.msra.mxu0 %v5787_v18  ;;  %v8029_v18 = vld [vmem:[#allocation8 + $0x58c] sm:$0xf] }
 0x183   :  { %4563 = vmatpush.bf16.msra.mxu1 %v6139_v63  ;;  %v7639_v12 = vor.u32 %v8345_v6, %v7638_v4  ;;  %v7318_v14 = vld [vmem:[#allocation8 + $0xcc8] sm:$0xf]  ;;  %4526 = vmatpush.bf16.msrb.mxu2 %v7351_v11  ;;  %v6011_v63 = vor.u32 %v7933_v52, %v6008_v53  ;;  %v8037_v4 = vld [vmem:[#allocation8 + $0x5cc] sm:$0xf] }
 0x184   :  { %v8265_v16 = vld [vmem:[#allocation8 + $0xce4] sm:$0xf0]  ;;  %v6424_v6 = vld [vmem:[#allocation8 + $0x5e8] sm:$0xf0] }
 0x185   :  { %v7606_v17 = vld [vmem:[#allocation8 + $0xf08] sm:$0xf]  ;;  %v7319_v28 = vor.u32 %v8265_v16, %v7318_v14  ;;  %4538 = vmatpush.bf16.msrb.mxu3 %v7639_v12  ;;  %v5976_v11 = vld [vmem:[#allocation8 + $0x268] sm:$0xf0]  ;;  %v6427_v16 = vor.u32 %v8037_v4, %v6424_v6  ;;  %v4298_v57 = vpop.f32.mrf.mxu0 }
 0x186   :  { %v8337_v19 = vld [vmem:[#allocation8 + $0xf24] sm:$0xf0]  ;;  %4554 = vmatpush.bf16.msra.mxu0 %v5755_v37  ;;  %v6904_v14 = vld [vmem:[#allocation8 + $0x9a8] sm:$0xf0]  ;;  %v5979_v21 = vor.u32 %v7925_v10, %v5976_v11 }
 0x187   :  { %4564 = vmatpush.bf16.msra.mxu1 %v6107_v13  ;;  %v7607_v30 = vor.u32 %v8337_v19, %v7606_v17  ;;  %v7286_v33 = vld [vmem:[#allocation8 + $0xc88] sm:$0xf]  ;;  %4527 = vmatpush.bf16.msrb.mxu2 %v7319_v28  ;;  %v8157_v13 = vld [vmem:[#allocation8 + $0x98c] sm:$0xf]  ;;  %v4287_v27 = vpop.f32.mrf.mxu3 }
 0x188   :  { %v8257_v34 = vld [vmem:[#allocation8 + $0xca4] sm:$0xf0]  ;;  %v6392_v19 = vld [vmem:[#allocation8 + $0x5a8] sm:$0xf0]  ;;  %v6907_v28 = vor.u32 %v8157_v13, %v6904_v14 }
 0x189   :  { %v7574_v36 = vld [vmem:[#allocation8 + $0xec8] sm:$0xf]  ;;  %v7287_v45 = vor.u32 %v8257_v34, %v7286_v33  ;;  %4539 = vmatpush.bf16.msrb.mxu3 %v7607_v30  ;;  %v8101_v30 = vld [vmem:[#allocation8 + $0x7cc] sm:$0xf] }
 0x18a   :  { %v8329_v38 = vld [vmem:[#allocation8 + $0xee4] sm:$0xf0]  ;;  %4555 = vmatpush.bf16.msra.mxu0 %v5723_v50  ;;  %v8229_v33 = vld [vmem:[#allocation8 + $0xbcc] sm:$0xf] }
 0x18b   :  { %4565 = vmatpush.bf16.msra.mxu1 %v6075_v31  ;;  %v7575_v25 = vor.u32 %v8329_v38, %v7574_v36  ;;  %v7254_v29 = vld [vmem:[#allocation8 + $0xc48] sm:$0xf]  ;;  %4528 = vmatpush.bf16.msrb.mxu2 %v7287_v45  ;;  %v6680_v31 = vld [vmem:[#allocation8 + $0x7e8] sm:$0xf0]  ;;  %v6395_v38 = vor.u32 %v8029_v18, %v6392_v19  ;;  %v4311_v19 = vpop.f32.mrf.mxu1 }
 0x18c   :  { %v8249_v47 = vld [vmem:[#allocation8 + $0xc64] sm:$0xf0]  ;;  %v7192_v34 = vld [vmem:[#allocation8 + $0xbe8] sm:$0xf0]  ;;  %v6683_v43 = vor.u32 %v8101_v30, %v6680_v31 }
 0x18d   :  { %v7542_v49 = vld [vmem:[#allocation8 + $0xe88] sm:$0xf]  ;;  %v7255_v58 = vor.u32 %v8249_v47, %v7254_v29  ;;  %4540 = vmatpush.bf16.msrb.mxu3 %v7575_v25  ;;  %v8149_v36 = vld [vmem:[#allocation8 + $0x94c] sm:$0xf]  ;;  %v7195_v25 = vor.u32 %v8229_v33, %v7192_v34  ;;  %v4300_v26 = vpop.f32.mrf.mxu0 }
 0x18e   :  { %v8321_v51 = vld [vmem:[#allocation8 + $0xea4] sm:$0xf0]  ;;  %4556 = vmatpush.bf16.msra.mxu0 %v5691_v5  ;;  %v6872_v37 = vld [vmem:[#allocation8 + $0x968] sm:$0xf0] }
 0x18f   :  { %4566 = vmatpush.bf16.msra.mxu1 %v6043_v46  ;;  %v7543_v62 = vor.u32 %v8321_v51, %v7542_v49  ;;  %v7222_v0 = vld [vmem:[#allocation8 + $0xc08] sm:$0xf]  ;;  %4529 = vmatpush.bf16.msrb.mxu2 %v7255_v58  ;;  %v6360_v45 = vld [vmem:[#allocation8 + $0x568] sm:$0xf0]  ;;  %v6875_v46 = vor.u32 %v8149_v36, %v6872_v37 }
 0x190   :  { %v8241_v1 = vld [vmem:[#allocation8 + $0xc24] sm:$0xf0]  ;;  %v8093_v29 = vld [vmem:[#allocation8 + $0x78c] sm:$0xf]  ;;  %v6363_v52 = vor.u32 %v8021_v44, %v6360_v45 }
 0x191   :  { %v7510_v7 = vld [vmem:[#allocation8 + $0xe48] sm:$0xf]  ;;  %v7223_v12 = vor.u32 %v8241_v1, %v7222_v0  ;;  %4541 = vmatpush.bf16.msrb.mxu3 %v7543_v62  ;;  %4557 = vmatmul.bf16.vlgmr.msra.gmra.mxu0 %v8625_v61  ;;  %v6648_v47 = vld [vmem:[#allocation8 + $0x7a8] sm:$0xf0]  ;;  %v4299_v0 = vadd.f32 %v4298_v57, %v8675_v54 }
 0x192   :  { %v8313_v8 = vld [vmem:[#allocation8 + $0xe64] sm:$0xf0]  ;;  %4601 = vmatpush.bf16.msrb.mxu0 %v6939_v9  ;;  %v8221_v49 = vld [vmem:[#allocation8 + $0xb8c] sm:$0xf]  ;;  %v6651_v53 = vor.u32 %v8093_v29, %v6648_v47 }
 0x193   :  { %4567 = vmatpush.bf16.msra.mxu1 %v6011_v63  ;;  %v7511_v17 = vor.u32 %v8313_v8, %v7510_v7  ;;  %v7478_v20 = vld [vmem:[#allocation8 + $0xe08] sm:$0xf]  ;;  %4530 = vmatpush.bf16.msrb.mxu2 %v7223_v12  ;;  %v8141_v50 = vld [vmem:[#allocation8 + $0x90c] sm:$0xf]  ;;  %v7163_v58 = vor.u32 %v8221_v49, %v7160_v32  ;;  %v8682_v24 = vadd.f32 %v4311_v19, %v4299_v0 }
 0x194   :  { %v8305_v22 = vld [vmem:[#allocation8 + $0xe24] sm:$0xf0]  ;;  %v6840_v51 = vld [vmem:[#allocation8 + $0x928] sm:$0xf0] }
 0x195   :  { %4542 = vmatpush.bf16.msrb.mxu3 %v7511_v17  ;;  %v7479_v40 = vor.u32 %v8305_v22, %v7478_v20  ;;  %v8013_v2 = vld [vmem:[#allocation8 + $0x50c] sm:$0xf]  ;;  %v6843_v59 = vor.u32 %v8141_v50, %v6840_v51  ;;  %v5918_v51 = vld [vmem:[#allocation8 + $0x1d0] sm:$0xf] }
 0x196   :  { %4531 = vmatmul.bf16.vlgmr.msrb.gmra.mxu2 %v8651_v48  ;;  %4602 = vmatpush.bf16.msrb.mxu0 %v6907_v28  ;;  %v6328_v56 = vld [vmem:[#allocation8 + $0x528] sm:$0xf0] }
 0x197   :  { %4575 = vmatpush.bf16.msra.mxu2 %v6427_v16  ;;  %4568 = vmatpush.bf16.msra.mxu1 %v5979_v21  ;;  %v8085_v60 = vld [vmem:[#allocation8 + $0x74c] sm:$0xf]  ;;  %v6331_v6 = vor.u32 %v8013_v2, %v6328_v56 }
 0x198   :  { %v6616_v62 = vld [vmem:[#allocation8 + $0x768] sm:$0xf0] }
 0x199   :  { %4543 = vmatpush.bf16.msrb.mxu3 %v7479_v40  ;;  %v8213_v63 = vld [vmem:[#allocation8 + $0xb4c] sm:$0xf]  ;;  %v6619_v7 = vor.u32 %v8085_v60, %v6616_v62 }
 0x19a   :  { %4603 = vmatpush.bf16.msrb.mxu0 %v6875_v46  ;;  %v7128_v1 = vld [vmem:[#allocation8 + $0xb68] sm:$0xf0] }
 0x19b   :  { %4576 = vmatpush.bf16.msra.mxu2 %v6395_v38  ;;  %4569 = vmatpush.bf16.msra.mxu1 %v5947_v41  ;;  %v8133_v4 = vld [vmem:[#allocation8 + $0x8cc] sm:$0xf]  ;;  %v7131_v10 = vor.u32 %v8213_v63, %v7128_v1 }
 0x19c   :  { %4544 = vmatmul.bf16.vlgmr.msrb.gmra.mxu3 %v8655_v15  ;;  %v6808_v5 = vld [vmem:[#allocation8 + $0x8e8] sm:$0xf0] }
 0x19d   :  { %4588 = vmatpush.bf16.msra.mxu3 %v6683_v43  ;;  %v8005_v8 = vld [vmem:[#allocation8 + $0x4cc] sm:$0xf]  ;;  %v6811_v11 = vor.u32 %v8133_v4, %v6808_v5 }
 0x19e   :  { %4570 = vmatmul.bf16.vlgmr.msra.gmra.mxu1 %v8629_v23  ;;  %v6296_v9 = vld [vmem:[#allocation8 + $0x4e8] sm:$0xf0]  ;;  %4604 = vmatpush.bf16.msrb.mxu0 %v6843_v59  ;;  %v4350_v59 = vpop.f32.mrf.mxu0 }
 0x19f   :  { %4614 = vmatpush.bf16.msrb.mxu1 %v7195_v25  ;;  %4577 = vmatpush.bf16.msra.mxu2 %v6363_v52  ;;  %v8077_v12 = vld [vmem:[#allocation8 + $0x70c] sm:$0xf]  ;;  %v6299_v18 = vor.u32 %v8005_v8, %v6296_v9  ;;  %v7914_v52 = vld [vmem:[#allocation8 + $0x1ec] sm:$0xf0] }
 0x1a0   :  { %v6584_v13 = vld [vmem:[#allocation8 + $0x728] sm:$0xf0]  ;;  %v5919_v4 = vor.u32 %v7914_v52, %v5918_v51  ;;  %v5886_v9 = vld [vmem:[#allocation8 + $0x190] sm:$0xf] }
 0x1a1   :  { %4589 = vmatpush.bf16.msra.mxu3 %v6651_v53  ;;  %v8205_v14 = vld [vmem:[#allocation8 + $0xb0c] sm:$0xf]  ;;  %v6587_v20 = vor.u32 %v8077_v12, %v6584_v13  ;;  %v4313_v53 = vpop.f32.mrf.mxu1 }
 0x1a2   :  { %v7096_v16 = vld [vmem:[#allocation8 + $0xb28] sm:$0xf0]  ;;  %4605 = vmatpush.bf16.msrb.mxu0 %v6811_v11 }
 0x1a3   :  { %4615 = vmatpush.bf16.msrb.mxu1 %v7163_v58  ;;  %v8125_v54 = vld [vmem:[#allocation8 + $0x88c] sm:$0xf]  ;;  %4578 = vmatpush.bf16.msra.mxu2 %v6331_v6  ;;  %v7099_v27 = vor.u32 %v8205_v14, %v7096_v16 }
 0x1a4   :  { %v6776_v17 = vld [vmem:[#allocation8 + $0x8a8] sm:$0xf0] }
 0x1a5   :  { %4590 = vmatpush.bf16.msra.mxu3 %v6619_v7  ;;  %v7997_v21 = vld [vmem:[#allocation8 + $0x48c] sm:$0xf]  ;;  %v6779_v28 = vor.u32 %v8125_v54, %v6776_v17  ;;  %v1662_v7 = vperm.slane %v8665_v42, 1  ;;  %v6174_v42 = vld [vmem:[#allocation8 + $0x3d0] sm:$0xf] }
 0x1a6   :  { %v6264_v22 = vld [vmem:[#allocation8 + $0x4a8] sm:$0xf0] }
 0x1a7   :  { %4616 = vmatpush.bf16.msrb.mxu1 %v7131_v10  ;;  %v8069_v30 = vld [vmem:[#allocation8 + $0x6cc] sm:$0xf]  ;;  %4579 = vmatpush.bf16.msra.mxu2 %v6299_v18  ;;  %v6267_v38 = vor.u32 %v7997_v21, %v6264_v22  ;;  %v7906_v10 = vld [vmem:[#allocation8 + $0x1ac] sm:$0xf0]  ;;  %v4351_v26 = vadd.f32 %v4350_v59, %v1662_v7 }
 0x1a8   :  { %v6552_v31 = vld [vmem:[#allocation8 + $0x6e8] sm:$0xf0]  ;;  %4606 = vmatpush.bf16.msrb.mxu0 %v6779_v28  ;;  %v5854_v28 = vld [vmem:[#allocation8 + $0x150] sm:$0xf] }
 0x1a9   :  { %v8197_v33 = vld [vmem:[#allocation8 + $0xacc] sm:$0xf]  ;;  %4591 = vmatpush.bf16.msra.mxu3 %v6587_v20  ;;  %v6555_v40 = vor.u32 %v8069_v30, %v6552_v31  ;;  %v5887_v20 = vor.u32 %v7906_v10, %v5886_v9  ;;  %v7898_v30 = vld [vmem:[#allocation8 + $0x16c] sm:$0xf0]  ;;  %v4363_v31 = vpop.f32.mrf.mxu1 }
 0x1aa   :  { %v7064_v34 = vld [vmem:[#allocation8 + $0xae8] sm:$0xf0]  ;;  %v6110_v59 = vld [vmem:[#allocation8 + $0x350] sm:$0xf] }
 0x1ab   :  { %v8117_v36 = vld [vmem:[#allocation8 + $0x84c] sm:$0xf]  ;;  %4617 = vmatpush.bf16.msrb.mxu1 %v7099_v27  ;;  %v7067_v44 = vor.u32 %v8197_v33, %v7064_v34  ;;  %4580 = vmatpush.bf16.msra.mxu2 %v6267_v38  ;;  %v7978_v27 = vld [vmem:[#allocation8 + $0x3ec] sm:$0xf0] }
 0x1ac   :  { %v6744_v37 = vld [vmem:[#allocation8 + $0x868] sm:$0xf0] }
 0x1ad   :  { %v7989_v41 = vld [vmem:[#allocation8 + $0x44c] sm:$0xf]  ;;  %v6747_v45 = vor.u32 %v8117_v36, %v6744_v37  ;;  %4592 = vmatpush.bf16.msra.mxu3 %v6555_v40  ;;  %v8685_v36 = vadd.f32 %v4363_v31, %v4351_v26  ;;  %v4352_v37 = vpop.f32.mrf.mxu0  ;;  %v5726_v31 = vld [vmem:[#allocation8 + $0x50] sm:$0xf] }
 0x1ae   :  { %v6232_v43 = vld [vmem:[#allocation8 + $0x468] sm:$0xf0] }
 0x1af   :  { %v8061_v25 = vld [vmem:[#allocation8 + $0x68c] sm:$0xf]  ;;  %v6235_v50 = vor.u32 %v7989_v41, %v6232_v43  ;;  %4618 = vmatpush.bf16.msrb.mxu1 %v7067_v44  ;;  %4607 = vmatpush.bf16.msrb.mxu0 %v6747_v45  ;;  %v6175_v44 = vor.u32 %v7978_v27, %v6174_v42  ;;  %v5855_v45 = vor.u32 %v7898_v30, %v5854_v28  ;;  %v6046_v28 = vld [vmem:[#allocation8 + $0x2d0] sm:$0xf] }
 0x1b0   :  { %v6520_v46 = vld [vmem:[#allocation8 + $0x6a8] sm:$0xf0]  ;;  %v7946_v30 = vld [vmem:[#allocation8 + $0x2ec] sm:$0xf0] }
 0x1b1   :  { %v8189_v29 = vld [vmem:[#allocation8 + $0xa8c] sm:$0xf]  ;;  %v6523_v2 = vor.u32 %v8061_v25, %v6520_v46  ;;  %4581 = vmatpush.bf16.msra.mxu2 %v6235_v50 }
 0x1b2   :  { %v7032_v47 = vld [vmem:[#allocation8 + $0xaa8] sm:$0xf0] }
 0x1b3   :  { %v8109_v49 = vld [vmem:[#allocation8 + $0x80c] sm:$0xf]  ;;  %v7035_v60 = vor.u32 %v8189_v29, %v7032_v47  ;;  %4593 = vmatpush.bf16.msra.mxu3 %v6523_v2  ;;  %v6142_v29 = vld [vmem:[#allocation8 + $0x390] sm:$0xf] }
 0x1b4   :  { %v6712_v32 = vld [vmem:[#allocation8 + $0x828] sm:$0xf0]  ;;  %v7970_v47 = vld [vmem:[#allocation8 + $0x3ac] sm:$0xf0] }
 0x1b5   :  { %v7981_v56 = vld [vmem:[#allocation8 + $0x40c] sm:$0xf]  ;;  %v6715_v62 = vor.u32 %v8109_v49, %v6712_v32  ;;  %4619 = vmatpush.bf16.msrb.mxu1 %v7035_v60  ;;  %v5822_v49 = vld [vmem:[#allocation8 + $0x110] sm:$0xf]  ;;  %v6143_v2 = vor.u32 %v7970_v47, %v6142_v29  ;;  %v4337_v29 = vpop.f32.mrf.mxu3 }
 0x1b6   :  { %v6200_v57 = vld [vmem:[#allocation8 + $0x428] sm:$0xf0]  ;;  %v7890_v32 = vld [vmem:[#allocation8 + $0x12c] sm:$0xf0] }
 0x1b7   :  { %v8293_v58 = vld [vmem:[#allocation8 + $0xdcc] sm:$0xf]  ;;  %v6203_v8 = vor.u32 %v7981_v56, %v6200_v57  ;;  %4608 = vmatpush.bf16.msrb.mxu0 %v6715_v62  ;;  %v5823_v56 = vor.u32 %v7890_v32, %v5822_v49  ;;  %v7962_v60 = vld [vmem:[#allocation8 + $0x36c] sm:$0xf0] }
 0x1b8   :  { %v7448_v63 = vld [vmem:[#allocation8 + $0xde8] sm:$0xf0]  ;;  %v5790_v62 = vld [vmem:[#allocation8 + $0xd0] sm:$0xf] }
 0x1b9   :  { %v8053_v0 = vld [vmem:[#allocation8 + $0x64c] sm:$0xf]  ;;  %v7451_v11 = vor.u32 %v8293_v58, %v7448_v63  ;;  %4582 = vmatpush.bf16.msra.mxu2 %v6203_v8  ;;  %v7882_v63 = vld [vmem:[#allocation8 + $0xec] sm:$0xf0]  ;;  %v6111_v8 = vor.u32 %v7962_v60, %v6110_v59 }
 0x1ba   :  { %v6488_v1 = vld [vmem:[#allocation8 + $0x668] sm:$0xf0]  ;;  %4609 = vmatmul.bf16.vlgmr.msrb.gmra.mxu0 %v8641_v35  ;;  %v5791_v9 = vor.u32 %v7882_v63, %v5790_v62  ;;  %v7938_v47 = vld [vmem:[#allocation8 + $0x2ac] sm:$0xf0] }
 0x1bb   :  { %v8181_v5 = vld [vmem:[#allocation8 + $0xa4c] sm:$0xf]  ;;  %v6491_v12 = vor.u32 %v8053_v0, %v6488_v1  ;;  %4653 = vmatpush.bf16.msra.mxu0 %v5919_v4  ;;  %v4365_v0 = vpop.f32.mrf.mxu1  ;;  %v8691_v4 = vpop.f32.mrf.mxu0  ;;  %v5694_v49 = vld [vmem:[#allocation8 + $0x10] sm:$0xf] }
 0x1bc   :  { %v7000_v6 = vld [vmem:[#allocation8 + $0xa68] sm:$0xf0]  ;;  %4583 = vmatmul.bf16.vlgmr.msra.gmra.mxu2 %v8633_v3  ;;  %v7858_v32 = vld [vmem:[#allocation8 + $0x2c] sm:$0xf0] }
 0x1bd   :  { %v8285_v13 = vld [vmem:[#allocation8 + $0xd8c] sm:$0xf]  ;;  %v7003_v54 = vor.u32 %v8181_v5, %v7000_v6  ;;  %4627 = vmatpush.bf16.msrb.mxu2 %v7451_v11  ;;  %4594 = vmatpush.bf16.msra.mxu3 %v6491_v12  ;;  %v6078_v12 = vld [vmem:[#allocation8 + $0x310] sm:$0xf]  ;;  %v5695_v62 = vor.u32 %v7858_v32, %v5694_v49 }
 0x1be   :  { %v7416_v14 = vld [vmem:[#allocation8 + $0xda8] sm:$0xf0]  ;;  %v6430_v59 = vld [vmem:[#allocation8 + $0x5d0] sm:$0xf] }
 0x1bf   :  { %v8045_v16 = vld [vmem:[#allocation8 + $0x60c] sm:$0xf]  ;;  %v7419_v33 = vor.u32 %v8285_v13, %v7416_v14  ;;  %4620 = vmatpush.bf16.msrb.mxu1 %v7003_v54  ;;  %4654 = vmatpush.bf16.msra.mxu0 %v5887_v20  ;;  %v7954_v13 = vld [vmem:[#allocation8 + $0x32c] sm:$0xf0]  ;;  %v4324_v54 = vpop.f32.mrf.mxu2 }
 0x1c0   :  { %v6456_v17 = vld [vmem:[#allocation8 + $0x628] sm:$0xf0]  ;;  %v5758_v14 = vld [vmem:[#allocation8 + $0x90] sm:$0xf] }
 0x1c1   :  { %v8173_v18 = vld [vmem:[#allocation8 + $0xa0c] sm:$0xf]  ;;  %v6459_v34 = vor.u32 %v8045_v16, %v6456_v17  ;;  %4628 = vmatpush.bf16.msrb.mxu2 %v7419_v33  ;;  %v7874_v16 = vld [vmem:[#allocation8 + $0xac] sm:$0xf0] }
 0x1c2   :  { %v6968_v19 = vld [vmem:[#allocation8 + $0xa28] sm:$0xf0]  ;;  %v5759_v42 = vor.u32 %v7874_v16, %v5758_v14  ;;  %v7866_v33 = vld [vmem:[#allocation8 + $0x6c] sm:$0xf0] }
 0x1c3   :  { %v8357_v21 = vld [vmem:[#allocation8 + $0xfcc] sm:$0xf]  ;;  %v6971_v38 = vor.u32 %v8173_v18, %v6968_v19  ;;  %4595 = vmatpush.bf16.msra.mxu3 %v6459_v34  ;;  %4655 = vmatpush.bf16.msra.mxu0 %v5855_v45  ;;  %v4325_v18 = vadd.f32 %v4324_v54, %v8682_v24  ;;  %v8694_v34 = vpop.f32.mrf.mxu1  ;;  %v8042_v63 = vld [vmem:[#allocation8 + $0x5ec] sm:$0xf0] }
 0x1c4   :  { %v7704_v22 = vld [vmem:[#allocation8 + $0xfe8] sm:$0xf0]  ;;  %v6398_v14 = vld [vmem:[#allocation8 + $0x590] sm:$0xf] }
 0x1c5   :  { %v7707_v40 = vor.u32 %v8357_v21, %v7704_v22  ;;  %v8277_v41 = vld [vmem:[#allocation8 + $0xd4c] sm:$0xf]  ;;  %4621 = vmatpush.bf16.msrb.mxu1 %v6971_v38  ;;  %v6079_v22 = vor.u32 %v7954_v13, %v6078_v12  ;;  %v4404_v38 = vpop.f32.mrf.mxu0  ;;  %v6431_v12 = vor.u32 %v8042_v63, %v6430_v59  ;;  %v8034_v16 = vld [vmem:[#allocation8 + $0x5ac] sm:$0xf0] }
 0x1c6   :  { %v7384_v43 = vld [vmem:[#allocation8 + $0xd68] sm:$0xf0]  ;;  %4596 = vmatmul.bf16.vlgmr.msra.gmra.mxu3 %v8636_v39  ;;  %v8226_v49 = vld [vmem:[#allocation8 + $0xbac] sm:$0xf0] }
 0x1c7   :  { %v8349_v25 = vld [vmem:[#allocation8 + $0xf8c] sm:$0xf]  ;;  %v7387_v50 = vor.u32 %v8277_v41, %v7384_v43  ;;  %4640 = vmatpush.bf16.msrb.mxu3 %v7707_v40  ;;  %4656 = vmatpush.bf16.msra.mxu0 %v5823_v56  ;;  %v6047_v43 = vor.u32 %v7946_v30, %v6046_v28  ;;  %v8234_v28 = vld [vmem:[#allocation8 + $0xbec] sm:$0xf0] }
 0x1c8   :  { %v7672_v46 = vld [vmem:[#allocation8 + $0xfa8] sm:$0xf0]  ;;  %4622 = vmatmul.bf16.vlgmr.msrb.gmra.mxu1 %v8644_v55  ;;  %v6878_v30 = vld [vmem:[#allocation8 + $0x950] sm:$0xf] }
 0x1c9   :  { %v7675_v51 = vor.u32 %v8349_v25, %v7672_v46  ;;  %v8269_v52 = vld [vmem:[#allocation8 + $0xd0c] sm:$0xf]  ;;  %4666 = vmatpush.bf16.msra.mxu1 %v6175_v44  ;;  %4629 = vmatpush.bf16.msrb.mxu2 %v7387_v50  ;;  %v5727_v44 = vor.u32 %v7866_v33, %v5726_v31  ;;  %v6014_v46 = vld [vmem:[#allocation8 + $0x290] sm:$0xf]  ;;  %v8696_v50 = vadd.f32 %v4337_v29, %v4325_v18 }
 0x1ca   :  { %v7352_v53 = vld [vmem:[#allocation8 + $0xd28] sm:$0xf0]  ;;  %v6015_v60 = vor.u32 %v7938_v47, %v6014_v46  ;;  %v8154_v31 = vld [vmem:[#allocation8 + $0x96c] sm:$0xf0] }
 0x1cb   :  { %v8341_v57 = vld [vmem:[#allocation8 + $0xf4c] sm:$0xf]  ;;  %v7355_v1 = vor.u32 %v8269_v52, %v7352_v53  ;;  %4641 = vmatpush.bf16.msrb.mxu3 %v7675_v51  ;;  %4657 = vmatpush.bf16.msra.mxu0 %v5791_v9  ;;  %v4326_v51 = vpop.f32.mrf.mxu2  ;;  %v6942_v53 = vld [vmem:[#allocation8 + $0x9d0] sm:$0xf] }
 0x1cc   :  { %v7640_v58 = vld [vmem:[#allocation8 + $0xf68] sm:$0xf0]  ;;  %v6654_v46 = vld [vmem:[#allocation8 + $0x790] sm:$0xf] }
 0x1cd   :  { %v7643_v5 = vor.u32 %v8341_v57, %v7640_v58  ;;  %v8261_v6 = vld [vmem:[#allocation8 + $0xccc] sm:$0xf]  ;;  %4667 = vmatpush.bf16.msra.mxu1 %v6143_v2  ;;  %4630 = vmatpush.bf16.msrb.mxu2 %v7355_v1  ;;  %v8170_v2 = vld [vmem:[#allocation8 + $0x9ec] sm:$0xf0] }
 0x1ce   :  { %v7320_v7 = vld [vmem:[#allocation8 + $0xce8] sm:$0xf0]  ;;  %v8098_v29 = vld [vmem:[#allocation8 + $0x7ac] sm:$0xf0] }
 0x1cf   :  { %v8333_v10 = vld [vmem:[#allocation8 + $0xf0c] sm:$0xf]  ;;  %v7323_v17 = vor.u32 %v8261_v6, %v7320_v7  ;;  %4642 = vmatpush.bf16.msrb.mxu3 %v7643_v5  ;;  %4658 = vmatpush.bf16.msra.mxu0 %v5759_v42  ;;  %v6943_v5 = vor.u32 %v8170_v2, %v6942_v53  ;;  %v5982_v6 = vld [vmem:[#allocation8 + $0x250] sm:$0xf] }
 0x1d0   :  { %v7608_v11 = vld [vmem:[#allocation8 + $0xf28] sm:$0xf0]  ;;  %v7930_v7 = vld [vmem:[#allocation8 + $0x26c] sm:$0xf0] }
 0x1d1   :  { %v7611_v19 = vor.u32 %v8333_v10, %v7608_v11  ;;  %v8253_v20 = vld [vmem:[#allocation8 + $0xc8c] sm:$0xf]  ;;  %4668 = vmatpush.bf16.msra.mxu1 %v6111_v8  ;;  %4631 = vmatpush.bf16.msrb.mxu2 %v7323_v17  ;;  %v4417_v8 = vpop.f32.mrf.mxu1  ;;  %v6910_v10 = vld [vmem:[#allocation8 + $0x990] sm:$0xf]  ;;  %v5983_v17 = vor.u32 %v7930_v7, %v5982_v6 }
 0x1d2   :  { %v7288_v21 = vld [vmem:[#allocation8 + $0xca8] sm:$0xf0]  ;;  %v8162_v11 = vld [vmem:[#allocation8 + $0x9ac] sm:$0xf0] }
 0x1d3   :  { %v8325_v26 = vld [vmem:[#allocation8 + $0xecc] sm:$0xf]  ;;  %v7291_v37 = vor.u32 %v8253_v20, %v7288_v21  ;;  %4643 = vmatpush.bf16.msrb.mxu3 %v7611_v19  ;;  %4659 = vmatpush.bf16.msra.mxu0 %v5727_v44  ;;  %v5950_v19 = vld [vmem:[#allocation8 + $0x210] sm:$0xf]  ;;  %v4339_v21 = vpop.f32.mrf.mxu3  ;;  %v4376_v33 = vpop.f32.mrf.mxu2 }
 0x1d4   :  { %v7576_v27 = vld [vmem:[#allocation8 + $0xee8] sm:$0xf0]  ;;  %v7922_v20 = vld [vmem:[#allocation8 + $0x22c] sm:$0xf0] }
 0x1d5   :  { %v7579_v24 = vor.u32 %v8325_v26, %v7576_v27  ;;  %v8245_v40 = vld [vmem:[#allocation8 + $0xc4c] sm:$0xf]  ;;  %4669 = vmatpush.bf16.msra.mxu1 %v6079_v22  ;;  %4632 = vmatpush.bf16.msrb.mxu2 %v7291_v37  ;;  %v6911_v22 = vor.u32 %v8162_v11, %v6910_v10  ;;  %v6686_v42 = vld [vmem:[#allocation8 + $0x7d0] sm:$0xf]  ;;  %v6399_v37 = vor.u32 %v8034_v16, %v6398_v14  ;;  %v4454_v14 = vpop.f32.mrf.mxu0 }
 0x1d6   :  { %v7256_v41 = vld [vmem:[#allocation8 + $0xc68] sm:$0xf0]  ;;  %v8106_v26 = vld [vmem:[#allocation8 + $0x7ec] sm:$0xf0] }
 0x1d7   :  { %v8317_v45 = vld [vmem:[#allocation8 + $0xe8c] sm:$0xf]  ;;  %v7259_v52 = vor.u32 %v8245_v40, %v7256_v41  ;;  %4644 = vmatpush.bf16.msrb.mxu3 %v7579_v24  ;;  %4660 = vmatpush.bf16.msra.mxu0 %v5695_v62  ;;  %v7198_v27 = vld [vmem:[#allocation8 + $0xbd0] sm:$0xf]  ;;  %v4377_v24 = vadd.f32 %v4376_v33, %v8685_v36  ;;  %v5951_v40 = vor.u32 %v7922_v20, %v5950_v19 }
 0x1d8   :  { %v7544_v25 = vld [vmem:[#allocation8 + $0xea8] sm:$0xf0]  ;;  %v6687_v41 = vor.u32 %v8106_v26, %v6686_v42  ;;  %v8026_v44 = vld [vmem:[#allocation8 + $0x56c] sm:$0xf0] }
 0x1d9   :  { %v7547_v56 = vor.u32 %v8317_v45, %v7544_v25  ;;  %v8237_v57 = vld [vmem:[#allocation8 + $0xc0c] sm:$0xf]  ;;  %4670 = vmatpush.bf16.msra.mxu1 %v6047_v43  ;;  %4633 = vmatpush.bf16.msrb.mxu2 %v7259_v52  ;;  %v6366_v43 = vld [vmem:[#allocation8 + $0x550] sm:$0xf]  ;;  %v7199_v45 = vor.u32 %v8234_v28, %v7198_v27  ;;  %v6879_v25 = vor.u32 %v8154_v31, %v6878_v30 }
 0x1da   :  { %v7224_v58 = vld [vmem:[#allocation8 + $0xc28] sm:$0xf0]  ;;  %4661 = vmatmul.bf16.vlgmr.msra.gmra.mxu0 %v8625_v61  ;;  %v7166_v47 = vld [vmem:[#allocation8 + $0xb90] sm:$0xf]  ;;  %v6367_v36 = vor.u32 %v8026_v44, %v6366_v43  ;;  %v6655_v52 = vor.u32 %v8098_v29, %v6654_v46  ;;  %v4467_v44 = vpop.f32.mrf.mxu1 }
 0x1db   :  { %v8309_v0 = vld [vmem:[#allocation8 + $0xe4c] sm:$0xf]  ;;  %v7227_v9 = vor.u32 %v8237_v57, %v7224_v58  ;;  %4645 = vmatpush.bf16.msrb.mxu3 %v7547_v56  ;;  %4705 = vmatpush.bf16.msrb.mxu0 %v6943_v5  ;;  %v6846_v32 = vld [vmem:[#allocation8 + $0x910] sm:$0xf]  ;;  %v4389_v56 = vpop.f32.mrf.mxu3  ;;  %v7167_v57 = vor.u32 %v8226_v49, %v7166_v47  ;;  %v4378_v6 = vpop.f32.mrf.mxu2 }
 0x1dc   :  { %v7512_v1 = vld [vmem:[#allocation8 + $0xe68] sm:$0xf0]  ;;  %v8146_v51 = vld [vmem:[#allocation8 + $0x92c] sm:$0xf0]  ;;  %v4390_v63 = vadd.f32 %v4389_v56, %v4377_v24 }
 0x1dd   :  { %v7515_v13 = vor.u32 %v8309_v0, %v7512_v1  ;;  %v8301_v54 = vld [vmem:[#allocation8 + $0xe0c] sm:$0xf]  ;;  %4671 = vmatpush.bf16.msra.mxu1 %v6015_v60  ;;  %4634 = vmatpush.bf16.msrb.mxu2 %v7227_v9  ;;  %v6334_v53 = vld [vmem:[#allocation8 + $0x510] sm:$0xf]  ;;  %v6847_v58 = vor.u32 %v8146_v51, %v6846_v32  ;;  %v8704_v9 = vld [vmem:[#allocation10] sm:$0xff] }
 0x1de   :  { %v7480_v18 = vld [vmem:[#allocation8 + $0xe28] sm:$0xf0]  ;;  %v8018_v2 = vld [vmem:[#allocation8 + $0x52c] sm:$0xf0]  ;;  %v4403_v8 = vadd.f32 %v8691_v4, %v4390_v63  ;;  %v1663_v10 = vperm.slane %v8704_v9, 2 }
 0x1df   :  { %4646 = vmatpush.bf16.msrb.mxu3 %v7515_v13  ;;  %v7483_v38 = vor.u32 %v8301_v54, %v7480_v18  ;;  %4706 = vmatpush.bf16.msrb.mxu0 %v6911_v22  ;;  %v6622_v59 = vld [vmem:[#allocation8 + $0x750] sm:$0xf]  ;;  %v6335_v7 = vor.u32 %v8018_v2, %v6334_v53  ;;  %v8708_v46 = vld [vmem:[#allocation11] sm:$0xff] }
 0x1e0   :  { %4635 = vmatmul.bf16.vlgmr.msrb.gmra.mxu2 %v8651_v48  ;;  %v8090_v60 = vld [vmem:[#allocation8 + $0x76c] sm:$0xf0]  ;;  %v4416_v20 = vadd.f32 %v8694_v34, %v4403_v8 }
 0x1e1   :  { %4679 = vmatpush.bf16.msra.mxu2 %v6431_v12  ;;  %4672 = vmatpush.bf16.msra.mxu1 %v5983_v17  ;;  %v7134_v62 = vld [vmem:[#allocation8 + $0xb50] sm:$0xf]  ;;  %v6623_v11 = vor.u32 %v8090_v60, %v6622_v59 }
 0x1e2   :  { %v8218_v0 = vld [vmem:[#allocation8 + $0xb6c] sm:$0xf0] }
 0x1e3   :  { %4647 = vmatpush.bf16.msrb.mxu3 %v7483_v38  ;;  %4707 = vmatpush.bf16.msrb.mxu0 %v6879_v25  ;;  %v6814_v1 = vld [vmem:[#allocation8 + $0x8d0] sm:$0xf]  ;;  %v7135_v16 = vor.u32 %v8218_v0, %v7134_v62  ;;  %v4391_v30 = vpop.f32.mrf.mxu3  ;;  %v5079_v62 = vperm.slane %v8708_v46, 0  ;;  %v7910_v0 = vld [vmem:[#allocation8 + $0x1d4] sm:$0xf] }
 0x1e4   :  { %v8138_v5 = vld [vmem:[#allocation8 + $0x8ec] sm:$0xf0] }
 0x1e5   :  { %4680 = vmatpush.bf16.msra.mxu2 %v6399_v37  ;;  %4673 = vmatpush.bf16.msra.mxu1 %v5951_v40  ;;  %v6302_v12 = vld [vmem:[#allocation8 + $0x4d0] sm:$0xf]  ;;  %v6815_v54 = vor.u32 %v8138_v5, %v6814_v1  ;;  %v4455_v40 = vadd.f32 %v4454_v14, %v1663_v10  ;;  %v5920_v1 = vld [vmem:[#allocation8 + $0x1f0] sm:$0xf0] }
 0x1e6   :  { %4648 = vmatmul.bf16.vlgmr.msrb.gmra.mxu3 %v8655_v15  ;;  %v8010_v13 = vld [vmem:[#allocation8 + $0x4ec] sm:$0xf0] }
 0x1e7   :  { %4692 = vmatpush.bf16.msra.mxu3 %v6687_v41  ;;  %4708 = vmatpush.bf16.msrb.mxu0 %v6847_v58  ;;  %v6590_v17 = vld [vmem:[#allocation8 + $0x710] sm:$0xf]  ;;  %v6303_v42 = vor.u32 %v8010_v13, %v6302_v12  ;;  %v8710_v29 = vadd.f32 %v4467_v44, %v4455_v40 }
 0x1e8   :  { %4674 = vmatmul.bf16.vlgmr.msra.gmra.mxu1 %v8629_v23  ;;  %v8082_v18 = vld [vmem:[#allocation8 + $0x72c] sm:$0xf0] }
 0x1e9   :  { %4718 = vmatpush.bf16.msrb.mxu1 %v7199_v45  ;;  %4681 = vmatpush.bf16.msra.mxu2 %v6367_v36  ;;  %v7102_v19 = vld [vmem:[#allocation8 + $0xb10] sm:$0xf]  ;;  %v6591_v26 = vor.u32 %v8082_v18, %v6590_v17  ;;  %v4428_v45 = vpop.f32.mrf.mxu2  ;;  %v4456_v36 = vpop.f32.mrf.mxu0  ;;  %v5080_v17 = vperm.slane %v8708_v46, 1  ;;  %v5923_v18 = vor.u32 %v7910_v0, %v5920_v1  ;;  %v7966_v1 = vld [vmem:[#allocation8 + $0x394] sm:$0xf] }
 0x1ea   :  { %v8210_v21 = vld [vmem:[#allocation8 + $0xb2c] sm:$0xf0]  ;;  %v4429_v47 = vadd.f32 %v4428_v45, %v4416_v20  ;;  %v7974_v45 = vld [vmem:[#allocation8 + $0x3d4] sm:$0xf] }
 0x1eb   :  { %4693 = vmatpush.bf16.msra.mxu3 %v6655_v52  ;;  %v6782_v4 = vld [vmem:[#allocation8 + $0x890] sm:$0xf]  ;;  %4709 = vmatpush.bf16.msrb.mxu0 %v6815_v54  ;;  %v7103_v31 = vor.u32 %v8210_v21, %v7102_v19  ;;  %v4441_v54 = vpop.f32.mrf.mxu3 }
 0x1ec   :  { %v8130_v22 = vld [vmem:[#allocation8 + $0x8ac] sm:$0xf0]  ;;  %v4442_v21 = vadd.f32 %v4441_v54, %v4429_v47 }
 0x1ed   :  { %4719 = vmatpush.bf16.msrb.mxu1 %v7167_v57  ;;  %4682 = vmatpush.bf16.msra.mxu2 %v6335_v7  ;;  %v6270_v27 = vld [vmem:[#allocation8 + $0x490] sm:$0xf]  ;;  %v6783_v33 = vor.u32 %v8130_v22, %v6782_v4  ;;  %v4469_v4 = vpop.f32.mrf.mxu1 }
 0x1ee   :  { %v8002_v28 = vld [vmem:[#allocation8 + $0x4ac] sm:$0xf0] }
 0x1ef   :  { %4694 = vmatpush.bf16.msra.mxu3 %v6623_v11  ;;  %v6558_v37 = vld [vmem:[#allocation8 + $0x6d0] sm:$0xf]  ;;  %v6271_v25 = vor.u32 %v8002_v28, %v6270_v27  ;;  %4710 = vmatpush.bf16.msrb.mxu0 %v6783_v33  ;;  %v7902_v27 = vld [vmem:[#allocation8 + $0x194] sm:$0xf] }
 0x1f0   :  { %v8074_v38 = vld [vmem:[#allocation8 + $0x6ec] sm:$0xf0]  ;;  %v5888_v28 = vld [vmem:[#allocation8 + $0x1b0] sm:$0xf0] }
 0x1f1   :  { %4720 = vmatpush.bf16.msrb.mxu1 %v7135_v16  ;;  %v7070_v24 = vld [vmem:[#allocation8 + $0xad0] sm:$0xf]  ;;  %4683 = vmatpush.bf16.msra.mxu2 %v6303_v42  ;;  %v6559_v49 = vor.u32 %v8074_v38, %v6558_v37  ;;  %v5069_v16 = vmax.f32 %v8696_v50, 0.0  ;;  %v4430_v22 = vpop.f32.mrf.mxu2  ;;  %v5070_v38 = vmax.f32 %v4442_v21, 0.0 }
 0x1f2   :  { %v8202_v41 = vld [vmem:[#allocation8 + $0xaec] sm:$0xf0] }
 0x1f3   :  { %v6750_v34 = vld [vmem:[#allocation8 + $0x850] sm:$0xf]  ;;  %4695 = vmatpush.bf16.msra.mxu3 %v6591_v26  ;;  %v7071_v52 = vor.u32 %v8202_v41, %v7070_v24  ;;  %v5096_v47 = vmul.f32 %v5080_v17, %v5070_v38  ;;  %v7958_v17 = vld [vmem:[#allocation8 + $0x354] sm:$0xf] }
 0x1f4   :  { %v8122_v43 = vld [vmem:[#allocation8 + $0x86c] sm:$0xf0]  ;;  %v5760_v38 = vld [vmem:[#allocation8 + $0xb0] sm:$0xf0] }
 0x1f5   :  { %v6238_v32 = vld [vmem:[#allocation8 + $0x450] sm:$0xf]  ;;  %4721 = vmatpush.bf16.msrb.mxu1 %v7103_v31  ;;  %v6751_v53 = vor.u32 %v8122_v43, %v6750_v34  ;;  %4684 = vmatpush.bf16.msra.mxu2 %v6271_v25  ;;  %v5891_v34 = vor.u32 %v7902_v27, %v5888_v28  ;;  %v5095_v25 = vmul.f32 %v5079_v62, %v5069_v16 }
 0x1f6   :  { %v7994_v51 = vld [vmem:[#allocation8 + $0x46c] sm:$0xf0] }
 0x1f7   :  { %v6526_v2 = vld [vmem:[#allocation8 + $0x690] sm:$0xf]  ;;  %v6239_v63 = vor.u32 %v7994_v51, %v6238_v32  ;;  %4696 = vmatpush.bf16.msra.mxu3 %v6559_v49  ;;  %4711 = vmatpush.bf16.msrb.mxu0 %v6751_v53  ;;  %v6176_v49 = vld [vmem:[#allocation8 + $0x3f0] sm:$0xf0]  ;;  %v8715_v53 = vadd.f32 %v5096_v47, %v5095_v25 }
 0x1f8   :  { %v8066_v56 = vld [vmem:[#allocation8 + $0x6ac] sm:$0xf0]  ;;  %v7894_v32 = vld [vmem:[#allocation8 + $0x154] sm:$0xf] }
 0x1f9   :  { %v7038_v57 = vld [vmem:[#allocation8 + $0xa90] sm:$0xf]  ;;  %v6527_v5 = vor.u32 %v8066_v56, %v6526_v2  ;;  %4722 = vmatpush.bf16.msrb.mxu1 %v7071_v52  ;;  %4685 = vmatpush.bf16.msra.mxu2 %v6239_v63  ;;  %v5856_v51 = vld [vmem:[#allocation8 + $0x170] sm:$0xf0] }
 0x1fa   :  { %v8194_v58 = vld [vmem:[#allocation8 + $0xaac] sm:$0xf0]  ;;  %v5859_v62 = vor.u32 %v7894_v32, %v5856_v51  ;;  %v7942_v47 = vld [vmem:[#allocation8 + $0x2d4] sm:$0xf] }
 0x1fb   :  { %v6718_v59 = vld [vmem:[#allocation8 + $0x810] sm:$0xf]  ;;  %v7039_v10 = vor.u32 %v8194_v58, %v7038_v57  ;;  %4697 = vmatpush.bf16.msra.mxu3 %v6527_v5  ;;  %v6144_v5 = vld [vmem:[#allocation8 + $0x3b0] sm:$0xf0] }
 0x1fc   :  { %v8114_v60 = vld [vmem:[#allocation8 + $0x82c] sm:$0xf0]  ;;  %v7862_v32 = vld [vmem:[#allocation8 + $0x54] sm:$0xf] }
 0x1fd   :  { %v6206_v6 = vld [vmem:[#allocation8 + $0x410] sm:$0xf]  ;;  %v6719_v11 = vor.u32 %v8114_v60, %v6718_v59  ;;  %4723 = vmatpush.bf16.msrb.mxu1 %v7039_v10  ;;  %v4443_v59 = vpop.f32.mrf.mxu3  ;;  %v6179_v60 = vor.u32 %v7974_v45, %v6176_v49  ;;  %v6048_v49 = vld [vmem:[#allocation8 + $0x2f0] sm:$0xf0] }
 0x1fe   :  { %v7986_v7 = vld [vmem:[#allocation8 + $0x42c] sm:$0xf0]  ;;  %v5728_v51 = vld [vmem:[#allocation8 + $0x70] sm:$0xf0] }
 0x1ff   :  { %v7454_v8 = vld [vmem:[#allocation8 + $0xdd0] sm:$0xf]  ;;  %v6207_v42 = vor.u32 %v7986_v7, %v6206_v6  ;;  %4712 = vmatpush.bf16.msrb.mxu0 %v6719_v11  ;;  %v7886_v6 = vld [vmem:[#allocation8 + $0x114] sm:$0xf] }
 0x200   :  { %v8298_v12 = vld [vmem:[#allocation8 + $0xdec] sm:$0xf0]  ;;  %v5824_v7 = vld [vmem:[#allocation8 + $0x130] sm:$0xf0] }
 0x201   :  { %v6494_v13 = vld [vmem:[#allocation8 + $0x650] sm:$0xf]  ;;  %v7455_v30 = vor.u32 %v8298_v12, %v7454_v8  ;;  %4686 = vmatpush.bf16.msra.mxu2 %v6207_v42 }
 0x202   :  { %v8058_v14 = vld [vmem:[#allocation8 + $0x66c] sm:$0xf0]  ;;  %4713 = vmatmul.bf16.vlgmr.msrb.gmra.mxu0 %v8641_v35 }
 0x203   :  { %v7006_v19 = vld [vmem:[#allocation8 + $0xa50] sm:$0xf]  ;;  %v6495_v31 = vor.u32 %v8058_v14, %v6494_v13  ;;  %4757 = vmatpush.bf16.msra.mxu0 %v5923_v18  ;;  %v6147_v13 = vor.u32 %v7966_v1, %v6144_v5  ;;  %v5827_v14 = vor.u32 %v7886_v6, %v5824_v7  ;;  %v6112_v18 = vld [vmem:[#allocation8 + $0x370] sm:$0xf0] }
 0x204   :  { %v8186_v20 = vld [vmem:[#allocation8 + $0xa6c] sm:$0xf0]  ;;  %4687 = vmatmul.bf16.vlgmr.msra.gmra.mxu2 %v8633_v3  ;;  %v6115_v27 = vor.u32 %v7958_v17, %v6112_v18  ;;  %v7934_v5 = vld [vmem:[#allocation8 + $0x294] sm:$0xf] }
 0x205   :  { %v7422_v26 = vld [vmem:[#allocation8 + $0xd90] sm:$0xf]  ;;  %v7007_v24 = vor.u32 %v8186_v20, %v7006_v19  ;;  %4731 = vmatpush.bf16.msrb.mxu2 %v7455_v30  ;;  %4698 = vmatpush.bf16.msra.mxu3 %v6495_v31  ;;  %v7878_v19 = vld [vmem:[#allocation8 + $0xd4] sm:$0xf] }
 0x206   :  { %v8290_v33 = vld [vmem:[#allocation8 + $0xdac] sm:$0xf0]  ;;  %v5792_v20 = vld [vmem:[#allocation8 + $0xf0] sm:$0xf0] }
 0x207   :  { %v6462_v37 = vld [vmem:[#allocation8 + $0x610] sm:$0xf]  ;;  %v7423_v36 = vor.u32 %v8290_v33, %v7422_v26  ;;  %4724 = vmatpush.bf16.msrb.mxu1 %v7007_v24  ;;  %4758 = vmatpush.bf16.msra.mxu0 %v5891_v34  ;;  %v8721_v26 = vpop.f32.mrf.mxu0  ;;  %v5795_v28 = vor.u32 %v7878_v19, %v5792_v20  ;;  %v7950_v33 = vld [vmem:[#allocation8 + $0x314] sm:$0xf] }
 0x208   :  { %v8050_v50 = vld [vmem:[#allocation8 + $0x62c] sm:$0xf0]  ;;  %v6016_v6 = vld [vmem:[#allocation8 + $0x2b0] sm:$0xf0] }
 0x209   :  { %v6974_v40 = vld [vmem:[#allocation8 + $0xa10] sm:$0xf]  ;;  %v6463_v52 = vor.u32 %v8050_v50, %v6462_v37  ;;  %4732 = vmatpush.bf16.msrb.mxu2 %v7423_v36  ;;  %v6080_v37 = vld [vmem:[#allocation8 + $0x330] sm:$0xf0]  ;;  %v4480_v36 = vpop.f32.mrf.mxu2  ;;  %v6019_v17 = vor.u32 %v7934_v5, %v6016_v6 }
 0x20a   :  { %v8178_v41 = vld [vmem:[#allocation8 + $0xa2c] sm:$0xf0]  ;;  %v7870_v50 = vld [vmem:[#allocation8 + $0x94] sm:$0xf] }
 0x20b   :  { %v7710_v43 = vld [vmem:[#allocation8 + $0xfd0] sm:$0xf]  ;;  %v6975_v2 = vor.u32 %v8178_v41, %v6974_v40  ;;  %4699 = vmatpush.bf16.msra.mxu3 %v6463_v52  ;;  %4759 = vmatpush.bf16.msra.mxu0 %v5859_v62  ;;  %v8723_v52 = vpop.f32.mrf.mxu1  ;;  %v6051_v62 = vor.u32 %v7942_v47, %v6048_v49  ;;  %v7854_v7 = vld [vmem:[#allocation8 + $0x14] sm:$0xf] }
 0x20c   :  { %v8362_v44 = vld [vmem:[#allocation8 + $0xfec] sm:$0xf0]  ;;  %v6432_v19 = vld [vmem:[#allocation8 + $0x5f0] sm:$0xf0] }
 0x20d   :  { %v7711_v56 = vor.u32 %v8362_v44, %v7710_v43  ;;  %v7390_v57 = vld [vmem:[#allocation8 + $0xd50] sm:$0xf]  ;;  %4725 = vmatpush.bf16.msrb.mxu1 %v6975_v2  ;;  %v6083_v43 = vor.u32 %v7950_v33, %v6080_v37  ;;  %v5763_v44 = vor.u32 %v7870_v50, %v5760_v38  ;;  %v8158_v33 = vld [vmem:[#allocation8 + $0x994] sm:$0xf] }
 0x20e   :  { %v8282_v58 = vld [vmem:[#allocation8 + $0xd6c] sm:$0xf0]  ;;  %4700 = vmatmul.bf16.vlgmr.msra.gmra.mxu3 %v8636_v39  ;;  %v6912_v37 = vld [vmem:[#allocation8 + $0x9b0] sm:$0xf0] }
 0x20f   :  { %v7678_v63 = vld [vmem:[#allocation8 + $0xf90] sm:$0xf]  ;;  %v7391_v8 = vor.u32 %v8282_v58, %v7390_v57  ;;  %4744 = vmatpush.bf16.msrb.mxu3 %v7711_v56  ;;  %4760 = vmatpush.bf16.msra.mxu0 %v5827_v14  ;;  %v4481_v56 = vadd.f32 %v4480_v36, %v8710_v29  ;;  %v6915_v47 = vor.u32 %v8158_v33, %v6912_v37  ;;  %v8102_v49 = vld [vmem:[#allocation8 + $0x7d4] sm:$0xf] }
 0x210   :  { %v8354_v0 = vld [vmem:[#allocation8 + $0xfac] sm:$0xf0]  ;;  %4726 = vmatmul.bf16.vlgmr.msrb.gmra.mxu1 %v8644_v55  ;;  %v8094_v5 = vld [vmem:[#allocation8 + $0x794] sm:$0xf] }
 0x211   :  { %v7679_v10 = vor.u32 %v8354_v0, %v7678_v63  ;;  %v7358_v11 = vld [vmem:[#allocation8 + $0xd10] sm:$0xf]  ;;  %4770 = vmatpush.bf16.msra.mxu1 %v6179_v60  ;;  %4733 = vmatpush.bf16.msrb.mxu2 %v7391_v8  ;;  %v4508_v60 = vpop.f32.mrf.mxu0  ;;  %v5731_v63 = vor.u32 %v7862_v32, %v5728_v51  ;;  %v5696_v8 = vld [vmem:[#allocation8 + $0x30] sm:$0xf0] }
 0x212   :  { %v8274_v12 = vld [vmem:[#allocation8 + $0xd2c] sm:$0xf0]  ;;  %v5699_v18 = vor.u32 %v7854_v7, %v5696_v8  ;;  %v6688_v32 = vld [vmem:[#allocation8 + $0x7f0] sm:$0xf0] }
 0x213   :  { %v7646_v16 = vld [vmem:[#allocation8 + $0xf50] sm:$0xf]  ;;  %v7359_v21 = vor.u32 %v8274_v12, %v7358_v11  ;;  %4745 = vmatpush.bf16.msrb.mxu3 %v7679_v10  ;;  %4761 = vmatpush.bf16.msra.mxu0 %v5795_v28  ;;  %v8166_v11 = vld [vmem:[#allocation8 + $0x9d4] sm:$0xf]  ;;  %v4482_v28 = vpop.f32.mrf.mxu2 }
 0x214   :  { %v8346_v54 = vld [vmem:[#allocation8 + $0xf6c] sm:$0xf0]  ;;  %v6944_v12 = vld [vmem:[#allocation8 + $0x9f0] sm:$0xf0] }
 0x215   :  { %v7647_v4 = vor.u32 %v8346_v54, %v7646_v16  ;;  %v7326_v22 = vld [vmem:[#allocation8 + $0xcd0] sm:$0xf]  ;;  %4771 = vmatpush.bf16.msra.mxu1 %v6147_v13  ;;  %4734 = vmatpush.bf16.msrb.mxu2 %v7359_v21  ;;  %v8038_v16 = vld [vmem:[#allocation8 + $0x5d4] sm:$0xf]  ;;  %v4493_v54 = vpop.f32.mrf.mxu3 }
 0x216   :  { %v8266_v42 = vld [vmem:[#allocation8 + $0xcec] sm:$0xf0]  ;;  %v6435_v38 = vor.u32 %v8038_v16, %v6432_v19  ;;  %v8230_v51 = vld [vmem:[#allocation8 + $0xbd4] sm:$0xf] }
 0x217   :  { %v7614_v30 = vld [vmem:[#allocation8 + $0xf10] sm:$0xf]  ;;  %v7327_v24 = vor.u32 %v8266_v42, %v7326_v22  ;;  %4746 = vmatpush.bf16.msrb.mxu3 %v7647_v4  ;;  %4762 = vmatpush.bf16.msra.mxu0 %v5763_v44  ;;  %v4494_v4 = vadd.f32 %v4493_v54, %v4481_v56  ;;  %v6947_v22 = vor.u32 %v8166_v11, %v6944_v12  ;;  %v7926_v42 = vld [vmem:[#allocation8 + $0x254] sm:$0xf] }
 0x218   :  { %v8338_v31 = vld [vmem:[#allocation8 + $0xf2c] sm:$0xf0]  ;;  %v6880_v56 = vld [vmem:[#allocation8 + $0x970] sm:$0xf0] }
 0x219   :  { %v7615_v40 = vor.u32 %v8338_v31, %v7614_v30  ;;  %v7294_v41 = vld [vmem:[#allocation8 + $0xc90] sm:$0xf]  ;;  %4772 = vmatpush.bf16.msra.mxu1 %v6115_v27  ;;  %4735 = vmatpush.bf16.msrb.mxu2 %v7327_v24  ;;  %v5984_v27 = vld [vmem:[#allocation8 + $0x270] sm:$0xf0]  ;;  %v4521_v30 = vpop.f32.mrf.mxu1  ;;  %v4507_v50 = vadd.f32 %v8721_v26, %v4494_v4 }
 0x21a   :  { %v8258_v34 = vld [vmem:[#allocation8 + $0xcac] sm:$0xf0]  ;;  %v7200_v26 = vld [vmem:[#allocation8 + $0xbf0] sm:$0xf0]  ;;  %v4558_v30 = vpop.f32.mrf.mxu0 }
 0x21b   :  { %v7582_v45 = vld [vmem:[#allocation8 + $0xed0] sm:$0xf]  ;;  %v7295_v2 = vor.u32 %v8258_v34, %v7294_v41  ;;  %4747 = vmatpush.bf16.msrb.mxu3 %v7615_v40  ;;  %4763 = vmatpush.bf16.msra.mxu0 %v5731_v63  ;;  %v8030_v40 = vld [vmem:[#allocation8 + $0x594] sm:$0xf]  ;;  %v8728_v36 = vadd.f32 %v8723_v52, %v4507_v50  ;;  %v7203_v52 = vor.u32 %v8230_v51, %v7200_v26 }
 0x21c   :  { %v8330_v25 = vld [vmem:[#allocation8 + $0xeec] sm:$0xf0]  ;;  %v6400_v41 = vld [vmem:[#allocation8 + $0x5b0] sm:$0xf0] }
 0x21d   :  { %v7583_v57 = vor.u32 %v8330_v25, %v7582_v45  ;;  %v7262_v58 = vld [vmem:[#allocation8 + $0xc50] sm:$0xf]  ;;  %4773 = vmatpush.bf16.msra.mxu1 %v6083_v43  ;;  %4736 = vmatpush.bf16.msrb.mxu2 %v7295_v2  ;;  %v5987_v43 = vor.u32 %v7926_v42, %v5984_v27  ;;  %v7918_v45 = vld [vmem:[#allocation8 + $0x214] sm:$0xf] }
 0x21e   :  { %v8250_v59 = vld [vmem:[#allocation8 + $0xc6c] sm:$0xf0]  ;;  %v5952_v25 = vld [vmem:[#allocation8 + $0x230] sm:$0xf0] }
 0x21f   :  { %v7550_v0 = vld [vmem:[#allocation8 + $0xe90] sm:$0xf]  ;;  %v7263_v10 = vor.u32 %v8250_v59, %v7262_v58  ;;  %4748 = vmatpush.bf16.msrb.mxu3 %v7583_v57  ;;  %4764 = vmatpush.bf16.msra.mxu0 %v5699_v18  ;;  %v8150_v2 = vld [vmem:[#allocation8 + $0x954] sm:$0xf]  ;;  %v6403_v57 = vor.u32 %v8030_v40, %v6400_v41  ;;  %v4495_v59 = vpop.f32.mrf.mxu3  ;;  %v5955_v60 = vor.u32 %v7918_v45, %v5952_v25 }
 0x220   :  { %v8322_v1 = vld [vmem:[#allocation8 + $0xeac] sm:$0xf0]  ;;  %v8022_v63 = vld [vmem:[#allocation8 + $0x554] sm:$0xf] }
 0x221   :  { %v7551_v29 = vor.u32 %v8322_v1, %v7550_v0  ;;  %v7230_v13 = vld [vmem:[#allocation8 + $0xc10] sm:$0xf]  ;;  %4774 = vmatpush.bf16.msra.mxu1 %v6051_v62  ;;  %4737 = vmatpush.bf16.msrb.mxu2 %v7263_v10  ;;  %v6691_v62 = vor.u32 %v8102_v49, %v6688_v32  ;;  %v6368_v0 = vld [vmem:[#allocation8 + $0x570] sm:$0xf0]  ;;  %v6883_v1 = vor.u32 %v8150_v2, %v6880_v56 }
 0x222   :  { %v8242_v14 = vld [vmem:[#allocation8 + $0xc2c] sm:$0xf0]  ;;  %4765 = vmatmul.bf16.vlgmr.msra.gmra.mxu0 %v8625_v61  ;;  %v6656_v6 = vld [vmem:[#allocation8 + $0x7b0] sm:$0xf0]  ;;  %v6371_v12 = vor.u32 %v8022_v63, %v6368_v0 }
 0x223   :  { %v7518_v20 = vld [vmem:[#allocation8 + $0xe50] sm:$0xf]  ;;  %v7231_v31 = vor.u32 %v8242_v14, %v7230_v13  ;;  %4749 = vmatpush.bf16.msrb.mxu3 %v7551_v29  ;;  %4809 = vmatpush.bf16.msrb.mxu0 %v6947_v22  ;;  %v8222_v7 = vld [vmem:[#allocation8 + $0xb94] sm:$0xf]  ;;  %v6659_v29 = vor.u32 %v8094_v5, %v6656_v6  ;;  %v4560_v6 = vpop.f32.mrf.mxu0 }
 0x224   :  { %v8314_v21 = vld [vmem:[#allocation8 + $0xe6c] sm:$0xf0]  ;;  %v7168_v8 = vld [vmem:[#allocation8 + $0xbb0] sm:$0xf0] }
 0x225   :  { %v7519_v24 = vor.u32 %v8314_v21, %v7518_v20  ;;  %v7486_v34 = vld [vmem:[#allocation8 + $0xe10] sm:$0xf]  ;;  %4775 = vmatpush.bf16.msra.mxu1 %v6019_v17  ;;  %4738 = vmatpush.bf16.msrb.mxu2 %v7231_v31  ;;  %v8142_v10 = vld [vmem:[#allocation8 + $0x914] sm:$0xf]  ;;  %v7171_v16 = vor.u32 %v8222_v7, %v7168_v8 }
 0x226   :  { %v8306_v44 = vld [vmem:[#allocation8 + $0xe2c] sm:$0xf0]  ;;  %v6848_v11 = vld [vmem:[#allocation8 + $0x930] sm:$0xf0] }
 0x227   :  { %4750 = vmatpush.bf16.msrb.mxu3 %v7519_v24  ;;  %v7487_v58 = vor.u32 %v8306_v44, %v7486_v34  ;;  %4810 = vmatpush.bf16.msrb.mxu0 %v6915_v47  ;;  %v8014_v13 = vld [vmem:[#allocation8 + $0x514] sm:$0xf]  ;;  %v6851_v54 = vor.u32 %v8142_v10, %v6848_v11  ;;  %v1664_v34 = vperm.slane %v8704_v9, 3  ;;  %v4532_v9 = vpop.f32.mrf.mxu2 }
 0x228   :  { %4739 = vmatmul.bf16.vlgmr.msrb.gmra.mxu2 %v8651_v48  ;;  %v6336_v14 = vld [vmem:[#allocation8 + $0x530] sm:$0xf0] }
 0x229   :  { %4783 = vmatpush.bf16.msra.mxu2 %v6435_v38  ;;  %4776 = vmatpush.bf16.msra.mxu1 %v5987_v43  ;;  %v8086_v17 = vld [vmem:[#allocation8 + $0x754] sm:$0xf]  ;;  %v6339_v22 = vor.u32 %v8014_v13, %v6336_v14 }
 0x22a   :  { %v6624_v18 = vld [vmem:[#allocation8 + $0x770] sm:$0xf0] }
 0x22b   :  { %4751 = vmatpush.bf16.msrb.mxu3 %v7487_v58  ;;  %4811 = vmatpush.bf16.msrb.mxu0 %v6883_v1  ;;  %v8214_v19 = vld [vmem:[#allocation8 + $0xb54] sm:$0xf]  ;;  %v6627_v42 = vor.u32 %v8086_v17, %v6624_v18  ;;  %v4559_v58 = vadd.f32 %v4558_v30, %v1664_v34  ;;  %v4533_v1 = vadd.f32 %v4532_v9, %v8728_v36  ;;  %v5081_v30 = vperm.slane %v8708_v46, 2  ;;  %v5862_v9 = vld [vmem:[#allocation8 + $0x158] sm:$0xf] }
 0x22c   :  { %v7136_v20 = vld [vmem:[#allocation8 + $0xb70] sm:$0xf0] }
 0x22d   :  { %4784 = vmatpush.bf16.msra.mxu2 %v6403_v57  ;;  %4777 = vmatpush.bf16.msra.mxu1 %v5955_v60  ;;  %v8134_v21 = vld [vmem:[#allocation8 + $0x8d4] sm:$0xf]  ;;  %v7139_v31 = vor.u32 %v8214_v19, %v7136_v20  ;;  %v4571_v60 = vpop.f32.mrf.mxu1  ;;  %v4545_v20 = vpop.f32.mrf.mxu3 }
 0x22e   :  { %4752 = vmatmul.bf16.vlgmr.msrb.gmra.mxu3 %v8655_v15  ;;  %v6816_v4 = vld [vmem:[#allocation8 + $0x8f0] sm:$0xf0]  ;;  %v8736_v5 = vadd.f32 %v4571_v60, %v4559_v58  ;;  %v6182_v58 = vld [vmem:[#allocation8 + $0x3d8] sm:$0xf] }
 0x22f   :  { %4796 = vmatpush.bf16.msra.mxu3 %v6691_v62  ;;  %v8006_v27 = vld [vmem:[#allocation8 + $0x4d4] sm:$0xf]  ;;  %4812 = vmatpush.bf16.msrb.mxu0 %v6851_v54  ;;  %v6819_v33 = vor.u32 %v8134_v21, %v6816_v4  ;;  %v7915_v54 = vld [vmem:[#allocation8 + $0x1f4] sm:$0xf0]  ;;  %v4534_v34 = vpop.f32.mrf.mxu2 }
 0x230   :  { %4778 = vmatmul.bf16.vlgmr.msra.gmra.mxu1 %v8629_v23  ;;  %v6304_v28 = vld [vmem:[#allocation8 + $0x4f0] sm:$0xf0]  ;;  %v7899_v60 = vld [vmem:[#allocation8 + $0x174] sm:$0xf0] }
 0x231   :  { %4822 = vmatpush.bf16.msrb.mxu1 %v7203_v52  ;;  %4785 = vmatpush.bf16.msra.mxu2 %v6371_v12  ;;  %v8078_v37 = vld [vmem:[#allocation8 + $0x714] sm:$0xf]  ;;  %v6307_v43 = vor.u32 %v8006_v27, %v6304_v28  ;;  %v4546_v28 = vadd.f32 %v4545_v20, %v4533_v1  ;;  %v6086_v34 = vld [vmem:[#allocation8 + $0x318] sm:$0xf] }
 0x232   :  { %v6592_v50 = vld [vmem:[#allocation8 + $0x730] sm:$0xf0] }
 0x233   :  { %4797 = vmatpush.bf16.msra.mxu3 %v6659_v29  ;;  %v8206_v38 = vld [vmem:[#allocation8 + $0xb14] sm:$0xf]  ;;  %v6595_v44 = vor.u32 %v8078_v37, %v6592_v50  ;;  %4813 = vmatpush.bf16.msrb.mxu0 %v6819_v33 }
 0x234   :  { %v7104_v24 = vld [vmem:[#allocation8 + $0xb30] sm:$0xf0] }
 0x235   :  { %4823 = vmatpush.bf16.msrb.mxu1 %v7171_v16  ;;  %v8126_v40 = vld [vmem:[#allocation8 + $0x894] sm:$0xf]  ;;  %4786 = vmatpush.bf16.msra.mxu2 %v6339_v22  ;;  %v7107_v49 = vor.u32 %v8206_v38, %v7104_v24  ;;  %v5926_v16 = vld [vmem:[#allocation8 + $0x1d8] sm:$0xf] }
 0x236   :  { %v6784_v41 = vld [vmem:[#allocation8 + $0x8b0] sm:$0xf0]  ;;  %v5894_v24 = vld [vmem:[#allocation8 + $0x198] sm:$0xf] }
 0x237   :  { %4798 = vmatpush.bf16.msra.mxu3 %v6627_v42  ;;  %v7998_v45 = vld [vmem:[#allocation8 + $0x494] sm:$0xf]  ;;  %v6787_v32 = vor.u32 %v8126_v40, %v6784_v41  ;;  %v7907_v40 = vld [vmem:[#allocation8 + $0x1b4] sm:$0xf0]  ;;  %v5071_v41 = vmax.f32 %v4546_v28, 0.0 }
 0x238   :  { %v6272_v25 = vld [vmem:[#allocation8 + $0x4b0] sm:$0xf0]  ;;  %v7883_v28 = vld [vmem:[#allocation8 + $0xf4] sm:$0xf0] }
 0x239   :  { %v8070_v47 = vld [vmem:[#allocation8 + $0x6d4] sm:$0xf]  ;;  %4824 = vmatpush.bf16.msrb.mxu1 %v7139_v31  ;;  %4787 = vmatpush.bf16.msra.mxu2 %v6307_v43  ;;  %v6275_v59 = vor.u32 %v7998_v45, %v6272_v25  ;;  %v5927_v31 = vor.u32 %v7915_v54, %v5926_v16  ;;  %v4573_v43 = vpop.f32.mrf.mxu1  ;;  %v7891_v16 = vld [vmem:[#allocation8 + $0x134] sm:$0xf0] }
 0x23a   :  { %v6560_v51 = vld [vmem:[#allocation8 + $0x6f0] sm:$0xf0]  ;;  %4814 = vmatpush.bf16.msrb.mxu0 %v6787_v32  ;;  %v7955_v43 = vld [vmem:[#allocation8 + $0x334] sm:$0xf0] }
 0x23b   :  { %v8198_v26 = vld [vmem:[#allocation8 + $0xad4] sm:$0xf]  ;;  %4799 = vmatpush.bf16.msra.mxu3 %v6595_v44  ;;  %v6563_v62 = vor.u32 %v8070_v47, %v6560_v51 }
 0x23c   :  { %v7072_v2 = vld [vmem:[#allocation8 + $0xaf0] sm:$0xf0] }
 0x23d   :  { %v8118_v56 = vld [vmem:[#allocation8 + $0x854] sm:$0xf]  ;;  %v7075_v63 = vor.u32 %v8198_v26, %v7072_v2  ;;  %4825 = vmatpush.bf16.msrb.mxu1 %v7107_v49  ;;  %4788 = vmatpush.bf16.msra.mxu2 %v6275_v59  ;;  %v5097_v26 = vmul.f32 %v5081_v30, %v5071_v41  ;;  %v5895_v2 = vor.u32 %v7907_v40, %v5894_v24  ;;  %v7979_v59 = vld [vmem:[#allocation8 + $0x3f4] sm:$0xf0] }
 0x23e   :  { %v6752_v57 = vld [vmem:[#allocation8 + $0x870] sm:$0xf0] }
 0x23f   :  { %v7990_v0 = vld [vmem:[#allocation8 + $0x454] sm:$0xf]  ;;  %v6755_v7 = vor.u32 %v8118_v56, %v6752_v57  ;;  %4800 = vmatpush.bf16.msra.mxu3 %v6563_v62  ;;  %v8740_v62 = vadd.f32 %v8715_v53, %v5097_v26 }
 0x240   :  { %v6240_v52 = vld [vmem:[#allocation8 + $0x470] sm:$0xf0] }
 0x241   :  { %v8062_v8 = vld [vmem:[#allocation8 + $0x694] sm:$0xf]  ;;  %v6243_v14 = vor.u32 %v7990_v0, %v6240_v52  ;;  %4826 = vmatpush.bf16.msrb.mxu1 %v7075_v63  ;;  %4815 = vmatpush.bf16.msrb.mxu0 %v6755_v7  ;;  %v4547_v52 = vpop.f32.mrf.mxu3 }
 0x242   :  { %v6528_v10 = vld [vmem:[#allocation8 + $0x6b0] sm:$0xf0] }
 0x243   :  { %v8190_v11 = vld [vmem:[#allocation8 + $0xa94] sm:$0xf]  ;;  %v6531_v17 = vor.u32 %v8062_v8, %v6528_v10  ;;  %4789 = vmatpush.bf16.msra.mxu2 %v6243_v14  ;;  %v6183_v10 = vor.u32 %v7979_v59, %v6182_v58  ;;  %v5830_v14 = vld [vmem:[#allocation8 + $0x118] sm:$0xf] }
 0x244   :  { %v7040_v12 = vld [vmem:[#allocation8 + $0xab0] sm:$0xf0]  ;;  %v5831_v20 = vor.u32 %v7891_v16, %v5830_v14  ;;  %v5734_v58 = vld [vmem:[#allocation8 + $0x58] sm:$0xf] }
 0x245   :  { %v8110_v29 = vld [vmem:[#allocation8 + $0x814] sm:$0xf]  ;;  %v7043_v21 = vor.u32 %v8190_v11, %v7040_v12  ;;  %4801 = vmatpush.bf16.msra.mxu3 %v6531_v17  ;;  %v5863_v11 = vor.u32 %v7899_v60, %v5862_v9  ;;  %v7867_v59 = vld [vmem:[#allocation8 + $0x74] sm:$0xf0]  ;;  %v4584_v60 = vpop.f32.mrf.mxu2 }
 0x246   :  { %v6720_v13 = vld [vmem:[#allocation8 + $0x830] sm:$0xf0]  ;;  %v7859_v14 = vld [vmem:[#allocation8 + $0x34] sm:$0xf0] }
 0x247   :  { %v7982_v18 = vld [vmem:[#allocation8 + $0x414] sm:$0xf]  ;;  %v6723_v4 = vor.u32 %v8110_v29, %v6720_v13  ;;  %4827 = vmatpush.bf16.msrb.mxu1 %v7043_v21  ;;  %v6150_v29 = vld [vmem:[#allocation8 + $0x398] sm:$0xf] }
 0x248   :  { %v6208_v36 = vld [vmem:[#allocation8 + $0x430] sm:$0xf0]  ;;  %v7971_v13 = vld [vmem:[#allocation8 + $0x3b4] sm:$0xf0] }
 0x249   :  { %v8294_v19 = vld [vmem:[#allocation8 + $0xdd4] sm:$0xf]  ;;  %v6211_v50 = vor.u32 %v7982_v18, %v6208_v36  ;;  %4816 = vmatpush.bf16.msrb.mxu0 %v6723_v4 }
 0x24a   :  { %v7456_v22 = vld [vmem:[#allocation8 + $0xdf0] sm:$0xf0] }
 0x24b   :  { %v8054_v42 = vld [vmem:[#allocation8 + $0x654] sm:$0xf]  ;;  %v7459_v44 = vor.u32 %v8294_v19, %v7456_v22  ;;  %4790 = vmatpush.bf16.msra.mxu2 %v6211_v50  ;;  %v6151_v19 = vor.u32 %v7971_v13, %v6150_v29  ;;  %v6118_v22 = vld [vmem:[#allocation8 + $0x358] sm:$0xf]  ;;  %v8746_v50 = vpop.f32.mrf.mxu0 }
 0x24c   :  { %v6496_v27 = vld [vmem:[#allocation8 + $0x670] sm:$0xf0]  ;;  %4817 = vmatmul.bf16.vlgmr.msrb.gmra.mxu0 %v8641_v35  ;;  %v7939_v29 = vld [vmem:[#allocation8 + $0x2b4] sm:$0xf0] }
 0x24d   :  { %v8182_v33 = vld [vmem:[#allocation8 + $0xa54] sm:$0xf]  ;;  %v6499_v45 = vor.u32 %v8054_v42, %v6496_v27  ;;  %4861 = vmatpush.bf16.msra.mxu0 %v5927_v31  ;;  %v7963_v42 = vld [vmem:[#allocation8 + $0x374] sm:$0xf0] }
 0x24e   :  { %v7008_v37 = vld [vmem:[#allocation8 + $0xa70] sm:$0xf0]  ;;  %4791 = vmatmul.bf16.vlgmr.msra.gmra.mxu2 %v8633_v3  ;;  %v5798_v27 = vld [vmem:[#allocation8 + $0xd8] sm:$0xf] }
 0x24f   :  { %v8286_v38 = vld [vmem:[#allocation8 + $0xd94] sm:$0xf]  ;;  %v7011_v49 = vor.u32 %v8182_v33, %v7008_v37  ;;  %4835 = vmatpush.bf16.msrb.mxu2 %v7459_v44  ;;  %4802 = vmatpush.bf16.msra.mxu3 %v6499_v45  ;;  %v5799_v24 = vor.u32 %v7883_v28, %v5798_v27  ;;  %v5766_v44 = vld [vmem:[#allocation8 + $0x98] sm:$0xf] }
 0x250   :  { %v7424_v25 = vld [vmem:[#allocation8 + $0xdb0] sm:$0xf0]  ;;  %v7875_v45 = vld [vmem:[#allocation8 + $0xb4] sm:$0xf0] }
 0x251   :  { %v8046_v47 = vld [vmem:[#allocation8 + $0x614] sm:$0xf]  ;;  %v7427_v63 = vor.u32 %v8286_v38, %v7424_v25  ;;  %4828 = vmatpush.bf16.msrb.mxu1 %v7011_v49  ;;  %4862 = vmatpush.bf16.msra.mxu0 %v5895_v2  ;;  %v6119_v38 = vor.u32 %v7963_v42, %v6118_v22  ;;  %v5702_v13 = vld [vmem:[#allocation8 + $0x18] sm:$0xf] }
 0x252   :  { %v6464_v46 = vld [vmem:[#allocation8 + $0x630] sm:$0xf0]  ;;  %v8043_v22 = vld [vmem:[#allocation8 + $0x5f4] sm:$0xf0] }
 0x253   :  { %v8174_v32 = vld [vmem:[#allocation8 + $0xa14] sm:$0xf]  ;;  %v6467_v0 = vor.u32 %v8046_v47, %v6464_v46  ;;  %4836 = vmatpush.bf16.msrb.mxu2 %v7427_v63  ;;  %v4623_v63 = vpop.f32.mrf.mxu1 }
 0x254   :  { %v6976_v51 = vld [vmem:[#allocation8 + $0xa30] sm:$0xf0] }
 0x255   :  { %v8358_v56 = vld [vmem:[#allocation8 + $0xfd4] sm:$0xf]  ;;  %v6979_v1 = vor.u32 %v8174_v32, %v6976_v51  ;;  %4803 = vmatpush.bf16.msra.mxu3 %v6467_v0  ;;  %4863 = vmatpush.bf16.msra.mxu0 %v5863_v11  ;;  %v6087_v32 = vor.u32 %v7955_v43, %v6086_v34  ;;  %v5767_v51 = vor.u32 %v7875_v45, %v5766_v44  ;;  %v6406_v45 = vld [vmem:[#allocation8 + $0x598] sm:$0xf] }
 0x256   :  { %v7712_v57 = vld [vmem:[#allocation8 + $0xff0] sm:$0xf0] }
 0x257   :  { %v7715_v6 = vor.u32 %v8358_v56, %v7712_v57  ;;  %v8278_v7 = vld [vmem:[#allocation8 + $0xd54] sm:$0xf]  ;;  %4829 = vmatpush.bf16.msrb.mxu1 %v6979_v1  ;;  %v6054_v56 = vld [vmem:[#allocation8 + $0x2d8] sm:$0xf] }
 0x258   :  { %v7392_v8 = vld [vmem:[#allocation8 + $0xd70] sm:$0xf0]  ;;  %4804 = vmatmul.bf16.vlgmr.msra.gmra.mxu3 %v8636_v39  ;;  %v7947_v57 = vld [vmem:[#allocation8 + $0x2f4] sm:$0xf0] }
 0x259   :  { %v8350_v12 = vld [vmem:[#allocation8 + $0xf94] sm:$0xf]  ;;  %v7395_v54 = vor.u32 %v8278_v7, %v7392_v8  ;;  %4848 = vmatpush.bf16.msrb.mxu3 %v7715_v6  ;;  %4864 = vmatpush.bf16.msra.mxu0 %v5831_v20  ;;  %v4585_v6 = vadd.f32 %v4584_v60, %v8736_v5  ;;  %v4612_v7 = vpop.f32.mrf.mxu0  ;;  %v6055_v8 = vor.u32 %v7947_v57, %v6054_v56  ;;  %v6438_v5 = vld [vmem:[#allocation8 + $0x5d8] sm:$0xf]  ;;  %v4597_v20 = vpop.f32.mrf.mxu3 }
 0x25a   :  { %v7680_v53 = vld [vmem:[#allocation8 + $0xfb0] sm:$0xf0]  ;;  %4830 = vmatmul.bf16.vlgmr.msrb.gmra.mxu1 %v8644_v55  ;;  %v6439_v43 = vor.u32 %v8043_v22, %v6438_v5  ;;  %v8107_v56 = vld [vmem:[#allocation8 + $0x7f4] sm:$0xf0] }
 0x25b   :  { %v7683_v17 = vor.u32 %v8350_v12, %v7680_v53  ;;  %v8270_v18 = vld [vmem:[#allocation8 + $0xd14] sm:$0xf]  ;;  %4874 = vmatpush.bf16.msra.mxu1 %v6183_v10  ;;  %4837 = vmatpush.bf16.msrb.mxu2 %v7395_v54  ;;  %v5735_v10 = vor.u32 %v7867_v59, %v5734_v58  ;;  %v6022_v53 = vld [vmem:[#allocation8 + $0x298] sm:$0xf]  ;;  %v4598_v28 = vadd.f32 %v4597_v20, %v4585_v6  ;;  %v4625_v34 = vpop.f32.mrf.mxu1 }
 0x25c   :  { %v7360_v36 = vld [vmem:[#allocation8 + $0xd30] sm:$0xf0]  ;;  %v6950_v54 = vld [vmem:[#allocation8 + $0x9d8] sm:$0xf] }
 0x25d   :  { %v8342_v21 = vld [vmem:[#allocation8 + $0xf54] sm:$0xf]  ;;  %v7363_v30 = vor.u32 %v8270_v18, %v7360_v36  ;;  %4849 = vmatpush.bf16.msrb.mxu3 %v7683_v17  ;;  %4865 = vmatpush.bf16.msra.mxu0 %v5799_v24  ;;  %v8171_v17 = vld [vmem:[#allocation8 + $0x9f4] sm:$0xf0] }
 0x25e   :  { %v7648_v4 = vld [vmem:[#allocation8 + $0xf70] sm:$0xf0]  ;;  %v8163_v24 = vld [vmem:[#allocation8 + $0x9b4] sm:$0xf0] }
 0x25f   :  { %v7651_v31 = vor.u32 %v8342_v21, %v7648_v4  ;;  %v8262_v33 = vld [vmem:[#allocation8 + $0xcd4] sm:$0xf]  ;;  %4875 = vmatpush.bf16.msra.mxu1 %v6151_v19  ;;  %4838 = vmatpush.bf16.msrb.mxu2 %v7363_v30  ;;  %v6023_v21 = vor.u32 %v7939_v29, %v6022_v53  ;;  %v5703_v4 = vor.u32 %v7859_v14, %v5702_v13  ;;  %v7206_v57 = vld [vmem:[#allocation8 + $0xbd8] sm:$0xf] }
 0x260   :  { %v7328_v37 = vld [vmem:[#allocation8 + $0xcf0] sm:$0xf0]  ;;  %v6951_v30 = vor.u32 %v8171_v17, %v6950_v54  ;;  %v8235_v58 = vld [vmem:[#allocation8 + $0xbf4] sm:$0xf0] }
 0x261   :  { %v8334_v40 = vld [vmem:[#allocation8 + $0xf14] sm:$0xf]  ;;  %v7331_v25 = vor.u32 %v8262_v33, %v7328_v37  ;;  %4850 = vmatpush.bf16.msrb.mxu3 %v7651_v31  ;;  %4866 = vmatpush.bf16.msra.mxu0 %v5767_v51  ;;  %v5990_v31 = vld [vmem:[#allocation8 + $0x258] sm:$0xf] }
 0x262   :  { %v7616_v41 = vld [vmem:[#allocation8 + $0xf30] sm:$0xf0]  ;;  %v7931_v33 = vld [vmem:[#allocation8 + $0x274] sm:$0xf0] }
 0x263   :  { %v7619_v47 = vor.u32 %v8334_v40, %v7616_v41  ;;  %v8254_v49 = vld [vmem:[#allocation8 + $0xc94] sm:$0xf]  ;;  %4876 = vmatpush.bf16.msra.mxu1 %v6119_v38  ;;  %4839 = vmatpush.bf16.msrb.mxu2 %v7331_v25  ;;  %v6918_v38 = vld [vmem:[#allocation8 + $0x998] sm:$0xf]  ;;  %v4611_v40 = vadd.f32 %v8746_v50, %v4598_v28  ;;  %v4586_v41 = vpop.f32.mrf.mxu2 }
 0x264   :  { %v7296_v46 = vld [vmem:[#allocation8 + $0xcb0] sm:$0xf0]  ;;  %v8035_v25 = vld [vmem:[#allocation8 + $0x5b4] sm:$0xf0] }
 0x265   :  { %v8326_v26 = vld [vmem:[#allocation8 + $0xed4] sm:$0xf]  ;;  %v7299_v9 = vor.u32 %v8254_v49, %v7296_v46  ;;  %4851 = vmatpush.bf16.msrb.mxu3 %v7619_v47  ;;  %4867 = vmatpush.bf16.msra.mxu0 %v5735_v10  ;;  %v5991_v49 = vor.u32 %v7931_v33, %v5990_v31  ;;  %v7923_v51 = vld [vmem:[#allocation8 + $0x234] sm:$0xf0]  ;;  %v8750_v50 = vadd.f32 %v4623_v63, %v4611_v40  ;;  %v4662_v33 = vpop.f32.mrf.mxu0 }
 0x266   :  { %v7584_v2 = vld [vmem:[#allocation8 + $0xef0] sm:$0xf0]  ;;  %v6886_v59 = vld [vmem:[#allocation8 + $0x958] sm:$0xf]  ;;  %v6407_v60 = vor.u32 %v8035_v25, %v6406_v45  ;;  %v7207_v63 = vor.u32 %v8235_v58, %v7206_v57  ;;  %v8756_v45 = vld [vmem:[#allocation10] sm:$0xff] }
 0x267   :  { %v7587_v0 = vor.u32 %v8326_v26, %v7584_v2  ;;  %v8246_v52 = vld [vmem:[#allocation8 + $0xc54] sm:$0xf]  ;;  %4877 = vmatpush.bf16.msra.mxu1 %v6087_v32  ;;  %4840 = vmatpush.bf16.msrb.mxu2 %v7299_v9  ;;  %v5958_v32 = vld [vmem:[#allocation8 + $0x218] sm:$0xf]  ;;  %v6919_v26 = vor.u32 %v8163_v24, %v6918_v38  ;;  %v1665_v25 = vperm.slane %v8756_v45, 4 }
 0x268   :  { %v7264_v1 = vld [vmem:[#allocation8 + $0xc70] sm:$0xf0]  ;;  %v6694_v2 = vld [vmem:[#allocation8 + $0x7d8] sm:$0xf] }
 0x269   :  { %v8318_v11 = vld [vmem:[#allocation8 + $0xe94] sm:$0xf]  ;;  %v7267_v16 = vor.u32 %v8246_v52, %v7264_v1  ;;  %4852 = vmatpush.bf16.msrb.mxu3 %v7587_v0  ;;  %4868 = vmatpush.bf16.msra.mxu0 %v5703_v4  ;;  %v8155_v9 = vld [vmem:[#allocation8 + $0x974] sm:$0xf0]  ;;  %v4599_v52 = vpop.f32.mrf.mxu3  ;;  %v5959_v1 = vor.u32 %v7923_v51, %v5958_v32  ;;  %v6695_v6 = vor.u32 %v8107_v56, %v6694_v2 }
 0x26a   :  { %v7552_v12 = vld [vmem:[#allocation8 + $0xeb0] sm:$0xf0]  ;;  %v6374_v7 = vld [vmem:[#allocation8 + $0x558] sm:$0xf]  ;;  %v6887_v10 = vor.u32 %v8155_v9, %v6886_v59 }
 0x26b   :  { %v7555_v18 = vor.u32 %v8318_v11, %v7552_v12  ;;  %v8238_v36 = vld [vmem:[#allocation8 + $0xc14] sm:$0xf]  ;;  %4878 = vmatpush.bf16.msra.mxu1 %v6055_v8  ;;  %4841 = vmatpush.bf16.msrb.mxu2 %v7267_v16  ;;  %v8027_v8 = vld [vmem:[#allocation8 + $0x574] sm:$0xf0]  ;;  %v4636_v52 = vpop.f32.mrf.mxu2 }
 0x26c   :  { %v7232_v19 = vld [vmem:[#allocation8 + $0xc30] sm:$0xf0]  ;;  %4869 = vmatmul.bf16.vlgmr.msra.gmra.mxu0 %v8625_v61  ;;  %v6662_v11 = vld [vmem:[#allocation8 + $0x798] sm:$0xf]  ;;  %v6375_v16 = vor.u32 %v8027_v8, %v6374_v7 }
 0x26d   :  { %v8310_v42 = vld [vmem:[#allocation8 + $0xe54] sm:$0xf]  ;;  %v7235_v37 = vor.u32 %v8238_v36, %v7232_v19  ;;  %4853 = vmatpush.bf16.msrb.mxu3 %v7555_v18  ;;  %4913 = vmatpush.bf16.msrb.mxu0 %v6951_v30  ;;  %v8099_v12 = vld [vmem:[#allocation8 + $0x7b4] sm:$0xf0] }
 0x26e   :  { %v7520_v27 = vld [vmem:[#allocation8 + $0xe70] sm:$0xf0]  ;;  %v7174_v53 = vld [vmem:[#allocation8 + $0xb98] sm:$0xf]  ;;  %v6663_v54 = vor.u32 %v8099_v12, %v6662_v11  ;;  %v4664_v12 = vpop.f32.mrf.mxu0 }
 0x26f   :  { %v7523_v44 = vor.u32 %v8310_v42, %v7520_v27  ;;  %v8302_v47 = vld [vmem:[#allocation8 + $0xe14] sm:$0xf]  ;;  %4879 = vmatpush.bf16.msra.mxu1 %v6023_v21  ;;  %4842 = vmatpush.bf16.msrb.mxu2 %v7235_v37  ;;  %v8227_v29 = vld [vmem:[#allocation8 + $0xbb4] sm:$0xf0] }
 0x270   :  { %v7488_v46 = vld [vmem:[#allocation8 + $0xe30] sm:$0xf0]  ;;  %v6854_v13 = vld [vmem:[#allocation8 + $0x918] sm:$0xf]  ;;  %v7175_v36 = vor.u32 %v8227_v29, %v7174_v53 }
 0x271   :  { %4854 = vmatpush.bf16.msrb.mxu3 %v7523_v44  ;;  %v7491_v0 = vor.u32 %v8302_v47, %v7488_v46  ;;  %4914 = vmatpush.bf16.msrb.mxu0 %v6919_v26  ;;  %v8147_v14 = vld [vmem:[#allocation8 + $0x934] sm:$0xf0] }
 0x272   :  { %4843 = vmatmul.bf16.vlgmr.msrb.gmra.mxu2 %v8651_v48  ;;  %v6342_v17 = vld [vmem:[#allocation8 + $0x518] sm:$0xf]  ;;  %v6855_v19 = vor.u32 %v8147_v14, %v6854_v13 }
 0x273   :  { %4887 = vmatpush.bf16.msra.mxu2 %v6439_v43  ;;  %4880 = vmatpush.bf16.msra.mxu1 %v5991_v49  ;;  %v8019_v18 = vld [vmem:[#allocation8 + $0x534] sm:$0xf0] }
 0x274   :  { %v6630_v5 = vld [vmem:[#allocation8 + $0x758] sm:$0xf]  ;;  %v6343_v27 = vor.u32 %v8019_v18, %v6342_v17 }
 0x275   :  { %4855 = vmatpush.bf16.msrb.mxu3 %v7491_v0  ;;  %4915 = vmatpush.bf16.msrb.mxu0 %v6887_v10  ;;  %v8091_v20 = vld [vmem:[#allocation8 + $0x774] sm:$0xf0]  ;;  %v4637_v10 = vadd.f32 %v4636_v52, %v8750_v50  ;;  %v7975_v52 = vld [vmem:[#allocation8 + $0x3dc] sm:$0xf] }
 0x276   :  { %v7142_v21 = vld [vmem:[#allocation8 + $0xb58] sm:$0xf]  ;;  %v6631_v28 = vor.u32 %v8091_v20, %v6630_v5 }
 0x277   :  { %4888 = vmatpush.bf16.msra.mxu2 %v6407_v60  ;;  %4881 = vmatpush.bf16.msra.mxu1 %v5959_v1  ;;  %v8219_v4 = vld [vmem:[#allocation8 + $0xb74] sm:$0xf0]  ;;  %v4663_v60 = vadd.f32 %v4662_v33, %v1665_v25  ;;  %v4675_v1 = vpop.f32.mrf.mxu1  ;;  %v8762_v33 = vld [vmem:[#allocation11] sm:$0xff] }
 0x278   :  { %4856 = vmatmul.bf16.vlgmr.msrb.gmra.mxu3 %v8655_v15  ;;  %v6822_v22 = vld [vmem:[#allocation8 + $0x8d8] sm:$0xf]  ;;  %v7143_v37 = vor.u32 %v8219_v4, %v7142_v21  ;;  %v4649_v4 = vpop.f32.mrf.mxu3 }
 0x279   :  { %4900 = vmatpush.bf16.msra.mxu3 %v6695_v6  ;;  %v8139_v42 = vld [vmem:[#allocation8 + $0x8f4] sm:$0xf0]  ;;  %4916 = vmatpush.bf16.msrb.mxu0 %v6855_v19  ;;  %v8760_v11 = vadd.f32 %v4675_v1, %v4663_v60  ;;  %v5928_v19 = vld [vmem:[#allocation8 + $0x1f8] sm:$0xf0] }
 0x27a   :  { %4882 = vmatmul.bf16.vlgmr.msra.gmra.mxu1 %v8629_v23  ;;  %v6310_v30 = vld [vmem:[#allocation8 + $0x4d8] sm:$0xf]  ;;  %v6823_v38 = vor.u32 %v8139_v42, %v6822_v22  ;;  %v6184_v1 = vld [vmem:[#allocation8 + $0x3f8] sm:$0xf0] }
 0x27b   :  { %4926 = vmatpush.bf16.msrb.mxu1 %v7207_v63  ;;  %4889 = vmatpush.bf16.msra.mxu2 %v6375_v16  ;;  %v8011_v31 = vld [vmem:[#allocation8 + $0x4f4] sm:$0xf0] }
 0x27c   :  { %v6598_v24 = vld [vmem:[#allocation8 + $0x718] sm:$0xf]  ;;  %v6311_v47 = vor.u32 %v8011_v31, %v6310_v30  ;;  %v4650_v31 = vadd.f32 %v4649_v4, %v4637_v10 }
 0x27d   :  { %4901 = vmatpush.bf16.msra.mxu3 %v6663_v54  ;;  %v8083_v40 = vld [vmem:[#allocation8 + $0x734] sm:$0xf0]  ;;  %4917 = vmatpush.bf16.msrb.mxu0 %v6823_v38 }
 0x27e   :  { %v7110_v41 = vld [vmem:[#allocation8 + $0xb18] sm:$0xf]  ;;  %v6599_v49 = vor.u32 %v8083_v40, %v6598_v24  ;;  %v5072_v25 = vmax.f32 %v4650_v31, 0.0  ;;  %v6120_v31 = vld [vmem:[#allocation8 + $0x378] sm:$0xf0] }
 0x27f   :  { %4927 = vmatpush.bf16.msrb.mxu1 %v7175_v36  ;;  %v8211_v34 = vld [vmem:[#allocation8 + $0xb34] sm:$0xf0]  ;;  %4890 = vmatpush.bf16.msra.mxu2 %v6343_v27  ;;  %v7911_v36 = vld [vmem:[#allocation8 + $0x1dc] sm:$0xf] }
 0x280   :  { %v6790_v43 = vld [vmem:[#allocation8 + $0x898] sm:$0xf]  ;;  %v7111_v26 = vor.u32 %v8211_v34, %v7110_v41  ;;  %v5931_v38 = vor.u32 %v7911_v36, %v5928_v19  ;;  %v4651_v12 = vpop.f32.mrf.mxu3  ;;  %v6152_v36 = vld [vmem:[#allocation8 + $0x3b8] sm:$0xf0] }
 0x281   :  { %v8131_v44 = vld [vmem:[#allocation8 + $0x8b4] sm:$0xf0]  ;;  %4902 = vmatpush.bf16.msra.mxu3 %v6631_v28  ;;  %v7887_v19 = vld [vmem:[#allocation8 + $0x11c] sm:$0xf] }
 0x282   :  { %v6278_v46 = vld [vmem:[#allocation8 + $0x498] sm:$0xf]  ;;  %v6791_v2 = vor.u32 %v8131_v44, %v6790_v43  ;;  %v7903_v43 = vld [vmem:[#allocation8 + $0x19c] sm:$0xf] }
 0x283   :  { %v8003_v32 = vld [vmem:[#allocation8 + $0x4b4] sm:$0xf0]  ;;  %4928 = vmatpush.bf16.msrb.mxu1 %v7143_v37  ;;  %4891 = vmatpush.bf16.msra.mxu2 %v6311_v47  ;;  %v5082_v37 = vperm.slane %v8762_v33, 3  ;;  %v5896_v44 = vld [vmem:[#allocation8 + $0x1b8] sm:$0xf0]  ;;  %v4638_v47 = vpop.f32.mrf.mxu2 }
 0x284   :  { %v6566_v51 = vld [vmem:[#allocation8 + $0x6d8] sm:$0xf]  ;;  %v6279_v0 = vor.u32 %v8003_v32, %v6278_v46  ;;  %4918 = vmatpush.bf16.msrb.mxu0 %v6791_v2 }
 0x285   :  { %v8075_v56 = vld [vmem:[#allocation8 + $0x6f4] sm:$0xf0]  ;;  %4903 = vmatpush.bf16.msra.mxu3 %v6599_v49  ;;  %v4677_v49 = vpop.f32.mrf.mxu1 }
 0x286   :  { %v7078_v57 = vld [vmem:[#allocation8 + $0xad8] sm:$0xf]  ;;  %v6567_v6 = vor.u32 %v8075_v56, %v6566_v51 }
 0x287   :  { %v8203_v58 = vld [vmem:[#allocation8 + $0xaf4] sm:$0xf0]  ;;  %4929 = vmatpush.bf16.msrb.mxu1 %v7111_v26  ;;  %4892 = vmatpush.bf16.msra.mxu2 %v6279_v0 }
 0x288   :  { %v6758_v59 = vld [vmem:[#allocation8 + $0x858] sm:$0xf]  ;;  %v7079_v7 = vor.u32 %v8203_v58, %v7078_v57 }
 0x289   :  { %v8123_v9 = vld [vmem:[#allocation8 + $0x874] sm:$0xf0]  ;;  %4904 = vmatpush.bf16.msra.mxu3 %v6567_v6  ;;  %v7895_v6 = vld [vmem:[#allocation8 + $0x15c] sm:$0xf] }
 0x28a   :  { %v6246_v8 = vld [vmem:[#allocation8 + $0x458] sm:$0xf]  ;;  %v6759_v53 = vor.u32 %v8123_v9, %v6758_v59  ;;  %v5098_v59 = vmul.f32 %v5082_v37, %v5072_v25  ;;  %v5899_v9 = vor.u32 %v7903_v43, %v5896_v44  ;;  %v7879_v37 = vld [vmem:[#allocation8 + $0xdc] sm:$0xf]  ;;  %v8772_v43 = vpop.f32.mrf.mxu0 }
 0x28b   :  { %v7995_v63 = vld [vmem:[#allocation8 + $0x474] sm:$0xf0]  ;;  %4930 = vmatpush.bf16.msrb.mxu1 %v7079_v7  ;;  %v5864_v7 = vld [vmem:[#allocation8 + $0x178] sm:$0xf0] }
 0x28c   :  { %v6534_v29 = vld [vmem:[#allocation8 + $0x698] sm:$0xf]  ;;  %v6247_v18 = vor.u32 %v7995_v63, %v6246_v8  ;;  %4919 = vmatpush.bf16.msrb.mxu0 %v6759_v53  ;;  %v8766_v8 = vadd.f32 %v8740_v62, %v5098_v59 }
 0x28d   :  { %v8067_v13 = vld [vmem:[#allocation8 + $0x6b4] sm:$0xf0]  ;;  %v4727_v12 = vpop.f32.mrf.mxu1 }
 0x28e   :  { %v7046_v14 = vld [vmem:[#allocation8 + $0xa98] sm:$0xf]  ;;  %v6535_v5 = vor.u32 %v8067_v13, %v6534_v29  ;;  %4893 = vmatpush.bf16.msra.mxu2 %v6247_v18  ;;  %v7967_v18 = vld [vmem:[#allocation8 + $0x39c] sm:$0xf] }
 0x28f   :  { %v8195_v16 = vld [vmem:[#allocation8 + $0xab4] sm:$0xf0] }
 0x290   :  { %v6726_v54 = vld [vmem:[#allocation8 + $0x818] sm:$0xf]  ;;  %v7047_v22 = vor.u32 %v8195_v16, %v7046_v14  ;;  %4905 = vmatpush.bf16.msra.mxu3 %v6535_v5  ;;  %v6187_v16 = vor.u32 %v7975_v52, %v6184_v1  ;;  %v5832_v5 = vld [vmem:[#allocation8 + $0x138] sm:$0xf0] }
 0x291   :  { %v8115_v17 = vld [vmem:[#allocation8 + $0x834] sm:$0xf0]  ;;  %v7943_v52 = vld [vmem:[#allocation8 + $0x2dc] sm:$0xf] }
 0x292   :  { %v6214_v20 = vld [vmem:[#allocation8 + $0x418] sm:$0xf]  ;;  %v6727_v42 = vor.u32 %v8115_v17, %v6726_v54  ;;  %4931 = vmatpush.bf16.msrb.mxu1 %v7047_v22  ;;  %v5867_v54 = vor.u32 %v7895_v6, %v5864_v7  ;;  %v6155_v22 = vor.u32 %v7967_v18, %v6152_v36  ;;  %v6056_v1 = vld [vmem:[#allocation8 + $0x2f8] sm:$0xf0] }
 0x293   :  { %v7987_v50 = vld [vmem:[#allocation8 + $0x434] sm:$0xf0]  ;;  %v7863_v6 = vld [vmem:[#allocation8 + $0x5c] sm:$0xf] }
 0x294   :  { %v7462_v21 = vld [vmem:[#allocation8 + $0xdd8] sm:$0xf]  ;;  %v6215_v41 = vor.u32 %v7987_v50, %v6214_v20  ;;  %4920 = vmatpush.bf16.msrb.mxu0 %v6727_v42  ;;  %v5835_v42 = vor.u32 %v7887_v19, %v5832_v5  ;;  %v5736_v7 = vld [vmem:[#allocation8 + $0x78] sm:$0xf0] }
 0x295   :  { %v8299_v27 = vld [vmem:[#allocation8 + $0xdf4] sm:$0xf0]  ;;  %v7935_v36 = vld [vmem:[#allocation8 + $0x29c] sm:$0xf] }
 0x296   :  { %v6502_v28 = vld [vmem:[#allocation8 + $0x658] sm:$0xf]  ;;  %v7463_v46 = vor.u32 %v8299_v27, %v7462_v21  ;;  %4894 = vmatpush.bf16.msra.mxu2 %v6215_v41  ;;  %v6024_v19 = vld [vmem:[#allocation8 + $0x2b8] sm:$0xf0] }
 0x297   :  { %v8059_v30 = vld [vmem:[#allocation8 + $0x674] sm:$0xf0]  ;;  %4921 = vmatmul.bf16.vlgmr.msrb.gmra.mxu0 %v8641_v35  ;;  %v7855_v5 = vld [vmem:[#allocation8 + $0x1c] sm:$0xf] }
 0x298   :  { %v7014_v24 = vld [vmem:[#allocation8 + $0xa58] sm:$0xf]  ;;  %v6503_v32 = vor.u32 %v8059_v30, %v6502_v28  ;;  %4965 = vmatpush.bf16.msra.mxu0 %v5931_v38  ;;  %v7959_v30 = vld [vmem:[#allocation8 + $0x35c] sm:$0xf] }
 0x299   :  { %v8187_v40 = vld [vmem:[#allocation8 + $0xa74] sm:$0xf0]  ;;  %4895 = vmatmul.bf16.vlgmr.msra.gmra.mxu2 %v8633_v3  ;;  %v5800_v38 = vld [vmem:[#allocation8 + $0xf8] sm:$0xf0]  ;;  %v6123_v44 = vor.u32 %v7959_v30, %v6120_v31  ;;  %v6027_v30 = vor.u32 %v7935_v36, %v6024_v19 }
 0x29a   :  { %v7430_v34 = vld [vmem:[#allocation8 + $0xd98] sm:$0xf]  ;;  %v7015_v2 = vor.u32 %v8187_v40, %v7014_v24  ;;  %4939 = vmatpush.bf16.msrb.mxu2 %v7463_v46  ;;  %4906 = vmatpush.bf16.msra.mxu3 %v6503_v32  ;;  %v5803_v25 = vor.u32 %v7879_v37, %v5800_v38  ;;  %v7951_v46 = vld [vmem:[#allocation8 + $0x31c] sm:$0xf] }
 0x29b   :  { %v8291_v51 = vld [vmem:[#allocation8 + $0xdb4] sm:$0xf0]  ;;  %v6088_v32 = vld [vmem:[#allocation8 + $0x338] sm:$0xf0] }
 0x29c   :  { %v6470_v26 = vld [vmem:[#allocation8 + $0x618] sm:$0xf]  ;;  %v7431_v63 = vor.u32 %v8291_v51, %v7430_v34  ;;  %4932 = vmatpush.bf16.msrb.mxu1 %v7015_v2  ;;  %4966 = vmatpush.bf16.msra.mxu0 %v5899_v9  ;;  %v7871_v51 = vld [vmem:[#allocation8 + $0x9c] sm:$0xf]  ;;  %v6091_v59 = vor.u32 %v7951_v46, %v6088_v32 }
 0x29d   :  { %v8051_v56 = vld [vmem:[#allocation8 + $0x634] sm:$0xf0]  ;;  %v6440_v37 = vld [vmem:[#allocation8 + $0x5f8] sm:$0xf0] }
 0x29e   :  { %v6982_v57 = vld [vmem:[#allocation8 + $0xa18] sm:$0xf]  ;;  %v6471_v10 = vor.u32 %v8051_v56, %v6470_v26  ;;  %4940 = vmatpush.bf16.msrb.mxu2 %v7431_v63  ;;  %v5768_v26 = vld [vmem:[#allocation8 + $0xb8] sm:$0xf0] }
 0x29f   :  { %v8179_v58 = vld [vmem:[#allocation8 + $0xa34] sm:$0xf0]  ;;  %v5771_v9 = vor.u32 %v7871_v51, %v5768_v26  ;;  %v4729_v51 = vpop.f32.mrf.mxu1  ;;  %v8095_v36 = vld [vmem:[#allocation8 + $0x79c] sm:$0xf] }
 0x2a0   :  { %v7718_v60 = vld [vmem:[#allocation8 + $0xfd8] sm:$0xf]  ;;  %v6983_v53 = vor.u32 %v8179_v58, %v6982_v57  ;;  %4907 = vmatpush.bf16.msra.mxu3 %v6471_v10  ;;  %4967 = vmatpush.bf16.msra.mxu0 %v5867_v54  ;;  %v4688_v10 = vpop.f32.mrf.mxu2  ;;  %v6059_v54 = vor.u32 %v7943_v52, %v6056_v1  ;;  %v8103_v1 = vld [vmem:[#allocation8 + $0x7dc] sm:$0xf] }
 0x2a1   :  { %v8363_v0 = vld [vmem:[#allocation8 + $0xff4] sm:$0xf0]  ;;  %v6664_v19 = vld [vmem:[#allocation8 + $0x7b8] sm:$0xf0] }
 0x2a2   :  { %v7719_v29 = vor.u32 %v8363_v0, %v7718_v60  ;;  %v7398_v13 = vld [vmem:[#allocation8 + $0xd58] sm:$0xf]  ;;  %4933 = vmatpush.bf16.msrb.mxu1 %v6983_v53  ;;  %v8207_v51 = vld [vmem:[#allocation8 + $0xb1c] sm:$0xf] }
 0x2a3   :  { %v8283_v14 = vld [vmem:[#allocation8 + $0xd74] sm:$0xf0]  ;;  %4908 = vmatmul.bf16.vlgmr.msra.gmra.mxu3 %v8636_v39 }
 0x2a4   :  { %v7686_v17 = vld [vmem:[#allocation8 + $0xf98] sm:$0xf]  ;;  %v7399_v20 = vor.u32 %v8283_v14, %v7398_v13  ;;  %4952 = vmatpush.bf16.msrb.mxu3 %v7719_v29  ;;  %4968 = vmatpush.bf16.msra.mxu0 %v5835_v42  ;;  %v4689_v14 = vadd.f32 %v4688_v10, %v8760_v11  ;;  %v8039_v11 = vld [vmem:[#allocation8 + $0x5dc] sm:$0xf] }
 0x2a5   :  { %v8355_v62 = vld [vmem:[#allocation8 + $0xfb4] sm:$0xf0]  ;;  %4934 = vmatmul.bf16.vlgmr.msrb.gmra.mxu1 %v8644_v55  ;;  %v6443_v26 = vor.u32 %v8039_v11, %v6440_v37  ;;  %v8151_v10 = vld [vmem:[#allocation8 + $0x95c] sm:$0xf] }
 0x2a6   :  { %v7687_v50 = vor.u32 %v8355_v62, %v7686_v17  ;;  %v7366_v21 = vld [vmem:[#allocation8 + $0xd18] sm:$0xf]  ;;  %4978 = vmatpush.bf16.msra.mxu1 %v6187_v16  ;;  %4941 = vmatpush.bf16.msrb.mxu2 %v7399_v20  ;;  %v4716_v16 = vpop.f32.mrf.mxu0  ;;  %v5739_v17 = vor.u32 %v7863_v6, %v5736_v7  ;;  %v5704_v20 = vld [vmem:[#allocation8 + $0x38] sm:$0xf0] }
 0x2a7   :  { %v8275_v4 = vld [vmem:[#allocation8 + $0xd34] sm:$0xf0]  ;;  %v5707_v31 = vor.u32 %v7855_v5, %v5704_v20  ;;  %v6696_v6 = vld [vmem:[#allocation8 + $0x7f8] sm:$0xf0] }
 0x2a8   :  { %v7654_v27 = vld [vmem:[#allocation8 + $0xf58] sm:$0xf]  ;;  %v7367_v24 = vor.u32 %v8275_v4, %v7366_v21  ;;  %4953 = vmatpush.bf16.msrb.mxu3 %v7687_v50  ;;  %4969 = vmatpush.bf16.msra.mxu0 %v5803_v25  ;;  %v8167_v21 = vld [vmem:[#allocation8 + $0x9dc] sm:$0xf]  ;;  %v4690_v32 = vpop.f32.mrf.mxu2 }
 0x2a9   :  { %v8347_v28 = vld [vmem:[#allocation8 + $0xf74] sm:$0xf0]  ;;  %v6952_v4 = vld [vmem:[#allocation8 + $0x9f8] sm:$0xf0] }
 0x2aa   :  { %v7655_v40 = vor.u32 %v8347_v28, %v7654_v27  ;;  %v7334_v41 = vld [vmem:[#allocation8 + $0xcd8] sm:$0xf]  ;;  %4979 = vmatpush.bf16.msra.mxu1 %v6155_v22  ;;  %4942 = vmatpush.bf16.msrb.mxu2 %v7367_v24  ;;  %v4701_v28 = vpop.f32.mrf.mxu3  ;;  %v8231_v7 = vld [vmem:[#allocation8 + $0xbdc] sm:$0xf] }
 0x2ab   :  { %v8267_v34 = vld [vmem:[#allocation8 + $0xcf4] sm:$0xf0]  ;;  %v8223_v5 = vld [vmem:[#allocation8 + $0xb9c] sm:$0xf] }
 0x2ac   :  { %v7622_v47 = vld [vmem:[#allocation8 + $0xf18] sm:$0xf]  ;;  %v7335_v2 = vor.u32 %v8267_v34, %v7334_v41  ;;  %4954 = vmatpush.bf16.msrb.mxu3 %v7655_v40  ;;  %4970 = vmatpush.bf16.msra.mxu0 %v5771_v9  ;;  %v4702_v40 = vadd.f32 %v4701_v28, %v4689_v14  ;;  %v6955_v41 = vor.u32 %v8167_v21, %v6952_v4  ;;  %v7927_v34 = vld [vmem:[#allocation8 + $0x25c] sm:$0xf] }
 0x2ad   :  { %v8339_v49 = vld [vmem:[#allocation8 + $0xf34] sm:$0xf0]  ;;  %v7176_v20 = vld [vmem:[#allocation8 + $0xbb8] sm:$0xf0] }
 0x2ae   :  { %v7623_v56 = vor.u32 %v8339_v49, %v7622_v47  ;;  %v7302_v57 = vld [vmem:[#allocation8 + $0xc98] sm:$0xf]  ;;  %4980 = vmatpush.bf16.msra.mxu1 %v6123_v44  ;;  %4943 = vmatpush.bf16.msrb.mxu2 %v7335_v2  ;;  %v5992_v44 = vld [vmem:[#allocation8 + $0x278] sm:$0xf0]  ;;  %v4715_v46 = vadd.f32 %v8772_v43, %v4702_v40 }
 0x2af   :  { %v8259_v58 = vld [vmem:[#allocation8 + $0xcb4] sm:$0xf0]  ;;  %v8159_v47 = vld [vmem:[#allocation8 + $0x99c] sm:$0xf] }
 0x2b0   :  { %v7590_v60 = vld [vmem:[#allocation8 + $0xed8] sm:$0xf]  ;;  %v7303_v63 = vor.u32 %v8259_v58, %v7302_v57  ;;  %4955 = vmatpush.bf16.msrb.mxu3 %v7623_v56  ;;  %4971 = vmatpush.bf16.msra.mxu0 %v5739_v17  ;;  %v6920_v49 = vld [vmem:[#allocation8 + $0x9b8] sm:$0xf0]  ;;  %v8776_v43 = vadd.f32 %v4727_v12, %v4715_v46 }
 0x2b1   :  { %v8331_v0 = vld [vmem:[#allocation8 + $0xef4] sm:$0xf0]  ;;  %v8031_v56 = vld [vmem:[#allocation8 + $0x59c] sm:$0xf]  ;;  %v6923_v52 = vor.u32 %v8159_v47, %v6920_v49 }
 0x2b2   :  { %v7591_v53 = vor.u32 %v8331_v0, %v7590_v60  ;;  %v7270_v29 = vld [vmem:[#allocation8 + $0xc58] sm:$0xf]  ;;  %4981 = vmatpush.bf16.msra.mxu1 %v6091_v59  ;;  %4944 = vmatpush.bf16.msrb.mxu2 %v7303_v63  ;;  %v6408_v57 = vld [vmem:[#allocation8 + $0x5b8] sm:$0xf0]  ;;  %v5995_v59 = vor.u32 %v7927_v34, %v5992_v44  ;;  %v4703_v14 = vpop.f32.mrf.mxu3 }
 0x2b3   :  { %v8251_v13 = vld [vmem:[#allocation8 + $0xc74] sm:$0xf0]  ;;  %v7919_v60 = vld [vmem:[#allocation8 + $0x21c] sm:$0xf]  ;;  %v4779_v14 = vpop.f32.mrf.mxu1 }
 0x2b4   :  { %v7558_v62 = vld [vmem:[#allocation8 + $0xe98] sm:$0xf]  ;;  %v7271_v50 = vor.u32 %v8251_v13, %v7270_v29  ;;  %4956 = vmatpush.bf16.msrb.mxu3 %v7591_v53  ;;  %4972 = vmatpush.bf16.msra.mxu0 %v5707_v31  ;;  %v5960_v0 = vld [vmem:[#allocation8 + $0x238] sm:$0xf0]  ;;  %v6411_v29 = vor.u32 %v8031_v56, %v6408_v57  ;;  %v1666_v57 = vperm.slane %v8756_v45, 5 }
 0x2b5   :  { %v8323_v18 = vld [vmem:[#allocation8 + $0xeb4] sm:$0xf0]  ;;  %v7208_v63 = vld [vmem:[#allocation8 + $0xbf8] sm:$0xf0]  ;;  %v5963_v16 = vor.u32 %v7919_v60, %v5960_v0 }
 0x2b6   :  { %v7559_v22 = vor.u32 %v8323_v18, %v7558_v62  ;;  %v7238_v42 = vld [vmem:[#allocation8 + $0xc18] sm:$0xf]  ;;  %4982 = vmatpush.bf16.msra.mxu1 %v6059_v54  ;;  %4945 = vmatpush.bf16.msrb.mxu2 %v7271_v50  ;;  %v6888_v53 = vld [vmem:[#allocation8 + $0x978] sm:$0xf0]  ;;  %v6699_v54 = vor.u32 %v8103_v1, %v6696_v6  ;;  %v7211_v12 = vor.u32 %v8231_v7, %v7208_v63 }
 0x2b7   :  { %v8243_v27 = vld [vmem:[#allocation8 + $0xc34] sm:$0xf0]  ;;  %4973 = vmatmul.bf16.vlgmr.msra.gmra.mxu0 %v8625_v61  ;;  %v8023_v17 = vld [vmem:[#allocation8 + $0x55c] sm:$0xf]  ;;  %v6891_v18 = vor.u32 %v8151_v10, %v6888_v53  ;;  %v6667_v61 = vor.u32 %v8095_v36, %v6664_v19 }
 0x2b8   :  { %v7526_v38 = vld [vmem:[#allocation8 + $0xe58] sm:$0xf]  ;;  %v7239_v25 = vor.u32 %v8243_v27, %v7238_v42  ;;  %4957 = vmatpush.bf16.msrb.mxu3 %v7559_v22  ;;  %5017 = vmatpush.bf16.msrb.mxu0 %v6955_v41  ;;  %v6376_v62 = vld [vmem:[#allocation8 + $0x578] sm:$0xf0]  ;;  %v7179_v27 = vor.u32 %v8223_v5, %v7176_v20 }
 0x2b9   :  { %v8315_v24 = vld [vmem:[#allocation8 + $0xe74] sm:$0xf0]  ;;  %v8143_v50 = vld [vmem:[#allocation8 + $0x91c] sm:$0xf]  ;;  %v6379_v4 = vor.u32 %v8023_v17, %v6376_v62 }
 0x2ba   :  { %v7527_v2 = vor.u32 %v8315_v24, %v7526_v38  ;;  %v7494_v58 = vld [vmem:[#allocation8 + $0xe18] sm:$0xf]  ;;  %4983 = vmatpush.bf16.msra.mxu1 %v6027_v30  ;;  %4946 = vmatpush.bf16.msrb.mxu2 %v7239_v25  ;;  %v6856_v21 = vld [vmem:[#allocation8 + $0x938] sm:$0xf0]  ;;  %v4766_v25 = vpop.f32.mrf.mxu0 }
 0x2bb   :  { %v8307_v9 = vld [vmem:[#allocation8 + $0xe34] sm:$0xf0]  ;;  %v8015_v22 = vld [vmem:[#allocation8 + $0x51c] sm:$0xf]  ;;  %v6859_v11 = vor.u32 %v8143_v50, %v6856_v21  ;;  %v4767_v53 = vadd.f32 %v4766_v25, %v1666_v57 }
 0x2bc   :  { %4958 = vmatpush.bf16.msrb.mxu3 %v7527_v2  ;;  %v7495_v13 = vor.u32 %v8307_v9, %v7494_v58  ;;  %5018 = vmatpush.bf16.msrb.mxu0 %v6923_v52  ;;  %v6344_v42 = vld [vmem:[#allocation8 + $0x538] sm:$0xf0] }
 0x2bd   :  { %4947 = vmatmul.bf16.vlgmr.msrb.gmra.mxu2 %v8651_v48  ;;  %v8087_v28 = vld [vmem:[#allocation8 + $0x75c] sm:$0xf]  ;;  %v6347_v40 = vor.u32 %v8015_v22, %v6344_v42 }
 0x2be   :  { %4991 = vmatpush.bf16.msra.mxu2 %v6443_v26  ;;  %4984 = vmatpush.bf16.msra.mxu1 %v5995_v59  ;;  %v6632_v30 = vld [vmem:[#allocation8 + $0x778] sm:$0xf0] }
 0x2bf   :  { %v8215_v31 = vld [vmem:[#allocation8 + $0xb5c] sm:$0xf]  ;;  %v6635_v41 = vor.u32 %v8087_v28, %v6632_v30 }
 0x2c0   :  { %4959 = vmatpush.bf16.msrb.mxu3 %v7495_v13  ;;  %5019 = vmatpush.bf16.msrb.mxu0 %v6891_v18  ;;  %v7144_v37 = vld [vmem:[#allocation8 + $0xb78] sm:$0xf0]  ;;  %v4740_v13 = vpop.f32.mrf.mxu2  ;;  %v8784_v18 = vadd.f32 %v4779_v14, %v4767_v53 }
 0x2c1   :  { %v8135_v38 = vld [vmem:[#allocation8 + $0x8dc] sm:$0xf]  ;;  %v7147_v47 = vor.u32 %v8215_v31, %v7144_v37 }
 0x2c2   :  { %4992 = vmatpush.bf16.msra.mxu2 %v6411_v29  ;;  %4985 = vmatpush.bf16.msra.mxu1 %v5963_v16  ;;  %v6824_v24 = vld [vmem:[#allocation8 + $0x8f8] sm:$0xf0]  ;;  %v4768_v36 = vpop.f32.mrf.mxu0 }
 0x2c3   :  { %4960 = vmatmul.bf16.vlgmr.msrb.gmra.mxu3 %v8655_v15  ;;  %v8007_v34 = vld [vmem:[#allocation8 + $0x4dc] sm:$0xf]  ;;  %v6827_v49 = vor.u32 %v8135_v38, %v6824_v24 }
 0x2c4   :  { %5004 = vmatpush.bf16.msra.mxu3 %v6699_v54  ;;  %v6312_v44 = vld [vmem:[#allocation8 + $0x4f8] sm:$0xf0]  ;;  %5020 = vmatpush.bf16.msrb.mxu0 %v6859_v11 }
 0x2c5   :  { %4986 = vmatmul.bf16.vlgmr.msra.gmra.mxu1 %v8629_v23  ;;  %v8079_v46 = vld [vmem:[#allocation8 + $0x71c] sm:$0xf]  ;;  %v6315_v23 = vor.u32 %v8007_v34, %v6312_v44 }
 0x2c6   :  { %5030 = vmatpush.bf16.msrb.mxu1 %v7211_v12  ;;  %4993 = vmatpush.bf16.msra.mxu2 %v6379_v4  ;;  %v6600_v32 = vld [vmem:[#allocation8 + $0x738] sm:$0xf0]  ;;  %v4741_v12 = vadd.f32 %v4740_v13, %v8776_v43  ;;  %v4753_v43 = vpop.f32.mrf.mxu3 }
 0x2c7   :  { %v7112_v26 = vld [vmem:[#allocation8 + $0xb38] sm:$0xf0]  ;;  %v6603_v58 = vor.u32 %v8079_v46, %v6600_v32  ;;  %v4781_v46 = vpop.f32.mrf.mxu1 }
 0x2c8   :  { %5005 = vmatpush.bf16.msra.mxu3 %v6667_v61  ;;  %v8127_v2 = vld [vmem:[#allocation8 + $0x89c] sm:$0xf]  ;;  %5021 = vmatpush.bf16.msrb.mxu0 %v6827_v49  ;;  %v7115_v0 = vor.u32 %v8207_v51, %v7112_v26  ;;  %v4742_v49 = vpop.f32.mrf.mxu2 }
 0x2c9   :  { %v6792_v56 = vld [vmem:[#allocation8 + $0x8b8] sm:$0xf0] }
 0x2ca   :  { %5031 = vmatpush.bf16.msrb.mxu1 %v7179_v27  ;;  %4994 = vmatpush.bf16.msra.mxu2 %v6347_v40  ;;  %v7999_v59 = vld [vmem:[#allocation8 + $0x49c] sm:$0xf]  ;;  %v6795_v52 = vor.u32 %v8127_v2, %v6792_v56  ;;  %v4754_v40 = vadd.f32 %v4753_v43, %v4741_v12 }
 0x2cb   :  { %v6280_v9 = vld [vmem:[#allocation8 + $0x4b8] sm:$0xf0] }
 0x2cc   :  { %5006 = vmatpush.bf16.msra.mxu3 %v6635_v41  ;;  %v8071_v60 = vld [vmem:[#allocation8 + $0x6dc] sm:$0xf]  ;;  %v6283_v29 = vor.u32 %v7999_v59, %v6280_v9  ;;  %5022 = vmatpush.bf16.msrb.mxu0 %v6795_v52  ;;  %v5083_v41 = vperm.slane %v8762_v33, 4 }
 0x2cd   :  { %v6568_v1 = vld [vmem:[#allocation8 + $0x6f8] sm:$0xf0] }
 0x2ce   :  { %5032 = vmatpush.bf16.msrb.mxu1 %v7147_v47  ;;  %v8199_v6 = vld [vmem:[#allocation8 + $0xadc] sm:$0xf]  ;;  %4995 = vmatpush.bf16.msra.mxu2 %v6315_v23  ;;  %v6571_v16 = vor.u32 %v8071_v60, %v6568_v1  ;;  %v5073_v47 = vmax.f32 %v4754_v40, 0.0 }
 0x2cf   :  { %v7080_v7 = vld [vmem:[#allocation8 + $0xaf8] sm:$0xf0] }
 0x2d0   :  { %v8119_v63 = vld [vmem:[#allocation8 + $0x85c] sm:$0xf]  ;;  %5007 = vmatpush.bf16.msra.mxu3 %v6603_v58  ;;  %v7083_v54 = vor.u32 %v8199_v6, %v7080_v7  ;;  %v5099_v59 = vmul.f32 %v5083_v41, %v5073_v47  ;;  %v4755_v7 = vpop.f32.mrf.mxu3 }
 0x2d1   :  { %v6760_v10 = vld [vmem:[#allocation8 + $0x878] sm:$0xf0] }
 0x2d2   :  { %v7991_v17 = vld [vmem:[#allocation8 + $0x45c] sm:$0xf]  ;;  %5033 = vmatpush.bf16.msrb.mxu1 %v7115_v0  ;;  %v6763_v19 = vor.u32 %v8119_v63, %v6760_v10  ;;  %4996 = vmatpush.bf16.msra.mxu2 %v6283_v29  ;;  %v8788_v52 = vadd.f32 %v8766_v8, %v5099_v59 }
 0x2d3   :  { %v6248_v62 = vld [vmem:[#allocation8 + $0x478] sm:$0xf0] }
 0x2d4   :  { %v8063_v5 = vld [vmem:[#allocation8 + $0x69c] sm:$0xf]  ;;  %v6251_v22 = vor.u32 %v7991_v17, %v6248_v62  ;;  %5008 = vmatpush.bf16.msra.mxu3 %v6571_v16  ;;  %5023 = vmatpush.bf16.msrb.mxu0 %v6763_v19 }
 0x2d5   :  { %v6536_v20 = vld [vmem:[#allocation8 + $0x6b8] sm:$0xf0] }
 0x2d6   :  { %v8191_v50 = vld [vmem:[#allocation8 + $0xa9c] sm:$0xf]  ;;  %v6539_v42 = vor.u32 %v8063_v5, %v6536_v20  ;;  %5034 = vmatpush.bf16.msrb.mxu1 %v7083_v54  ;;  %4997 = vmatpush.bf16.msra.mxu2 %v6251_v22  ;;  %v4818_v5 = vpop.f32.mrf.mxu0 }
 0x2d7   :  { %v7048_v21 = vld [vmem:[#allocation8 + $0xab8] sm:$0xf0] }
 0x2d8   :  { %v8111_v4 = vld [vmem:[#allocation8 + $0x81c] sm:$0xf]  ;;  %v7051_v30 = vor.u32 %v8191_v50, %v7048_v21  ;;  %5009 = vmatpush.bf16.msra.mxu3 %v6539_v42 }
 0x2d9   :  { %v6728_v61 = vld [vmem:[#allocation8 + $0x838] sm:$0xf0] }
 0x2da   :  { %v7983_v27 = vld [vmem:[#allocation8 + $0x41c] sm:$0xf]  ;;  %v6731_v31 = vor.u32 %v8111_v4, %v6728_v61  ;;  %5035 = vmatpush.bf16.msrb.mxu1 %v7051_v30 }
 0x2db   :  { %v6216_v11 = vld [vmem:[#allocation8 + $0x438] sm:$0xf0] }
 0x2dc   :  { %v8295_v28 = vld [vmem:[#allocation8 + $0xddc] sm:$0xf]  ;;  %v6219_v25 = vor.u32 %v7983_v27, %v6216_v11  ;;  %5024 = vmatpush.bf16.msrb.mxu0 %v6731_v31  ;;  %v4831_v11 = vpop.f32.mrf.mxu1 }
 0x2dd   :  { %v7464_v37 = vld [vmem:[#allocation8 + $0xdf8] sm:$0xf0] }
 0x2de   :  { %v8055_v38 = vld [vmem:[#allocation8 + $0x65c] sm:$0xf]  ;;  %v7467_v32 = vor.u32 %v8295_v28, %v7464_v37  ;;  %4998 = vmatpush.bf16.msra.mxu2 %v6219_v25  ;;  %v4820_v37 = vpop.f32.mrf.mxu0  ;;  %v4805_v25 = vpop.f32.mrf.mxu3 }
 0x2df   :  { %v6504_v24 = vld [vmem:[#allocation8 + $0x678] sm:$0xf0]  ;;  %5025 = vmatmul.bf16.vlgmr.msrb.gmra.mxu0 %v8641_v35 }
 0x2e0   :  { %v8183_v34 = vld [vmem:[#allocation8 + $0xa5c] sm:$0xf]  ;;  %v6507_v51 = vor.u32 %v8055_v38, %v6504_v24 }
 0x2e1   :  { %v7016_v44 = vld [vmem:[#allocation8 + $0xa78] sm:$0xf0]  ;;  %4999 = vmatmul.bf16.vlgmr.msra.gmra.mxu2 %v8633_v3 }
 0x2e2   :  { %v8287_v26 = vld [vmem:[#allocation8 + $0xd9c] sm:$0xf]  ;;  %v7019_v56 = vor.u32 %v8183_v34, %v7016_v44  ;;  %5043 = vmatpush.bf16.msrb.mxu2 %v7467_v32  ;;  %5010 = vmatpush.bf16.msra.mxu3 %v6507_v51 }
 0x2e3   :  { %v7432_v2 = vld [vmem:[#allocation8 + $0xdb8] sm:$0xf0] }
 0x2e4   :  { %v8047_v57 = vld [vmem:[#allocation8 + $0x61c] sm:$0xf]  ;;  %v7435_v1 = vor.u32 %v8287_v26, %v7432_v2  ;;  %5036 = vmatpush.bf16.msrb.mxu1 %v7019_v56  ;;  %v4833_v2 = vpop.f32.mrf.mxu1 }
 0x2e5   :  { %v6472_v23 = vld [vmem:[#allocation8 + $0x638] sm:$0xf0] }
 0x2e6   :  { %v8175_v58 = vld [vmem:[#allocation8 + $0xa1c] sm:$0xf]  ;;  %v6475_v6 = vor.u32 %v8047_v57, %v6472_v23  ;;  %5044 = vmatpush.bf16.msrb.mxu2 %v7435_v1  ;;  %v4807_v59 = vpop.f32.mrf.mxu3 }
 0x2e7   :  { %v6984_v9 = vld [vmem:[#allocation8 + $0xa38] sm:$0xf0] }
 0x2e8   :  { %v8359_v60 = vld [vmem:[#allocation8 + $0xfdc] sm:$0xf]  ;;  %v6987_v63 = vor.u32 %v8175_v58, %v6984_v9  ;;  %5011 = vmatpush.bf16.msra.mxu3 %v6475_v6 }
 0x2e9   :  { %v7720_v0 = vld [vmem:[#allocation8 + $0xff8] sm:$0xf0]  ;;  %v4870_v9 = vpop.f32.mrf.mxu0 }
 0x2ea   :  { %v7723_v10 = vor.u32 %v8359_v60, %v7720_v0  ;;  %v8279_v53 = vld [vmem:[#allocation8 + $0xd5c] sm:$0xf]  ;;  %5037 = vmatpush.bf16.msrb.mxu1 %v6987_v63  ;;  %v1667_v60 = vperm.slane %v8756_v45, 6 }
 0x2eb   :  { %v7400_v29 = vld [vmem:[#allocation8 + $0xd78] sm:$0xf0]  ;;  %5012 = vmatmul.bf16.vlgmr.msra.gmra.mxu3 %v8636_v39 }
 0x2ec   :  { %v8351_v13 = vld [vmem:[#allocation8 + $0xf9c] sm:$0xf]  ;;  %v7403_v8 = vor.u32 %v8279_v53, %v7400_v29  ;;  %5056 = vmatpush.bf16.msrb.mxu3 %v7723_v10  ;;  %v4871_v0 = vadd.f32 %v4870_v9, %v1667_v60  ;;  %v5086_v9 = vperm.slane %v8762_v33, 7 }
 0x2ed   :  { %v7688_v14 = vld [vmem:[#allocation8 + $0xfb8] sm:$0xf0]  ;;  %5038 = vmatmul.bf16.vlgmr.msrb.gmra.mxu1 %v8644_v55  ;;  %v4792_v55 = vpop.f32.mrf.mxu2 }
 0x2ee   :  { %v7691_v16 = vor.u32 %v8351_v13, %v7688_v14  ;;  %v8271_v54 = vld [vmem:[#allocation8 + $0xd1c] sm:$0xf]  ;;  %5045 = vmatpush.bf16.msrb.mxu2 %v7403_v8  ;;  %v4793_v31 = vadd.f32 %v4792_v55, %v8784_v18  ;;  %v5084_v13 = vperm.slane %v8762_v33, 5 }
 0x2ef   :  { %v7368_v17 = vld [vmem:[#allocation8 + $0xd38] sm:$0xf0] }
 0x2f0   :  { %v8343_v62 = vld [vmem:[#allocation8 + $0xf5c] sm:$0xf]  ;;  %v7371_v35 = vor.u32 %v8271_v54, %v7368_v17  ;;  %5057 = vmatpush.bf16.msrb.mxu3 %v7691_v16  ;;  %v4806_v46 = vadd.f32 %v4805_v25, %v4793_v31 }
 0x2f1   :  { %v7656_v12 = vld [vmem:[#allocation8 + $0xf78] sm:$0xf0]  ;;  %v4872_v10 = vpop.f32.mrf.mxu0 }
 0x2f2   :  { %v7659_v3 = vor.u32 %v8343_v62, %v7656_v12  ;;  %v8263_v36 = vld [vmem:[#allocation8 + $0xcdc] sm:$0xf]  ;;  %5046 = vmatpush.bf16.msrb.mxu2 %v7371_v35  ;;  %v4819_v51 = vadd.f32 %v4818_v5, %v4806_v46 }
 0x2f3   :  { %v7336_v19 = vld [vmem:[#allocation8 + $0xcf8] sm:$0xf0] }
 0x2f4   :  { %v8335_v20 = vld [vmem:[#allocation8 + $0xf1c] sm:$0xf]  ;;  %v7339_v21 = vor.u32 %v8263_v36, %v7336_v19  ;;  %5058 = vmatpush.bf16.msrb.mxu3 %v7659_v3  ;;  %v4832_v23 = vadd.f32 %v4831_v11, %v4819_v51  ;;  %v5085_v11 = vperm.slane %v8762_v33, 6 }
 0x2f5   :  { %v7624_v50 = vld [vmem:[#allocation8 + $0xf38] sm:$0xf0]  ;;  %v4794_v26 = vpop.f32.mrf.mxu2 }
 0x2f6   :  { %v7627_v4 = vor.u32 %v8335_v20, %v7624_v50  ;;  %v8255_v61 = vld [vmem:[#allocation8 + $0xc9c] sm:$0xf]  ;;  %5047 = vmatpush.bf16.msrb.mxu2 %v7339_v21 }
 0x2f7   :  { %v7304_v22 = vld [vmem:[#allocation8 + $0xcb8] sm:$0xf0]  ;;  %v4883_v6 = vpop.f32.mrf.mxu1 }
 0x2f8   :  { %v8327_v42 = vld [vmem:[#allocation8 + $0xedc] sm:$0xf]  ;;  %v7307_v39 = vor.u32 %v8255_v61, %v7304_v22  ;;  %5059 = vmatpush.bf16.msrb.mxu3 %v7627_v4  ;;  %v4884_v63 = vadd.f32 %v4883_v6, %v4871_v0 }
 0x2f9   :  { %v7592_v27 = vld [vmem:[#allocation8 + $0xef8] sm:$0xf0] }
 0x2fa   :  { %v7595_v28 = vor.u32 %v8327_v42, %v7592_v27  ;;  %v8247_v43 = vld [vmem:[#allocation8 + $0xc5c] sm:$0xf]  ;;  %5048 = vmatpush.bf16.msrb.mxu2 %v7307_v39 }
 0x2fb   :  { %v7272_v30 = vld [vmem:[#allocation8 + $0xc78] sm:$0xf0]  ;;  %v4857_v53 = vpop.f32.mrf.mxu3 }
 0x2fc   :  { %v8319_v38 = vld [vmem:[#allocation8 + $0xe9c] sm:$0xf]  ;;  %v7275_v40 = vor.u32 %v8247_v43, %v7272_v30  ;;  %5060 = vmatpush.bf16.msrb.mxu3 %v7595_v28 }
 0x2fd   :  { %v7560_v24 = vld [vmem:[#allocation8 + $0xeb8] sm:$0xf0]  ;;  %v4844_v1 = vpop.f32.mrf.mxu2 }
 0x2fe   :  { %v7563_v41 = vor.u32 %v8319_v38, %v7560_v24  ;;  %v8239_v34 = vld [vmem:[#allocation8 + $0xc1c] sm:$0xf]  ;;  %5049 = vmatpush.bf16.msrb.mxu2 %v7275_v40  ;;  %v4845_v7 = vadd.f32 %v4844_v1, %v4832_v23 }
 0x2ff   :  { %v7240_v44 = vld [vmem:[#allocation8 + $0xc38] sm:$0xf0]  ;;  %v4885_v16 = vpop.f32.mrf.mxu1 }
 0x300   :  { %v8311_v47 = vld [vmem:[#allocation8 + $0xe5c] sm:$0xf]  ;;  %v7243_v32 = vor.u32 %v8239_v34, %v7240_v44  ;;  %5061 = vmatpush.bf16.msrb.mxu3 %v7563_v41  ;;  %v4858_v29 = vadd.f32 %v4857_v53, %v4845_v7 }
 0x301   :  { %v7528_v49 = vld [vmem:[#allocation8 + $0xe78] sm:$0xf0] }
 0x302   :  { %v7531_v18 = vor.u32 %v8311_v47, %v7528_v49  ;;  %v8303_v56 = vld [vmem:[#allocation8 + $0xe1c] sm:$0xf]  ;;  %5050 = vmatpush.bf16.msrb.mxu2 %v7243_v32  ;;  %v5074_v14 = vmax.f32 %v4858_v29, 0.0  ;;  %v1668_v49 = vperm.slane %v8756_v45, 7  ;;  %v8374_v45 = vld [vmem:[#allocation2] ss:$0 sm:$0xff] }
 0x303   :  { %v7496_v57 = vld [vmem:[#allocation8 + $0xe38] sm:$0xf0] }
 0x304   :  { %5062 = vmatpush.bf16.msrb.mxu3 %v7531_v18  ;;  %v7499_v58 = vor.u32 %v8303_v56, %v7496_v57 }
 0x305   :  { %5051 = vmatmul.bf16.vlgmr.msrb.gmra.mxu2 %v8651_v48  ;;  %v4846_v8 = vpop.f32.mrf.mxu2  ;;  %v5100_v48 = vmul.f32 %v5084_v13, %v5074_v14 }
 0x307   :  { %v5107_v54 = vadd.f32 %v8788_v52, %v5100_v48 }
 0x308   :  { %5063 = vmatpush.bf16.msrb.mxu3 %v7499_v58 }
 0x30b   :  { %5064 = vmatmul.bf16.vlgmr.msrb.gmra.mxu3 %v8655_v15  ;;  %v4859_v15 = vpop.f32.mrf.mxu3 }
 0x314   :  { %v4922_v17 = vpop.f32.mrf.mxu0 }
 0x31c   :  { %v4896_v62 = vpop.f32.mrf.mxu2  ;;  %v4924_v3 = vpop.f32.mrf.mxu0 }
 0x31d   :  { %v4897_v35 = vadd.f32 %v4896_v62, %v4884_v63 }
 0x322   :  { %v4935_v12 = vpop.f32.mrf.mxu1 }
 0x324   :  { %v4898_v20 = vpop.f32.mrf.mxu2 }
 0x326   :  { %v4909_v36 = vpop.f32.mrf.mxu3 }
 0x327   :  { %v4910_v19 = vadd.f32 %v4909_v36, %v4897_v35 }
 0x329   :  { %v4923_v5 = vadd.f32 %v4922_v17, %v4910_v19 }
 0x32a   :  { %v4937_v50 = vpop.f32.mrf.mxu1 }
 0x32b   :  { %v4936_v21 = vadd.f32 %v4935_v12, %v4923_v5 }
 0x32e   :  { %v4911_v4 = vpop.f32.mrf.mxu3 }
 0x334   :  { %v4974_v61 = vpop.f32.mrf.mxu0 }
 0x335   :  { %v4975_v32 = vadd.f32 %v4974_v61, %v1668_v49 }
 0x33c   :  { %v4976_v27 = vpop.f32.mrf.mxu0 }
 0x340   :  { %v4948_v22 = vpop.f32.mrf.mxu2 }
 0x341   :  { %v4949_v39 = vadd.f32 %v4948_v22, %v4936_v21 }
 0x342   :  { %v4987_v42 = vpop.f32.mrf.mxu1 }
 0x343   :  { %v4988_v51 = vadd.f32 %v4987_v42, %v4975_v32 }
 0x346   :  { %v4961_v55 = vpop.f32.mrf.mxu3 }
 0x347   :  { %v4962_v52 = vadd.f32 %v4961_v55, %v4949_v39 }
 0x348   :  { %v4950_v43 = vpop.f32.mrf.mxu2 }
 0x349   :  { %v5075_v28 = vmax.f32 %v4962_v52, 0.0 }
 0x34a   :  { %v4989_v30 = vpop.f32.mrf.mxu1 }
 0x34b   :  { %v5101_v31 = vmul.f32 %v5085_v11, %v5075_v28 }
 0x34d   :  { %v5108_v37 = vadd.f32 %v5107_v54, %v5101_v31 }
 0x34e   :  { %v4963_v38 = vpop.f32.mrf.mxu3 }
 0x35c   :  { %v5026_v24 = vpop.f32.mrf.mxu0 }
 0x364   :  { %v5000_v40 = vpop.f32.mrf.mxu2  ;;  %v5028_v34 = vpop.f32.mrf.mxu0 }
 0x365   :  { %v5001_v26 = vadd.f32 %v5000_v40, %v4988_v51 }
 0x36a   :  { %v5039_v41 = vpop.f32.mrf.mxu1 }
 0x36c   :  { %v5002_v25 = vpop.f32.mrf.mxu2 }
 0x36e   :  { %v5013_v44 = vpop.f32.mrf.mxu3 }
 0x36f   :  { %v5014_v2 = vadd.f32 %v5013_v44, %v5001_v26 }
 0x371   :  { %v5027_v18 = vadd.f32 %v5026_v24, %v5014_v2 }
 0x372   :  { %v5041_v47 = vpop.f32.mrf.mxu1 }
 0x373   :  { %v5040_v57 = vadd.f32 %v5039_v41, %v5027_v18 }
 0x376   :  { %v5015_v46 = vpop.f32.mrf.mxu3 }
 0x388   :  { %v5052_v56 = vpop.f32.mrf.mxu2 }
 0x389   :  { %v5053_v23 = vadd.f32 %v5052_v56, %v5040_v57 }
 0x38e   :  { %v5065_v58 = vpop.f32.mrf.mxu3 }
 0x38f   :  { %v5066_v59 = vadd.f32 %v5065_v58, %v5053_v23 }
 0x390   :  { %v5054_v0 = vpop.f32.mrf.mxu2 }
 0x391   :  { %v5076_v60 = vmax.f32 %v5066_v59, 0.0 }
 0x393   :  { %v5102_v1 = vmul.f32 %v5086_v9, %v5076_v60 }
 0x395   :  { %v5109_v6 = vadd.f32 %v5108_v37, %v5102_v1 }
 0x396   :  { %v5067_v7 = vpop.f32.mrf.mxu3 }
 0x397   :  { %5110 = vadd.xlane.f32.xlu0 %v5109_v6 }
 0x40a   :  { %v5111_v63 = vpop.xlane.xlu0 %5110 }
 0x40b   :  { %v5116_v10 = vadd.f32 %v8374_v45, %v5111_v63 }
 0x40d   :  { %5118 = vst.msk [vmem:[#allocation13] sm:$0xff] %vm5117_vm0, %v5116_v10 }
 0x414   :  { %v5137_v53 = vld [vmem:[#allocation13] sm:$0x3] }
 0x415   :  { %5138 = vst [vmem:[%s8813_s7] sm:$0x3] %v5137_v53 }
 0x416   :  { %5156 = vsyncpa [#allocation4], 1 }
 0x417   :  { %5157 = vsyncpa [#allocation6], 1 }
 0x418   :  { %5158 = vsyncpa [#allocation9], 1 }
 0x419   :  { %5159 = vsyncpa [#allocation12], 1 }

</bundles_post_ra>
